<compile_context>
chip_gen: v5e
topology: v5e:2x2
jax: 0.10.0
libtpu: 0.0.40
codegen_flags: <defaults>
</compile_context>

<pallas_src>
import jax
import jax.numpy as jnp
from jax import lax
from jax.experimental import pallas as pl
from jax.experimental.pallas import tpu as pltpu

# ----------------------------- static config ---------------------------------
E = 32            # embedding_dim
H = 4             # n_heads
DQ = E // H       # query dim per head (8)
DV = E // H       # value dim per head (8)
HALF = DQ // 2    # rotate-half size (4)
FFN = 64          # ffn_hidden_dim
N_ENC = 2
N_DEC = 2
VP, VM, VS = 32, 48, 32
VTOT = VP + VM + VS        # 112
VPAD = 128                 # lane-dense vocab / table width
EPS = 1e-6
NEG_INF = -1e9
SCALE = 1.0 / (DQ ** 0.5)


# ----------------------------- weight slab layout -----------------------------
def _build_layout(rope_rows):
    """Single [rows, 128] f32 slab; every entry is 8-row aligned."""
    entries = {}
    row = 0

    def add(name, nr, nc):
        nonlocal row
        entries[name] = (row, nr, nc)
        row += -(-nr // 8) * 8

    add("E_cat", VPAD, E)          # word-encoder tables [Ep; Em; Es] (row padded)
    add("D_cat", VPAD, E)          # word-decoder tables [Dp; Dm; Ds]
    add("U_cat", E, VPAD)          # vocab projection  [Up | Um | Us] (lane padded)
    add("Wproj", E, E)
    add("enc_norm", 1, E)
    add("dec_norm", 1, E)
    add("rope_cos", rope_rows, H * DQ)
    add("rope_sin", rope_rows, H * DQ)   # sign-folded (-sin | +sin per head)
    for i in range(N_ENC):
        add(f"e{i}_n1", 1, E); add(f"e{i}_n2", 1, E)
        for nm in ("wq", "wk", "wv", "wo"):
            add(f"e{i}_{nm}", E, E)
        add(f"e{i}_w1", E, FFN); add(f"e{i}_w2", E, FFN); add(f"e{i}_w3", FFN, E)
    for i in range(N_DEC):
        add(f"d{i}_n1", 1, E); add(f"d{i}_n2", 1, E); add(f"d{i}_n3", 1, E)
        for nm in ("swq", "swk", "swv", "swo", "cwq", "cwk", "cwv", "cwo"):
            add(f"d{i}_{nm}", E, E)
        add(f"d{i}_w1", E, FFN); add(f"d{i}_w2", E, FFN); add(f"d{i}_w3", FFN, E)
    return entries, row


def pack_params(params, layout, total_rows, rope_rows):
    tf, wenc, wdec = params["tf"], params["wenc"], params["wdec"]
    slab = jnp.zeros((total_rows, 128), jnp.float32)

    def put(name, val):
        nonlocal slab
        r, nr, nc = layout[name]
        val = jnp.asarray(val, jnp.float32)
        assert val.shape == (nr, nc), (name, val.shape, (nr, nc))
        slab = slab.at[r:r + nr, 0:nc].set(val)

    put("E_cat", jnp.pad(jnp.concatenate([wenc["Ep"], wenc["Em"], wenc["Es"]], 0),
                         ((0, VPAD - VTOT), (0, 0))))
    put("D_cat", jnp.pad(jnp.concatenate([wdec["Dp"], wdec["Dm"], wdec["Ds"]], 0),
                         ((0, VPAD - VTOT), (0, 0))))
    put("U_cat", jnp.pad(jnp.concatenate([wdec["Up"], wdec["Um"], wdec["Us"]], 1),
                         ((0, 0), (0, VPAD - VTOT))))
    put("Wproj", wenc["W_proj"])
    put("enc_norm", tf["encoder_norm"].reshape(1, E))
    put("dec_norm", tf["decoder_norm"].reshape(1, E))

    inv = 1.0 / (10000.0 ** (jnp.arange(HALF, dtype=jnp.float32) / HALF))
    ang = jnp.arange(rope_rows, dtype=jnp.float32)[:, None] * inv[None, :]
    cos, sin = jnp.cos(ang), jnp.sin(ang)
    put("rope_cos", jnp.tile(jnp.concatenate([cos, cos], 1), (1, H)))
    put("rope_sin", jnp.tile(jnp.concatenate([-sin, sin], 1), (1, H)))

    for i, lyr in enumerate(tf["enc_layers"]):
        put(f"e{i}_n1", lyr["norm1"].reshape(1, E))
        put(f"e{i}_n2", lyr["norm2"].reshape(1, E))
        put(f"e{i}_wq", lyr["attn"]["wq"]); put(f"e{i}_wk", lyr["attn"]["wk"])
        put(f"e{i}_wv", lyr["attn"]["wv"]); put(f"e{i}_wo", lyr["attn"]["wo"])
        put(f"e{i}_w1", lyr["ffn_w1"]); put(f"e{i}_w2", lyr["ffn_w2"])
        put(f"e{i}_w3", lyr["ffn_w3"])
    for i, lyr in enumerate(tf["dec_layers"]):
        put(f"d{i}_n1", lyr["norm1"].reshape(1, E))
        put(f"d{i}_n2", lyr["norm2"].reshape(1, E))
        put(f"d{i}_n3", lyr["norm3"].reshape(1, E))
        put(f"d{i}_swq", lyr["self_attn"]["wq"]); put(f"d{i}_swk", lyr["self_attn"]["wk"])
        put(f"d{i}_swv", lyr["self_attn"]["wv"]); put(f"d{i}_swo", lyr["self_attn"]["wo"])
        put(f"d{i}_cwq", lyr["cross_attn"]["wq"]); put(f"d{i}_cwk", lyr["cross_attn"]["wk"])
        put(f"d{i}_cwv", lyr["cross_attn"]["wv"]); put(f"d{i}_cwo", lyr["cross_attn"]["wo"])
        put(f"d{i}_w1", lyr["ffn_w1"]); put(f"d{i}_w2", lyr["ffn_w2"])
        put(f"d{i}_w3", lyr["ffn_w3"])
    return slab


# ----------------------------- fused kernel ----------------------------------
def _make_kernel(layout, s_len, l_len, ctx_parts, dec_parts, out_parts,
                 off_dec, off_out):
    Sp, Sm, Ss = ctx_parts
    Lp, Lm, Ls = dec_parts
    Op, Om, Os = out_parts
    NT_CTX = Sp + Sm + Ss
    NT_DEC = Lp + Lm + Ls
    T_OUT = Op + Om + Os
    n_ctx_tok = s_len * NT_CTX
    n_dec_tok = l_len * NT_DEC
    n_out_tok = l_len * T_OUT
    f32 = jnp.float32

    def kernel(ids_ref, bias_ref, slab_ref, o_ref):
        def w(name):
            r, nr, nc = layout[name]
            return slab_ref[r:r + nr, 0:nc]

        def iota(shape, dim):
            return lax.broadcasted_iota(jnp.int32, shape, dim)

        # ---- iota-built selection constants (no div/rem, hoisted) -----------
        def block_mask(nr_blk, nc_blk):
            rows, cols = H * nr_blk, H * nc_blk
            r, c = iota((rows, cols), 0), iota((rows, cols), 1)
            m = None
            for h in range(H):
                t = ((r >= h * nr_blk) & (r < (h + 1) * nr_blk)
                     & (c >= h * nc_blk) & (c < (h + 1) * nc_blk))
                m = t if m is None else (m | t)
            return m

        def repl_mat(kv):                       # [kv, H*kv], repl[s, h*kv+s] = 1
            r, c = iota((kv, H * kv), 0), iota((kv, H * kv), 1)
            m = None
            for h in range(H):
                t = (c == h * kv + r)
                m = t if m is None else (m | t)
            return jnp.where(m, 1.0, 0.0)

        def rep_mat(kv):                        # [H*kv, kv], rep[h*kv+s, s] = 1
            r, c = iota((H * kv, kv), 0), iota((H * kv, kv), 1)
            m = None
            for h in range(H):
                t = (r == h * kv + c)
                m = t if m is None else (m | t)
            return jnp.where(m, 1.0, 0.0)

        HD = H * DQ
        same_head = block_mask(DQ, DQ)
        rr, cc = iota((HD, HD), 0), iota((HD, HD), 1)
        # rotate-half swap permutation (block-diagonal, +-HALF within a head)
        pswap = jnp.where(same_head & ((cc == rr + HALF) | (rr == cc + HALF)),
                          1.0, 0.0)

        consts = {}

        def attn_consts(kv):
            if kv not in consts:
                consts[kv] = dict(
                    mk_mask=jnp.where(block_mask(DQ, kv), 1.0, 0.0),
                    mv_mask=jnp.where(block_mask(kv, DV), 1.0, 0.0),
                    ones_blk=jnp.where(block_mask(kv, kv), 1.0, 0.0),
                    repl=repl_mat(kv),
                    rep=rep_mat(kv))
            return consts[kv]

        cos_t = w("rope_cos")
        sin_t = w("rope_sin")                   # sign-folded

        def rope(x):
            n = x.shape[0]
            return (x * cos_t[0:n, :]
                    + jnp.dot(x, pswap, preferred_element_type=f32) * sin_t[0:n, :])

        def rmsnorm(x, wn):
            return x * lax.rsqrt(jnp.mean(x * x, axis=-1, keepdims=True) + EPS) * wn

        # Head-batched attention via block-diagonal MXU matmuls:
        # q,k: [Lq|kv, H*DQ], v: [kv, H*DV]; scores packed in lanes as (head, kv).
        def mha(q, k, v, kv_len, bias_lane):
            cst = attn_consts(kv_len)
            kt = k.T                                                   # [H*DQ, kv]
            m_k = jnp.dot(kt, cst["repl"], preferred_element_type=f32) * cst["mk_mask"]
            s = jnp.dot(q, m_k, preferred_element_type=f32) * SCALE    # [Lq, H*kv]
            if bias_lane is not None:
                s = s + bias_lane
            p = jnp.exp(s - jnp.max(s, axis=-1, keepdims=True))
            denom = jnp.dot(p, cst["ones_blk"], preferred_element_type=f32)
            p = p * pl.reciprocal(denom, approx=True)
            m_v = jnp.dot(cst["rep"], v, preferred_element_type=f32) * cst["mv_mask"]
            return jnp.dot(p, m_v, preferred_element_type=f32)         # [Lq, H*DV]

        def self_attn(x, wq, wk, wv, wo, bias_lane):
            q = rope(jnp.dot(x, wq, preferred_element_type=f32))
            k = rope(jnp.dot(x, wk, preferred_element_type=f32))
            v = jnp.dot(x, wv, preferred_element_type=f32)
            return jnp.dot(mha(q, k, v, x.shape[0], bias_lane), wo,
                           preferred_element_type=f32)

        def cross_attn(x, ctx, wq, wk, wv, wo):
            q = jnp.dot(x, wq, preferred_element_type=f32)
            k = jnp.dot(ctx, wk, preferred_element_type=f32)
            v = jnp.dot(ctx, wv, preferred_element_type=f32)
            return jnp.dot(mha(q, k, v, ctx.shape[0], None), wo,
                           preferred_element_type=f32)

        def ffn(x, w1, w2, w3):
            a = jnp.dot(x, w1, preferred_element_type=f32)
            g = jnp.dot(x, w2, preferred_element_type=f32)
            return jnp.dot(a * jax.nn.sigmoid(a) * g, w3, preferred_element_type=f32)

        # ---- word encoder: one-hot gather + mean-pool + projection (MXU) ----
        e_cat = w("E_cat")
        wproj = w("Wproj")

        def encode_words(ids, n_rows, nt, parts):
            ntok = n_rows * nt
            lane = iota((ntok, VPAD), 1)
            onehot = jnp.where(ids == lane, 1.0, 0.0)                  # [ntok, 128]
            tok = jnp.dot(onehot, e_cat, preferred_element_type=f32)   # [ntok, E]
            r, c = iota((n_rows, ntok), 0), iota((n_rows, ntok), 1)
            lo = r * nt
            tpos = c - lo
            p1, p2, p3 = parts
            wt = jnp.where(tpos < p1, 1.0 / p1,
                           jnp.where(tpos < p1 + p2, 1.0 / p2, 1.0 / p3))
            pool = jnp.where((c >= lo) & (c < lo + nt), wt, 0.0)       # [n_rows, ntok]
            pooled = jnp.dot(pool, tok, preferred_element_type=f32)    # [n_rows, E]
            return jnp.dot(pooled, wproj, preferred_element_type=f32)

        ctx_ids = ids_ref[0:n_ctx_tok, :]
        dec_ids = ids_ref[off_dec:off_dec + n_dec_tok, :]
        out_ids = ids_ref[off_out:off_out + n_out_tok, :]

        # ---- transformer encoder ----
        x = encode_words(ctx_ids, s_len, NT_CTX, (Sp, Sm, Ss))
        for i in range(N_ENC):
            h = rmsnorm(x, w(f"e{i}_n1"))
            x = x + self_attn(h, w(f"e{i}_wq"), w(f"e{i}_wk"), w(f"e{i}_wv"),
                              w(f"e{i}_wo"), None)
            h = rmsnorm(x, w(f"e{i}_n2"))
            x = x + ffn(h, w(f"e{i}_w1"), w(f"e{i}_w2"), w(f"e{i}_w3"))
        ctx = rmsnorm(x, w("enc_norm"))

        # ---- transformer decoder ----
        bias_lane = jnp.dot(bias_ref[...], attn_consts(l_len)["repl"],
                            preferred_element_type=f32)                # [L, H*L]
        x = encode_words(dec_ids, l_len, NT_DEC, (Lp, Lm, Ls))
        for i in range(N_DEC):
            h = rmsnorm(x, w(f"d{i}_n1"))
            x = x + self_attn(h, w(f"d{i}_swq"), w(f"d{i}_swk"), w(f"d{i}_swv"),
                              w(f"d{i}_swo"), bias_lane)
            h = rmsnorm(x, w(f"d{i}_n2"))
            x = x + cross_attn(h, ctx, w(f"d{i}_cwq"), w(f"d{i}_cwk"),
                               w(f"d{i}_cwv"), w(f"d{i}_cwo"))
            h = rmsnorm(x, w(f"d{i}_n3"))
            x = x + ffn(h, w(f"d{i}_w1"), w(f"d{i}_w2"), w(f"d{i}_w3"))
        dec = rmsnorm(x, w("dec_norm"))

        # ---- word decoder heads (lane-dense 128-wide logits) ----
        lane = iota((n_out_tok, VPAD), 1)
        onehot = jnp.where(out_ids == lane, 1.0, 0.0)                  # [L*T, 128]
        gathered = jnp.dot(onehot, w("D_cat"), preferred_element_type=f32)
        r, c = iota((n_out_tok, l_len), 0), iota((n_out_tok, l_len), 1)
        rept = jnp.where((r >= c * T_OUT) & (r < (c + 1) * T_OUT), 1.0, 0.0)
        dec_rep = jnp.dot(rept, dec, preferred_element_type=f32)       # [L*T, E]
        o_ref[...] = jnp.dot(gathered + dec_rep, w("U_cat"),
                             preferred_element_type=f32)               # [L*T, 128]

    return kernel


# ----------------------------- wrapper ---------------------------------------
def make_forward(layout):
    def forward(slab, prefix_ids, spm_ids, suffix_ids,
                context_prefix_ids, context_spm_ids, context_suffix_ids,
                output_prefix_ids, output_spm_ids, output_suffix_ids,
                attn_mask):
        l_len = prefix_ids.shape[0]
        s_len = context_prefix_ids.shape[0]
        ctx_parts = (context_prefix_ids.shape[1], context_spm_ids.shape[1],
                     context_suffix_ids.shape[1])
        dec_parts = (prefix_ids.shape[1], spm_ids.shape[1], suffix_ids.shape[1])
        out_parts = (output_prefix_ids.shape[1], output_spm_ids.shape[1],
                     output_suffix_ids.shape[1])
        t_out = sum(out_parts)

        def cat_ids(p, m, s):
            ids = jnp.concatenate([p, m + VP, s + VP + VM], axis=1)
            return ids.reshape(-1, 1).astype(jnp.int32)

        def pad8(a):
            pad = (-a.shape[0]) % 8
            return jnp.pad(a, ((0, pad), (0, 0))) if pad else a

        ctx_flat = pad8(cat_ids(context_prefix_ids, context_spm_ids,
                                context_suffix_ids))
        dec_flat = pad8(cat_ids(prefix_ids, spm_ids, suffix_ids))
        out_flat = pad8(cat_ids(output_prefix_ids, output_spm_ids,
                                output_suffix_ids))
        ids_all = jnp.concatenate([ctx_flat, dec_flat, out_flat], axis=0)
        off_dec = ctx_flat.shape[0]
        off_out = off_dec + dec_flat.shape[0]

        bias = jnp.where(attn_mask, 0.0, NEG_INF).astype(jnp.float32)

        kernel = _make_kernel(layout, s_len, l_len, ctx_parts, dec_parts,
                              out_parts, off_dec, off_out)
        logits = pl.pallas_call(
            kernel,
            out_shape=jax.ShapeDtypeStruct((l_len * t_out, VPAD), jnp.float32),
            in_specs=[pl.BlockSpec(memory_space=pltpu.MemorySpace.VMEM)] * 3,
            out_specs=pl.BlockSpec(memory_space=pltpu.MemorySpace.VMEM),
        )(ids_all, bias, slab)

        logits = logits.reshape(l_len, t_out, VPAD)
        op, om, _ = out_parts
        lp = logits[:, :op, :VP]
        lm = logits[:, op:op + om, VP:VP + VM]
        ls = logits[:, op + om:, VP + VM:VTOT]
        return lp, lm, ls
    return forward


# ----------------------------- parameter init --------------------------------
def _dense(key, shape, scale=0.02):
    return scale * jax.random.normal(key, shape, dtype=jnp.float32)


def init_attn(key):
    k1, k2, k3, k4 = jax.random.split(key, 4)
    return {"wq": _dense(k1, (E, H * DQ)), "wk": _dense(k2, (E, H * DQ)),
            "wv": _dense(k3, (E, H * DV)), "wo": _dense(k4, (H * DV, E))}


def init_enc_layer(key):
    k1, k2, k3, k4 = jax.random.split(key, 4)
    return {"attn": init_attn(k1),
            "ffn_w1": _dense(k2, (E, FFN)), "ffn_w2": _dense(k3, (E, FFN)),
            "ffn_w3": _dense(k4, (FFN, E)),
            "norm1": jnp.ones((E,), jnp.float32),
            "norm2": jnp.ones((E,), jnp.float32)}


def init_dec_layer(key):
    k1, k2, k3, k4, k5 = jax.random.split(key, 5)
    return {"self_attn": init_attn(k1), "cross_attn": init_attn(k2),
            "ffn_w1": _dense(k3, (E, FFN)), "ffn_w2": _dense(k4, (E, FFN)),
            "ffn_w3": _dense(k5, (FFN, E)),
            "norm1": jnp.ones((E,), jnp.float32),
            "norm2": jnp.ones((E,), jnp.float32),
            "norm3": jnp.ones((E,), jnp.float32)}


def init_params(key):
    keys = jax.random.split(key, 18)
    tf = {"enc_layers": [init_enc_layer(keys[i]) for i in range(N_ENC)],
          "dec_layers": [init_dec_layer(keys[4 + i]) for i in range(N_DEC)],
          "encoder_norm": jnp.ones((E,), jnp.float32),
          "decoder_norm": jnp.ones((E,), jnp.float32)}
    wenc = {"Ep": _dense(keys[8], (VP, E), 0.1), "Em": _dense(keys[9], (VM, E), 0.1),
            "Es": _dense(keys[10], (VS, E), 0.1), "W_proj": _dense(keys[11], (E, E))}
    wdec = {"Dp": _dense(keys[12], (VP, E), 0.1), "Dm": _dense(keys[13], (VM, E), 0.1),
            "Ds": _dense(keys[14], (VS, E), 0.1),
            "Up": _dense(keys[15], (E, VP)), "Um": _dense(keys[16], (E, VM)),
            "Us": _dense(keys[17], (E, VS))}
    return {"tf": tf, "wenc": wenc, "wdec": wdec}


# ----------------------------- pure-JAX reference ----------------------------
def _reference_forward(params, prefix_ids, spm_ids, suffix_ids,
                       context_prefix_ids, context_spm_ids, context_suffix_ids,
                       output_prefix_ids, output_spm_ids, output_suffix_ids,
                       attn_mask):
    tf, wenc, wdec = params["tf"], params["wenc"], params["wdec"]

    def word_encode(p, m, s):
        pooled = (jnp.take(wenc["Ep"], p, axis=0).mean(axis=1)
                  + jnp.take(wenc["Em"], m, axis=0).mean(axis=1)
                  + jnp.take(wenc["Es"], s, axis=0).mean(axis=1))
        return pooled @ wenc["W_proj"]

    def rmsnorm(x, wn):
        return x * jax.lax.rsqrt(jnp.mean(x * x, -1, keepdims=True) + EPS) * wn

    def rope(x):
        n = x.shape[0]
        inv = 1.0 / (10000.0 ** (jnp.arange(HALF, dtype=jnp.float32) / HALF))
        ang = jnp.arange(n, dtype=jnp.float32)[:, None] * inv[None, :]
        c, s = jnp.cos(ang), jnp.sin(ang)
        x1, x2 = x[:, :HALF], x[:, HALF:]
        return jnp.concatenate([x1 * c - x2 * s, x2 * c + x1 * s], axis=-1)

    def attend(q, k, v, bias, use_rope):
        outs = []
        for h in range(H):
            qh = q[:, h * DQ:(h + 1) * DQ]
            kh = k[:, h * DQ:(h + 1) * DQ]
            vh = v[:, h * DV:(h + 1) * DV]
            if use_rope:
                qh, kh = rope(qh), rope(kh)
            s = qh @ kh.T * SCALE
            if bias is not None:
                s = s + bias
            outs.append(jax.nn.softmax(s, axis=-1) @ vh)
        return jnp.concatenate(outs, axis=-1)

    def mhsa(x, a, bias, use_rope):
        return attend(x @ a["wq"], x @ a["wk"], x @ a["wv"], bias, use_rope) @ a["wo"]

    def cross(x, ctx, a):
        return attend(x @ a["wq"], ctx @ a["wk"], ctx @ a["wv"], None, False) @ a["wo"]

    def ffn(x, lyr):
        a = x @ lyr["ffn_w1"]
        g = x @ lyr["ffn_w2"]
        return (a * jax.nn.sigmoid(a) * g) @ lyr["ffn_w3"]

    bias = jnp.where(attn_mask, 0.0, NEG_INF).astype(jnp.float32)

    x = word_encode(context_prefix_ids, context_spm_ids, context_suffix_ids)
    for lyr in tf["enc_layers"]:
        x = x + mhsa(rmsnorm(x, lyr["norm1"]), lyr["attn"], None, True)
        x = x + ffn(rmsnorm(x, lyr["norm2"]), lyr)
    ctx = rmsnorm(x, tf["encoder_norm"])

    x = word_encode(prefix_ids, spm_ids, suffix_ids)
    for lyr in tf["dec_layers"]:
        x = x + mhsa(rmsnorm(x, lyr["norm1"]), lyr["self_attn"], bias, True)
        x = x + cross(rmsnorm(x, lyr["norm2"]), ctx, lyr["cross_attn"])
        x = x + ffn(rmsnorm(x, lyr["norm3"]), lyr)
    dec = rmsnorm(x, tf["decoder_norm"])

    gathered = jnp.concatenate([jnp.take(wdec["Dp"], output_prefix_ids, axis=0),
                                jnp.take(wdec["Dm"], output_spm_ids, axis=0),
                                jnp.take(wdec["Ds"], output_suffix_ids, axis=0)],
                               axis=1)
    hcat = gathered + dec[:, None, :]
    op = output_prefix_ids.shape[1]
    om = output_spm_ids.shape[1]
    return (hcat[:, :op] @ wdec["Up"],
            hcat[:, op:op + om] @ wdec["Um"],
            hcat[:, op + om:] @ wdec["Us"])


# ----------------------------- main -------------------------------------------
if __name__ == "__main__":
    key = jax.random.PRNGKey(0)
    pkey, dkey = jax.random.split(key)
    params = init_params(pkey)

    L, S = 8, 8
    Lp, Lm, Ls = 3, 4, 3
    Sp, Sm, Ss = 3, 4, 3
    Op, Om, Os = 5, 6, 5

    layout, n_rows = _build_layout(rope_rows=max(L, S))
    slab = pack_params(params, layout, n_rows, rope_rows=max(L, S))

    ks = jax.random.split(dkey, 9)
    prefix_ids = jax.random.randint(ks[0], (L, Lp), 0, VP)
    spm_ids = jax.random.randint(ks[1], (L, Lm), 0, VM)
    suffix_ids = jax.random.randint(ks[2], (L, Ls), 0, VS)
    context_prefix_ids = jax.random.randint(ks[3], (S, Sp), 0, VP)
    context_spm_ids = jax.random.randint(ks[4], (S, Sm), 0, VM)
    context_suffix_ids = jax.random.randint(ks[5], (S, Ss), 0, VS)
    output_prefix_ids = jax.random.randint(ks[6], (L, Op), 0, VP)
    output_spm_ids = jax.random.randint(ks[7], (L, Om), 0, VM)
    output_suffix_ids = jax.random.randint(ks[8], (L, Os), 0, VS)
    attn_mask = jnp.tril(jnp.ones((L, L), dtype=jnp.bool_))   # causal (i >= j)

    fwd = jax.jit(make_forward(layout))
    lp, lm, ls = fwd(slab, prefix_ids, spm_ids, suffix_ids,
                     context_prefix_ids, context_spm_ids, context_suffix_ids,
                     output_prefix_ids, output_spm_ids, output_suffix_ids,
                     attn_mask)
    jax.block_until_ready((lp, lm, ls))

    assert lp.shape == (L, Op, VP)
    assert lm.shape == (L, Om, VM)
    assert ls.shape == (L, Os, VS)

    rp, rm, rs = _reference_forward(
        params, prefix_ids, spm_ids, suffix_ids,
        context_prefix_ids, context_spm_ids, context_suffix_ids,
        output_prefix_ids, output_spm_ids, output_suffix_ids, attn_mask)
    for a, b in ((lp, rp), (lm, rm), (ls, rs)):
        assert bool(jnp.isfinite(a).all())
        assert bool(jnp.allclose(a, b, atol=2e-3, rtol=2e-2)), \
            float(jnp.abs(a - b).max())

    print("KERNEL_OK")
</pallas_src>

<mosaic_0001>
module attributes {stable_mosaic.version = 11 : i64} {
  func.func @kernel(%arg0: memref<288x1xi32, #tpu.memory_space<vmem>>, %arg1: memref<8x8xf32, #tpu.memory_space<vmem>>, %arg2: memref<1712x128xf32, #tpu.memory_space<vmem>>, %arg3: memref<128x128xf32, #tpu.memory_space<vmem>>) attributes {dimension_semantics = [], scalar_prefetch = 0 : i64, scratch_operands = 0 : i64, tpu.core_type = #tpu.core_type<tc>} {
    %0 = tpu.iota {dimensions = array<i32: 0>} : vector<32x32xi32>
    %1 = tpu.iota {dimensions = array<i32: 1>} : vector<32x32xi32>
    %c0_i32 = arith.constant 0 : i32
    %2 = vector.broadcast %c0_i32 : i32 to vector<32x32xi32>
    %3 = arith.cmpi sge, %0, %2 : vector<32x32xi32>
    %c8_i32 = arith.constant 8 : i32
    %4 = vector.broadcast %c8_i32 : i32 to vector<32x32xi32>
    %5 = arith.cmpi slt, %0, %4 : vector<32x32xi32>
    %6 = arith.andi %3, %5 : vector<32x32xi1>
    %c0_i32_0 = arith.constant 0 : i32
    %7 = vector.broadcast %c0_i32_0 : i32 to vector<32x32xi32>
    %8 = arith.cmpi sge, %1, %7 : vector<32x32xi32>
    %9 = arith.andi %6, %8 : vector<32x32xi1>
    %c8_i32_1 = arith.constant 8 : i32
    %10 = vector.broadcast %c8_i32_1 : i32 to vector<32x32xi32>
    %11 = arith.cmpi slt, %1, %10 : vector<32x32xi32>
    %12 = arith.andi %9, %11 : vector<32x32xi1>
    %c8_i32_2 = arith.constant 8 : i32
    %13 = vector.broadcast %c8_i32_2 : i32 to vector<32x32xi32>
    %14 = arith.cmpi sge, %0, %13 : vector<32x32xi32>
    %c16_i32 = arith.constant 16 : i32
    %15 = vector.broadcast %c16_i32 : i32 to vector<32x32xi32>
    %16 = arith.cmpi slt, %0, %15 : vector<32x32xi32>
    %17 = arith.andi %14, %16 : vector<32x32xi1>
    %c8_i32_3 = arith.constant 8 : i32
    %18 = vector.broadcast %c8_i32_3 : i32 to vector<32x32xi32>
    %19 = arith.cmpi sge, %1, %18 : vector<32x32xi32>
    %20 = arith.andi %17, %19 : vector<32x32xi1>
    %c16_i32_4 = arith.constant 16 : i32
    %21 = vector.broadcast %c16_i32_4 : i32 to vector<32x32xi32>
    %22 = arith.cmpi slt, %1, %21 : vector<32x32xi32>
    %23 = arith.andi %20, %22 : vector<32x32xi1>
    %24 = arith.ori %12, %23 : vector<32x32xi1>
    %c16_i32_5 = arith.constant 16 : i32
    %25 = vector.broadcast %c16_i32_5 : i32 to vector<32x32xi32>
    %26 = arith.cmpi sge, %0, %25 : vector<32x32xi32>
    %c24_i32 = arith.constant 24 : i32
    %27 = vector.broadcast %c24_i32 : i32 to vector<32x32xi32>
    %28 = arith.cmpi slt, %0, %27 : vector<32x32xi32>
    %29 = arith.andi %26, %28 : vector<32x32xi1>
    %c16_i32_6 = arith.constant 16 : i32
    %30 = vector.broadcast %c16_i32_6 : i32 to vector<32x32xi32>
    %31 = arith.cmpi sge, %1, %30 : vector<32x32xi32>
    %32 = arith.andi %29, %31 : vector<32x32xi1>
    %c24_i32_7 = arith.constant 24 : i32
    %33 = vector.broadcast %c24_i32_7 : i32 to vector<32x32xi32>
    %34 = arith.cmpi slt, %1, %33 : vector<32x32xi32>
    %35 = arith.andi %32, %34 : vector<32x32xi1>
    %36 = arith.ori %24, %35 : vector<32x32xi1>
    %c24_i32_8 = arith.constant 24 : i32
    %37 = vector.broadcast %c24_i32_8 : i32 to vector<32x32xi32>
    %38 = arith.cmpi sge, %0, %37 : vector<32x32xi32>
    %c32_i32 = arith.constant 32 : i32
    %39 = vector.broadcast %c32_i32 : i32 to vector<32x32xi32>
    %40 = arith.cmpi slt, %0, %39 : vector<32x32xi32>
    %41 = arith.andi %38, %40 : vector<32x32xi1>
    %c24_i32_9 = arith.constant 24 : i32
    %42 = vector.broadcast %c24_i32_9 : i32 to vector<32x32xi32>
    %43 = arith.cmpi sge, %1, %42 : vector<32x32xi32>
    %44 = arith.andi %41, %43 : vector<32x32xi1>
    %c32_i32_10 = arith.constant 32 : i32
    %45 = vector.broadcast %c32_i32_10 : i32 to vector<32x32xi32>
    %46 = arith.cmpi slt, %1, %45 : vector<32x32xi32>
    %47 = arith.andi %44, %46 : vector<32x32xi1>
    %48 = arith.ori %36, %47 : vector<32x32xi1>
    %49 = tpu.iota {dimensions = array<i32: 0>} : vector<32x32xi32>
    %50 = tpu.iota {dimensions = array<i32: 1>} : vector<32x32xi32>
    %c4_i32 = arith.constant 4 : i32
    %51 = vector.broadcast %c4_i32 : i32 to vector<32x32xi32>
    %52 = arith.addi %49, %51 : vector<32x32xi32>
    %53 = arith.cmpi eq, %50, %52 : vector<32x32xi32>
    %c4_i32_11 = arith.constant 4 : i32
    %54 = vector.broadcast %c4_i32_11 : i32 to vector<32x32xi32>
    %55 = arith.addi %50, %54 : vector<32x32xi32>
    %56 = arith.cmpi eq, %49, %55 : vector<32x32xi32>
    %57 = arith.ori %53, %56 : vector<32x32xi1>
    %58 = arith.andi %48, %57 : vector<32x32xi1>
    %cst = arith.constant 1.000000e+00 : f32
    %cst_12 = arith.constant 0.000000e+00 : f32
    %59 = vector.broadcast %cst : f32 to vector<32x32xf32>
    %60 = vector.broadcast %cst_12 : f32 to vector<32x32xf32>
    %61 = arith.select %58, %59, %60 : vector<32x32xi1>, vector<32x32xf32>
    %c336 = arith.constant 336 : index
    %c0 = arith.constant 0 : index
    %62 = vector.load %arg2[%c336, %c0] : memref<1712x128xf32, #tpu.memory_space<vmem>>, vector<8x32xf32>
    %c344 = arith.constant 344 : index
    %c0_13 = arith.constant 0 : index
    %63 = vector.load %arg2[%c344, %c0_13] : memref<1712x128xf32, #tpu.memory_space<vmem>>, vector<8x32xf32>
    %c0_14 = arith.constant 0 : index
    %c0_15 = arith.constant 0 : index
    %64 = vector.load %arg2[%c0_14, %c0_15] : memref<1712x128xf32, #tpu.memory_space<vmem>>, vector<128x32xf32>
    %c288 = arith.constant 288 : index
    %c0_16 = arith.constant 0 : index
    %65 = vector.load %arg2[%c288, %c0_16] : memref<1712x128xf32, #tpu.memory_space<vmem>>, vector<32x32xf32>
    %c0_17 = arith.constant 0 : index
    %c0_18 = arith.constant 0 : index
    %66 = vector.load %arg0[%c0_17, %c0_18] : memref<288x1xi32, #tpu.memory_space<vmem>>, vector<80x1xi32>
    %c80 = arith.constant 80 : index
    %c0_19 = arith.constant 0 : index
    %67 = vector.load %arg0[%c80, %c0_19] : memref<288x1xi32, #tpu.memory_space<vmem>>, vector<80x1xi32>
    %c160 = arith.constant 160 : index
    %c0_20 = arith.constant 0 : index
    %68 = vector.load %arg0[%c160, %c0_20] : memref<288x1xi32, #tpu.memory_space<vmem>>, vector<128x1xi32>
    %69 = tpu.iota {dimensions = array<i32: 1>} : vector<80x128xi32>
    %70 = vector.broadcast %66 : vector<80x1xi32> to vector<80x128xi32>
    %71 = arith.cmpi eq, %70, %69 : vector<80x128xi32>
    %cst_21 = arith.constant 1.000000e+00 : f32
    %cst_22 = arith.constant 0.000000e+00 : f32
    %72 = vector.broadcast %cst_21 : f32 to vector<80x128xf32>
    %73 = vector.broadcast %cst_22 : f32 to vector<80x128xf32>
    %74 = arith.select %71, %72, %73 : vector<80x128xi1>, vector<80x128xf32>
    %cst_23 = arith.constant dense<0.000000e+00> : vector<80x32xf32>
    %75 = tpu.matmul %74, %64, %cst_23 {dimension_numbers = #tpu.dot_dimension_numbers<[1], [0], [0], [1], [0, 0, 1, 1], [], []>} : vector<80x128xf32>, vector<128x32xf32>, vector<80x32xf32> -> vector<80x32xf32>
    %76 = tpu.iota {dimensions = array<i32: 0>} : vector<8x80xi32>
    %77 = tpu.iota {dimensions = array<i32: 1>} : vector<8x80xi32>
    %c10_i32 = arith.constant 10 : i32
    %78 = vector.broadcast %c10_i32 : i32 to vector<8x80xi32>
    %79 = arith.muli %76, %78 : vector<8x80xi32>
    %80 = arith.subi %77, %79 : vector<8x80xi32>
    %c3_i32 = arith.constant 3 : i32
    %81 = vector.broadcast %c3_i32 : i32 to vector<8x80xi32>
    %82 = arith.cmpi slt, %80, %81 : vector<8x80xi32>
    %c7_i32 = arith.constant 7 : i32
    %83 = vector.broadcast %c7_i32 : i32 to vector<8x80xi32>
    %84 = arith.cmpi slt, %80, %83 : vector<8x80xi32>
    %cst_24 = arith.constant 2.500000e-01 : f32
    %cst_25 = arith.constant 0.333333343 : f32
    %85 = vector.broadcast %cst_24 : f32 to vector<8x80xf32>
    %86 = vector.broadcast %cst_25 : f32 to vector<8x80xf32>
    %87 = arith.select %84, %85, %86 : vector<8x80xi1>, vector<8x80xf32>
    %cst_26 = arith.constant 0.333333343 : f32
    %88 = vector.broadcast %cst_26 : f32 to vector<8x80xf32>
    %89 = arith.select %82, %88, %87 : vector<8x80xi1>, vector<8x80xf32>
    %90 = arith.cmpi sge, %77, %79 : vector<8x80xi32>
    %c10_i32_27 = arith.constant 10 : i32
    %91 = vector.broadcast %c10_i32_27 : i32 to vector<8x80xi32>
    %92 = arith.addi %79, %91 : vector<8x80xi32>
    %93 = arith.cmpi slt, %77, %92 : vector<8x80xi32>
    %94 = arith.andi %90, %93 : vector<8x80xi1>
    %cst_28 = arith.constant 0.000000e+00 : f32
    %95 = vector.broadcast %cst_28 : f32 to vector<8x80xf32>
    %96 = arith.select %94, %89, %95 : vector<8x80xi1>, vector<8x80xf32>
    %cst_29 = arith.constant dense<0.000000e+00> : vector<8x32xf32>
    %97 = tpu.matmul %96, %75, %cst_29 {dimension_numbers = #tpu.dot_dimension_numbers<[1], [0], [0], [1], [0, 0, 1, 1], [], []>} : vector<8x80xf32>, vector<80x32xf32>, vector<8x32xf32> -> vector<8x32xf32>
    %cst_30 = arith.constant dense<0.000000e+00> : vector<8x32xf32>
    %98 = tpu.matmul %97, %65, %cst_30 {dimension_numbers = #tpu.dot_dimension_numbers<[1], [0], [0], [1], [0, 0, 1, 1], [], []>} : vector<8x32xf32>, vector<32x32xf32>, vector<8x32xf32> -> vector<8x32xf32>
    %c352 = arith.constant 352 : index
    %c0_31 = arith.constant 0 : index
    %99 = vector.load %arg2[%c352, %c0_31] : memref<1712x128xf32, #tpu.memory_space<vmem>>, vector<1x32xf32>
    %100 = arith.mulf %98, %98 : vector<8x32xf32>
    %cst_32 = arith.constant dense<0.000000e+00> : vector<8xf32>
    %101 = vector.multi_reduction <add>, %100, %cst_32 [1] : vector<8x32xf32> to vector<8xf32>
    %102 = vector.shape_cast %101 : vector<8xf32> to vector<8x1xf32>
    %cst_33 = arith.constant 3.200000e+01 : f32
    %103 = vector.broadcast %cst_33 : f32 to vector<8x1xf32>
    %104 = arith.divf %102, %103 : vector<8x1xf32>
    %cst_34 = arith.constant 9.99999997E-7 : f32
    %105 = vector.broadcast %cst_34 : f32 to vector<8x1xf32>
    %106 = arith.addf %104, %105 : vector<8x1xf32>
    %107 = math.rsqrt %106 : vector<8x1xf32>
    %108 = vector.broadcast %107 : vector<8x1xf32> to vector<8x32xf32>
    %109 = arith.mulf %98, %108 : vector<8x32xf32>
    %110 = vector.broadcast %99 : vector<1x32xf32> to vector<8x32xf32>
    %111 = arith.mulf %109, %110 : vector<8x32xf32>
    %c368 = arith.constant 368 : index
    %c0_35 = arith.constant 0 : index
    %112 = vector.load %arg2[%c368, %c0_35] : memref<1712x128xf32, #tpu.memory_space<vmem>>, vector<32x32xf32>
    %c400 = arith.constant 400 : index
    %c0_36 = arith.constant 0 : index
    %113 = vector.load %arg2[%c400, %c0_36] : memref<1712x128xf32, #tpu.memory_space<vmem>>, vector<32x32xf32>
    %c432 = arith.constant 432 : index
    %c0_37 = arith.constant 0 : index
    %114 = vector.load %arg2[%c432, %c0_37] : memref<1712x128xf32, #tpu.memory_space<vmem>>, vector<32x32xf32>
    %c464 = arith.constant 464 : index
    %c0_38 = arith.constant 0 : index
    %115 = vector.load %arg2[%c464, %c0_38] : memref<1712x128xf32, #tpu.memory_space<vmem>>, vector<32x32xf32>
    %cst_39 = arith.constant dense<0.000000e+00> : vector<8x32xf32>
    %116 = tpu.matmul %111, %112, %cst_39 {dimension_numbers = #tpu.dot_dimension_numbers<[1], [0], [0], [1], [0, 0, 1, 1], [], []>} : vector<8x32xf32>, vector<32x32xf32>, vector<8x32xf32> -> vector<8x32xf32>
    %117 = arith.mulf %116, %62 : vector<8x32xf32>
    %cst_40 = arith.constant dense<0.000000e+00> : vector<8x32xf32>
    %118 = tpu.matmul %116, %61, %cst_40 {dimension_numbers = #tpu.dot_dimension_numbers<[1], [0], [0], [1], [0, 0, 1, 1], [], []>} : vector<8x32xf32>, vector<32x32xf32>, vector<8x32xf32> -> vector<8x32xf32>
    %119 = arith.mulf %118, %63 : vector<8x32xf32>
    %120 = arith.addf %117, %119 : vector<8x32xf32>
    %cst_41 = arith.constant dense<0.000000e+00> : vector<8x32xf32>
    %121 = tpu.matmul %111, %113, %cst_41 {dimension_numbers = #tpu.dot_dimension_numbers<[1], [0], [0], [1], [0, 0, 1, 1], [], []>} : vector<8x32xf32>, vector<32x32xf32>, vector<8x32xf32> -> vector<8x32xf32>
    %122 = arith.mulf %121, %62 : vector<8x32xf32>
    %cst_42 = arith.constant dense<0.000000e+00> : vector<8x32xf32>
    %123 = tpu.matmul %121, %61, %cst_42 {dimension_numbers = #tpu.dot_dimension_numbers<[1], [0], [0], [1], [0, 0, 1, 1], [], []>} : vector<8x32xf32>, vector<32x32xf32>, vector<8x32xf32> -> vector<8x32xf32>
    %124 = arith.mulf %123, %63 : vector<8x32xf32>
    %125 = arith.addf %122, %124 : vector<8x32xf32>
    %cst_43 = arith.constant dense<0.000000e+00> : vector<8x32xf32>
    %126 = tpu.matmul %111, %114, %cst_43 {dimension_numbers = #tpu.dot_dimension_numbers<[1], [0], [0], [1], [0, 0, 1, 1], [], []>} : vector<8x32xf32>, vector<32x32xf32>, vector<8x32xf32> -> vector<8x32xf32>
    %127 = tpu.iota {dimensions = array<i32: 0>} : vector<32x32xi32>
    %128 = tpu.iota {dimensions = array<i32: 1>} : vector<32x32xi32>
    %c0_i32_44 = arith.constant 0 : i32
    %129 = vector.broadcast %c0_i32_44 : i32 to vector<32x32xi32>
    %130 = arith.cmpi sge, %127, %129 : vector<32x32xi32>
    %c8_i32_45 = arith.constant 8 : i32
    %131 = vector.broadcast %c8_i32_45 : i32 to vector<32x32xi32>
    %132 = arith.cmpi slt, %127, %131 : vector<32x32xi32>
    %133 = arith.andi %130, %132 : vector<32x32xi1>
    %c0_i32_46 = arith.constant 0 : i32
    %134 = vector.broadcast %c0_i32_46 : i32 to vector<32x32xi32>
    %135 = arith.cmpi sge, %128, %134 : vector<32x32xi32>
    %136 = arith.andi %133, %135 : vector<32x32xi1>
    %c8_i32_47 = arith.constant 8 : i32
    %137 = vector.broadcast %c8_i32_47 : i32 to vector<32x32xi32>
    %138 = arith.cmpi slt, %128, %137 : vector<32x32xi32>
    %139 = arith.andi %136, %138 : vector<32x32xi1>
    %c8_i32_48 = arith.constant 8 : i32
    %140 = vector.broadcast %c8_i32_48 : i32 to vector<32x32xi32>
    %141 = arith.cmpi sge, %127, %140 : vector<32x32xi32>
    %c16_i32_49 = arith.constant 16 : i32
    %142 = vector.broadcast %c16_i32_49 : i32 to vector<32x32xi32>
    %143 = arith.cmpi slt, %127, %142 : vector<32x32xi32>
    %144 = arith.andi %141, %143 : vector<32x32xi1>
    %c8_i32_50 = arith.constant 8 : i32
    %145 = vector.broadcast %c8_i32_50 : i32 to vector<32x32xi32>
    %146 = arith.cmpi sge, %128, %145 : vector<32x32xi32>
    %147 = arith.andi %144, %146 : vector<32x32xi1>
    %c16_i32_51 = arith.constant 16 : i32
    %148 = vector.broadcast %c16_i32_51 : i32 to vector<32x32xi32>
    %149 = arith.cmpi slt, %128, %148 : vector<32x32xi32>
    %150 = arith.andi %147, %149 : vector<32x32xi1>
    %151 = arith.ori %139, %150 : vector<32x32xi1>
    %c16_i32_52 = arith.constant 16 : i32
    %152 = vector.broadcast %c16_i32_52 : i32 to vector<32x32xi32>
    %153 = arith.cmpi sge, %127, %152 : vector<32x32xi32>
    %c24_i32_53 = arith.constant 24 : i32
    %154 = vector.broadcast %c24_i32_53 : i32 to vector<32x32xi32>
    %155 = arith.cmpi slt, %127, %154 : vector<32x32xi32>
    %156 = arith.andi %153, %155 : vector<32x32xi1>
    %c16_i32_54 = arith.constant 16 : i32
    %157 = vector.broadcast %c16_i32_54 : i32 to vector<32x32xi32>
    %158 = arith.cmpi sge, %128, %157 : vector<32x32xi32>
    %159 = arith.andi %156, %158 : vector<32x32xi1>
    %c24_i32_55 = arith.constant 24 : i32
    %160 = vector.broadcast %c24_i32_55 : i32 to vector<32x32xi32>
    %161 = arith.cmpi slt, %128, %160 : vector<32x32xi32>
    %162 = arith.andi %159, %161 : vector<32x32xi1>
    %163 = arith.ori %151, %162 : vector<32x32xi1>
    %c24_i32_56 = arith.constant 24 : i32
    %164 = vector.broadcast %c24_i32_56 : i32 to vector<32x32xi32>
    %165 = arith.cmpi sge, %127, %164 : vector<32x32xi32>
    %c32_i32_57 = arith.constant 32 : i32
    %166 = vector.broadcast %c32_i32_57 : i32 to vector<32x32xi32>
    %167 = arith.cmpi slt, %127, %166 : vector<32x32xi32>
    %168 = arith.andi %165, %167 : vector<32x32xi1>
    %c24_i32_58 = arith.constant 24 : i32
    %169 = vector.broadcast %c24_i32_58 : i32 to vector<32x32xi32>
    %170 = arith.cmpi sge, %128, %169 : vector<32x32xi32>
    %171 = arith.andi %168, %170 : vector<32x32xi1>
    %c32_i32_59 = arith.constant 32 : i32
    %172 = vector.broadcast %c32_i32_59 : i32 to vector<32x32xi32>
    %173 = arith.cmpi slt, %128, %172 : vector<32x32xi32>
    %174 = arith.andi %171, %173 : vector<32x32xi1>
    %175 = arith.ori %163, %174 : vector<32x32xi1>
    %cst_60 = arith.constant 1.000000e+00 : f32
    %cst_61 = arith.constant 0.000000e+00 : f32
    %176 = vector.broadcast %cst_60 : f32 to vector<32x32xf32>
    %177 = vector.broadcast %cst_61 : f32 to vector<32x32xf32>
    %178 = arith.select %175, %176, %177 : vector<32x32xi1>, vector<32x32xf32>
    %179 = tpu.iota {dimensions = array<i32: 0>} : vector<32x32xi32>
    %180 = tpu.iota {dimensions = array<i32: 1>} : vector<32x32xi32>
    %c0_i32_62 = arith.constant 0 : i32
    %181 = vector.broadcast %c0_i32_62 : i32 to vector<32x32xi32>
    %182 = arith.cmpi sge, %179, %181 : vector<32x32xi32>
    %c8_i32_63 = arith.constant 8 : i32
    %183 = vector.broadcast %c8_i32_63 : i32 to vector<32x32xi32>
    %184 = arith.cmpi slt, %179, %183 : vector<32x32xi32>
    %185 = arith.andi %182, %184 : vector<32x32xi1>
    %c0_i32_64 = arith.constant 0 : i32
    %186 = vector.broadcast %c0_i32_64 : i32 to vector<32x32xi32>
    %187 = arith.cmpi sge, %180, %186 : vector<32x32xi32>
    %188 = arith.andi %185, %187 : vector<32x32xi1>
    %c8_i32_65 = arith.constant 8 : i32
    %189 = vector.broadcast %c8_i32_65 : i32 to vector<32x32xi32>
    %190 = arith.cmpi slt, %180, %189 : vector<32x32xi32>
    %191 = arith.andi %188, %190 : vector<32x32xi1>
    %c8_i32_66 = arith.constant 8 : i32
    %192 = vector.broadcast %c8_i32_66 : i32 to vector<32x32xi32>
    %193 = arith.cmpi sge, %179, %192 : vector<32x32xi32>
    %c16_i32_67 = arith.constant 16 : i32
    %194 = vector.broadcast %c16_i32_67 : i32 to vector<32x32xi32>
    %195 = arith.cmpi slt, %179, %194 : vector<32x32xi32>
    %196 = arith.andi %193, %195 : vector<32x32xi1>
    %c8_i32_68 = arith.constant 8 : i32
    %197 = vector.broadcast %c8_i32_68 : i32 to vector<32x32xi32>
    %198 = arith.cmpi sge, %180, %197 : vector<32x32xi32>
    %199 = arith.andi %196, %198 : vector<32x32xi1>
    %c16_i32_69 = arith.constant 16 : i32
    %200 = vector.broadcast %c16_i32_69 : i32 to vector<32x32xi32>
    %201 = arith.cmpi slt, %180, %200 : vector<32x32xi32>
    %202 = arith.andi %199, %201 : vector<32x32xi1>
    %203 = arith.ori %191, %202 : vector<32x32xi1>
    %c16_i32_70 = arith.constant 16 : i32
    %204 = vector.broadcast %c16_i32_70 : i32 to vector<32x32xi32>
    %205 = arith.cmpi sge, %179, %204 : vector<32x32xi32>
    %c24_i32_71 = arith.constant 24 : i32
    %206 = vector.broadcast %c24_i32_71 : i32 to vector<32x32xi32>
    %207 = arith.cmpi slt, %179, %206 : vector<32x32xi32>
    %208 = arith.andi %205, %207 : vector<32x32xi1>
    %c16_i32_72 = arith.constant 16 : i32
    %209 = vector.broadcast %c16_i32_72 : i32 to vector<32x32xi32>
    %210 = arith.cmpi sge, %180, %209 : vector<32x32xi32>
    %211 = arith.andi %208, %210 : vector<32x32xi1>
    %c24_i32_73 = arith.constant 24 : i32
    %212 = vector.broadcast %c24_i32_73 : i32 to vector<32x32xi32>
    %213 = arith.cmpi slt, %180, %212 : vector<32x32xi32>
    %214 = arith.andi %211, %213 : vector<32x32xi1>
    %215 = arith.ori %203, %214 : vector<32x32xi1>
    %c24_i32_74 = arith.constant 24 : i32
    %216 = vector.broadcast %c24_i32_74 : i32 to vector<32x32xi32>
    %217 = arith.cmpi sge, %179, %216 : vector<32x32xi32>
    %c32_i32_75 = arith.constant 32 : i32
    %218 = vector.broadcast %c32_i32_75 : i32 to vector<32x32xi32>
    %219 = arith.cmpi slt, %179, %218 : vector<32x32xi32>
    %220 = arith.andi %217, %219 : vector<32x32xi1>
    %c24_i32_76 = arith.constant 24 : i32
    %221 = vector.broadcast %c24_i32_76 : i32 to vector<32x32xi32>
    %222 = arith.cmpi sge, %180, %221 : vector<32x32xi32>
    %223 = arith.andi %220, %222 : vector<32x32xi1>
    %c32_i32_77 = arith.constant 32 : i32
    %224 = vector.broadcast %c32_i32_77 : i32 to vector<32x32xi32>
    %225 = arith.cmpi slt, %180, %224 : vector<32x32xi32>
    %226 = arith.andi %223, %225 : vector<32x32xi1>
    %227 = arith.ori %215, %226 : vector<32x32xi1>
    %cst_78 = arith.constant 1.000000e+00 : f32
    %cst_79 = arith.constant 0.000000e+00 : f32
    %228 = vector.broadcast %cst_78 : f32 to vector<32x32xf32>
    %229 = vector.broadcast %cst_79 : f32 to vector<32x32xf32>
    %230 = arith.select %227, %228, %229 : vector<32x32xi1>, vector<32x32xf32>
    %231 = tpu.iota {dimensions = array<i32: 0>} : vector<32x32xi32>
    %232 = tpu.iota {dimensions = array<i32: 1>} : vector<32x32xi32>
    %c0_i32_80 = arith.constant 0 : i32
    %233 = vector.broadcast %c0_i32_80 : i32 to vector<32x32xi32>
    %234 = arith.cmpi sge, %231, %233 : vector<32x32xi32>
    %c8_i32_81 = arith.constant 8 : i32
    %235 = vector.broadcast %c8_i32_81 : i32 to vector<32x32xi32>
    %236 = arith.cmpi slt, %231, %235 : vector<32x32xi32>
    %237 = arith.andi %234, %236 : vector<32x32xi1>
    %c0_i32_82 = arith.constant 0 : i32
    %238 = vector.broadcast %c0_i32_82 : i32 to vector<32x32xi32>
    %239 = arith.cmpi sge, %232, %238 : vector<32x32xi32>
    %240 = arith.andi %237, %239 : vector<32x32xi1>
    %c8_i32_83 = arith.constant 8 : i32
    %241 = vector.broadcast %c8_i32_83 : i32 to vector<32x32xi32>
    %242 = arith.cmpi slt, %232, %241 : vector<32x32xi32>
    %243 = arith.andi %240, %242 : vector<32x32xi1>
    %c8_i32_84 = arith.constant 8 : i32
    %244 = vector.broadcast %c8_i32_84 : i32 to vector<32x32xi32>
    %245 = arith.cmpi sge, %231, %244 : vector<32x32xi32>
    %c16_i32_85 = arith.constant 16 : i32
    %246 = vector.broadcast %c16_i32_85 : i32 to vector<32x32xi32>
    %247 = arith.cmpi slt, %231, %246 : vector<32x32xi32>
    %248 = arith.andi %245, %247 : vector<32x32xi1>
    %c8_i32_86 = arith.constant 8 : i32
    %249 = vector.broadcast %c8_i32_86 : i32 to vector<32x32xi32>
    %250 = arith.cmpi sge, %232, %249 : vector<32x32xi32>
    %251 = arith.andi %248, %250 : vector<32x32xi1>
    %c16_i32_87 = arith.constant 16 : i32
    %252 = vector.broadcast %c16_i32_87 : i32 to vector<32x32xi32>
    %253 = arith.cmpi slt, %232, %252 : vector<32x32xi32>
    %254 = arith.andi %251, %253 : vector<32x32xi1>
    %255 = arith.ori %243, %254 : vector<32x32xi1>
    %c16_i32_88 = arith.constant 16 : i32
    %256 = vector.broadcast %c16_i32_88 : i32 to vector<32x32xi32>
    %257 = arith.cmpi sge, %231, %256 : vector<32x32xi32>
    %c24_i32_89 = arith.constant 24 : i32
    %258 = vector.broadcast %c24_i32_89 : i32 to vector<32x32xi32>
    %259 = arith.cmpi slt, %231, %258 : vector<32x32xi32>
    %260 = arith.andi %257, %259 : vector<32x32xi1>
    %c16_i32_90 = arith.constant 16 : i32
    %261 = vector.broadcast %c16_i32_90 : i32 to vector<32x32xi32>
    %262 = arith.cmpi sge, %232, %261 : vector<32x32xi32>
    %263 = arith.andi %260, %262 : vector<32x32xi1>
    %c24_i32_91 = arith.constant 24 : i32
    %264 = vector.broadcast %c24_i32_91 : i32 to vector<32x32xi32>
    %265 = arith.cmpi slt, %232, %264 : vector<32x32xi32>
    %266 = arith.andi %263, %265 : vector<32x32xi1>
    %267 = arith.ori %255, %266 : vector<32x32xi1>
    %c24_i32_92 = arith.constant 24 : i32
    %268 = vector.broadcast %c24_i32_92 : i32 to vector<32x32xi32>
    %269 = arith.cmpi sge, %231, %268 : vector<32x32xi32>
    %c32_i32_93 = arith.constant 32 : i32
    %270 = vector.broadcast %c32_i32_93 : i32 to vector<32x32xi32>
    %271 = arith.cmpi slt, %231, %270 : vector<32x32xi32>
    %272 = arith.andi %269, %271 : vector<32x32xi1>
    %c24_i32_94 = arith.constant 24 : i32
    %273 = vector.broadcast %c24_i32_94 : i32 to vector<32x32xi32>
    %274 = arith.cmpi sge, %232, %273 : vector<32x32xi32>
    %275 = arith.andi %272, %274 : vector<32x32xi1>
    %c32_i32_95 = arith.constant 32 : i32
    %276 = vector.broadcast %c32_i32_95 : i32 to vector<32x32xi32>
    %277 = arith.cmpi slt, %232, %276 : vector<32x32xi32>
    %278 = arith.andi %275, %277 : vector<32x32xi1>
    %279 = arith.ori %267, %278 : vector<32x32xi1>
    %cst_96 = arith.constant 1.000000e+00 : f32
    %cst_97 = arith.constant 0.000000e+00 : f32
    %280 = vector.broadcast %cst_96 : f32 to vector<32x32xf32>
    %281 = vector.broadcast %cst_97 : f32 to vector<32x32xf32>
    %282 = arith.select %279, %280, %281 : vector<32x32xi1>, vector<32x32xf32>
    %283 = tpu.iota {dimensions = array<i32: 0>} : vector<8x32xi32>
    %284 = tpu.iota {dimensions = array<i32: 1>} : vector<8x32xi32>
    %c0_i32_98 = arith.constant 0 : i32
    %285 = vector.broadcast %c0_i32_98 : i32 to vector<8x32xi32>
    %286 = arith.addi %285, %283 : vector<8x32xi32>
    %287 = arith.cmpi eq, %284, %286 : vector<8x32xi32>
    %c8_i32_99 = arith.constant 8 : i32
    %288 = vector.broadcast %c8_i32_99 : i32 to vector<8x32xi32>
    %289 = arith.addi %288, %283 : vector<8x32xi32>
    %290 = arith.cmpi eq, %284, %289 : vector<8x32xi32>
    %291 = arith.ori %287, %290 : vector<8x32xi1>
    %c16_i32_100 = arith.constant 16 : i32
    %292 = vector.broadcast %c16_i32_100 : i32 to vector<8x32xi32>
    %293 = arith.addi %292, %283 : vector<8x32xi32>
    %294 = arith.cmpi eq, %284, %293 : vector<8x32xi32>
    %295 = arith.ori %291, %294 : vector<8x32xi1>
    %c24_i32_101 = arith.constant 24 : i32
    %296 = vector.broadcast %c24_i32_101 : i32 to vector<8x32xi32>
    %297 = arith.addi %296, %283 : vector<8x32xi32>
    %298 = arith.cmpi eq, %284, %297 : vector<8x32xi32>
    %299 = arith.ori %295, %298 : vector<8x32xi1>
    %cst_102 = arith.constant 1.000000e+00 : f32
    %cst_103 = arith.constant 0.000000e+00 : f32
    %300 = vector.broadcast %cst_102 : f32 to vector<8x32xf32>
    %301 = vector.broadcast %cst_103 : f32 to vector<8x32xf32>
    %302 = arith.select %299, %300, %301 : vector<8x32xi1>, vector<8x32xf32>
    %303 = tpu.iota {dimensions = array<i32: 0>} : vector<32x8xi32>
    %304 = tpu.iota {dimensions = array<i32: 1>} : vector<32x8xi32>
    %c0_i32_104 = arith.constant 0 : i32
    %305 = vector.broadcast %c0_i32_104 : i32 to vector<32x8xi32>
    %306 = arith.addi %305, %304 : vector<32x8xi32>
    %307 = arith.cmpi eq, %303, %306 : vector<32x8xi32>
    %c8_i32_105 = arith.constant 8 : i32
    %308 = vector.broadcast %c8_i32_105 : i32 to vector<32x8xi32>
    %309 = arith.addi %308, %304 : vector<32x8xi32>
    %310 = arith.cmpi eq, %303, %309 : vector<32x8xi32>
    %311 = arith.ori %307, %310 : vector<32x8xi1>
    %c16_i32_106 = arith.constant 16 : i32
    %312 = vector.broadcast %c16_i32_106 : i32 to vector<32x8xi32>
    %313 = arith.addi %312, %304 : vector<32x8xi32>
    %314 = arith.cmpi eq, %303, %313 : vector<32x8xi32>
    %315 = arith.ori %311, %314 : vector<32x8xi1>
    %c24_i32_107 = arith.constant 24 : i32
    %316 = vector.broadcast %c24_i32_107 : i32 to vector<32x8xi32>
    %317 = arith.addi %316, %304 : vector<32x8xi32>
    %318 = arith.cmpi eq, %303, %317 : vector<32x8xi32>
    %319 = arith.ori %315, %318 : vector<32x8xi1>
    %cst_108 = arith.constant 1.000000e+00 : f32
    %cst_109 = arith.constant 0.000000e+00 : f32
    %320 = vector.broadcast %cst_108 : f32 to vector<32x8xf32>
    %321 = vector.broadcast %cst_109 : f32 to vector<32x8xf32>
    %322 = arith.select %319, %320, %321 : vector<32x8xi1>, vector<32x8xf32>
    %323 = tpu.transpose %125, [1, 0] : vector<8x32xf32> -> vector<32x8xf32>
    %cst_110 = arith.constant dense<0.000000e+00> : vector<32x32xf32>
    %324 = tpu.matmul %323, %302, %cst_110 {dimension_numbers = #tpu.dot_dimension_numbers<[1], [0], [0], [1], [0, 0, 1, 1], [], []>} : vector<32x8xf32>, vector<8x32xf32>, vector<32x32xf32> -> vector<32x32xf32>
    %325 = arith.mulf %324, %178 : vector<32x32xf32>
    %cst_111 = arith.constant dense<0.000000e+00> : vector<8x32xf32>
    %326 = tpu.matmul %120, %325, %cst_111 {dimension_numbers = #tpu.dot_dimension_numbers<[1], [0], [0], [1], [0, 0, 1, 1], [], []>} : vector<8x32xf32>, vector<32x32xf32>, vector<8x32xf32> -> vector<8x32xf32>
    %cst_112 = arith.constant 0.353553385 : f32
    %327 = vector.broadcast %cst_112 : f32 to vector<8x32xf32>
    %328 = arith.mulf %326, %327 : vector<8x32xf32>
    %cst_113 = arith.constant dense<0xFF800000> : vector<8xf32>
    %329 = vector.multi_reduction <maximumf>, %328, %cst_113 [1] : vector<8x32xf32> to vector<8xf32>
    %330 = vector.shape_cast %329 : vector<8xf32> to vector<8x1xf32>
    %331 = vector.broadcast %330 : vector<8x1xf32> to vector<8x32xf32>
    %332 = arith.subf %328, %331 : vector<8x32xf32>
    %333 = math.exp %332 : vector<8x32xf32>
    %cst_114 = arith.constant dense<0.000000e+00> : vector<8x32xf32>
    %334 = tpu.matmul %333, %282, %cst_114 {dimension_numbers = #tpu.dot_dimension_numbers<[1], [0], [0], [1], [0, 0, 1, 1], [], []>} : vector<8x32xf32>, vector<32x32xf32>, vector<8x32xf32> -> vector<8x32xf32>
    %335 = tpu.reciprocal %334 {approx = true} : vector<8x32xf32> -> vector<8x32xf32>
    %336 = arith.mulf %333, %335 : vector<8x32xf32>
    %cst_115 = arith.constant dense<0.000000e+00> : vector<32x32xf32>
    %337 = tpu.matmul %322, %126, %cst_115 {dimension_numbers = #tpu.dot_dimension_numbers<[1], [0], [0], [1], [0, 0, 1, 1], [], []>} : vector<32x8xf32>, vector<8x32xf32>, vector<32x32xf32> -> vector<32x32xf32>
    %338 = arith.mulf %337, %230 : vector<32x32xf32>
    %cst_116 = arith.constant dense<0.000000e+00> : vector<8x32xf32>
    %339 = tpu.matmul %336, %338, %cst_116 {dimension_numbers = #tpu.dot_dimension_numbers<[1], [0], [0], [1], [0, 0, 1, 1], [], []>} : vector<8x32xf32>, vector<32x32xf32>, vector<8x32xf32> -> vector<8x32xf32>
    %cst_117 = arith.constant dense<0.000000e+00> : vector<8x32xf32>
    %340 = tpu.matmul %339, %115, %cst_117 {dimension_numbers = #tpu.dot_dimension_numbers<[1], [0], [0], [1], [0, 0, 1, 1], [], []>} : vector<8x32xf32>, vector<32x32xf32>, vector<8x32xf32> -> vector<8x32xf32>
    %341 = arith.addf %98, %340 : vector<8x32xf32>
    %c360 = arith.constant 360 : index
    %c0_118 = arith.constant 0 : index
    %342 = vector.load %arg2[%c360, %c0_118] : memref<1712x128xf32, #tpu.memory_space<vmem>>, vector<1x32xf32>
    %343 = arith.mulf %341, %341 : vector<8x32xf32>
    %cst_119 = arith.constant dense<0.000000e+00> : vector<8xf32>
    %344 = vector.multi_reduction <add>, %343, %cst_119 [1] : vector<8x32xf32> to vector<8xf32>
    %345 = vector.shape_cast %344 : vector<8xf32> to vector<8x1xf32>
    %cst_120 = arith.constant 3.200000e+01 : f32
    %346 = vector.broadcast %cst_120 : f32 to vector<8x1xf32>
    %347 = arith.divf %345, %346 : vector<8x1xf32>
    %cst_121 = arith.constant 9.99999997E-7 : f32
    %348 = vector.broadcast %cst_121 : f32 to vector<8x1xf32>
    %349 = arith.addf %347, %348 : vector<8x1xf32>
    %350 = math.rsqrt %349 : vector<8x1xf32>
    %351 = vector.broadcast %350 : vector<8x1xf32> to vector<8x32xf32>
    %352 = arith.mulf %341, %351 : vector<8x32xf32>
    %353 = vector.broadcast %342 : vector<1x32xf32> to vector<8x32xf32>
    %354 = arith.mulf %352, %353 : vector<8x32xf32>
    %c496 = arith.constant 496 : index
    %c0_122 = arith.constant 0 : index
    %355 = vector.load %arg2[%c496, %c0_122] : memref<1712x128xf32, #tpu.memory_space<vmem>>, vector<32x64xf32>
    %c528 = arith.constant 528 : index
    %c0_123 = arith.constant 0 : index
    %356 = vector.load %arg2[%c528, %c0_123] : memref<1712x128xf32, #tpu.memory_space<vmem>>, vector<32x64xf32>
    %c560 = arith.constant 560 : index
    %c0_124 = arith.constant 0 : index
    %357 = vector.load %arg2[%c560, %c0_124] : memref<1712x128xf32, #tpu.memory_space<vmem>>, vector<64x32xf32>
    %cst_125 = arith.constant dense<0.000000e+00> : vector<8x64xf32>
    %358 = tpu.matmul %354, %355, %cst_125 {dimension_numbers = #tpu.dot_dimension_numbers<[1], [0], [0], [1], [0, 0, 1, 1], [], []>} : vector<8x32xf32>, vector<32x64xf32>, vector<8x64xf32> -> vector<8x64xf32>
    %cst_126 = arith.constant dense<0.000000e+00> : vector<8x64xf32>
    %359 = tpu.matmul %354, %356, %cst_126 {dimension_numbers = #tpu.dot_dimension_numbers<[1], [0], [0], [1], [0, 0, 1, 1], [], []>} : vector<8x32xf32>, vector<32x64xf32>, vector<8x64xf32> -> vector<8x64xf32>
    %360 = arith.negf %358 : vector<8x64xf32>
    %361 = math.exp %360 : vector<8x64xf32>
    %cst_127 = arith.constant 1.000000e+00 : f32
    %362 = vector.broadcast %cst_127 : f32 to vector<8x64xf32>
    %363 = arith.addf %362, %361 : vector<8x64xf32>
    %364 = arith.divf %362, %363 : vector<8x64xf32>
    %365 = arith.mulf %358, %364 : vector<8x64xf32>
    %366 = arith.mulf %365, %359 : vector<8x64xf32>
    %cst_128 = arith.constant dense<0.000000e+00> : vector<8x32xf32>
    %367 = tpu.matmul %366, %357, %cst_128 {dimension_numbers = #tpu.dot_dimension_numbers<[1], [0], [0], [1], [0, 0, 1, 1], [], []>} : vector<8x64xf32>, vector<64x32xf32>, vector<8x32xf32> -> vector<8x32xf32>
    %368 = arith.addf %341, %367 : vector<8x32xf32>
    %c624 = arith.constant 624 : index
    %c0_129 = arith.constant 0 : index
    %369 = vector.load %arg2[%c624, %c0_129] : memref<1712x128xf32, #tpu.memory_space<vmem>>, vector<1x32xf32>
    %370 = arith.mulf %368, %368 : vector<8x32xf32>
    %cst_130 = arith.constant dense<0.000000e+00> : vector<8xf32>
    %371 = vector.multi_reduction <add>, %370, %cst_130 [1] : vector<8x32xf32> to vector<8xf32>
    %372 = vector.shape_cast %371 : vector<8xf32> to vector<8x1xf32>
    %cst_131 = arith.constant 3.200000e+01 : f32
    %373 = vector.broadcast %cst_131 : f32 to vector<8x1xf32>
    %374 = arith.divf %372, %373 : vector<8x1xf32>
    %cst_132 = arith.constant 9.99999997E-7 : f32
    %375 = vector.broadcast %cst_132 : f32 to vector<8x1xf32>
    %376 = arith.addf %374, %375 : vector<8x1xf32>
    %377 = math.rsqrt %376 : vector<8x1xf32>
    %378 = vector.broadcast %377 : vector<8x1xf32> to vector<8x32xf32>
    %379 = arith.mulf %368, %378 : vector<8x32xf32>
    %380 = vector.broadcast %369 : vector<1x32xf32> to vector<8x32xf32>
    %381 = arith.mulf %379, %380 : vector<8x32xf32>
    %c640 = arith.constant 640 : index
    %c0_133 = arith.constant 0 : index
    %382 = vector.load %arg2[%c640, %c0_133] : memref<1712x128xf32, #tpu.memory_space<vmem>>, vector<32x32xf32>
    %c672 = arith.constant 672 : index
    %c0_134 = arith.constant 0 : index
    %383 = vector.load %arg2[%c672, %c0_134] : memref<1712x128xf32, #tpu.memory_space<vmem>>, vector<32x32xf32>
    %c704 = arith.constant 704 : index
    %c0_135 = arith.constant 0 : index
    %384 = vector.load %arg2[%c704, %c0_135] : memref<1712x128xf32, #tpu.memory_space<vmem>>, vector<32x32xf32>
    %c736 = arith.constant 736 : index
    %c0_136 = arith.constant 0 : index
    %385 = vector.load %arg2[%c736, %c0_136] : memref<1712x128xf32, #tpu.memory_space<vmem>>, vector<32x32xf32>
    %cst_137 = arith.constant dense<0.000000e+00> : vector<8x32xf32>
    %386 = tpu.matmul %381, %382, %cst_137 {dimension_numbers = #tpu.dot_dimension_numbers<[1], [0], [0], [1], [0, 0, 1, 1], [], []>} : vector<8x32xf32>, vector<32x32xf32>, vector<8x32xf32> -> vector<8x32xf32>
    %387 = arith.mulf %386, %62 : vector<8x32xf32>
    %cst_138 = arith.constant dense<0.000000e+00> : vector<8x32xf32>
    %388 = tpu.matmul %386, %61, %cst_138 {dimension_numbers = #tpu.dot_dimension_numbers<[1], [0], [0], [1], [0, 0, 1, 1], [], []>} : vector<8x32xf32>, vector<32x32xf32>, vector<8x32xf32> -> vector<8x32xf32>
    %389 = arith.mulf %388, %63 : vector<8x32xf32>
    %390 = arith.addf %387, %389 : vector<8x32xf32>
    %cst_139 = arith.constant dense<0.000000e+00> : vector<8x32xf32>
    %391 = tpu.matmul %381, %383, %cst_139 {dimension_numbers = #tpu.dot_dimension_numbers<[1], [0], [0], [1], [0, 0, 1, 1], [], []>} : vector<8x32xf32>, vector<32x32xf32>, vector<8x32xf32> -> vector<8x32xf32>
    %392 = arith.mulf %391, %62 : vector<8x32xf32>
    %cst_140 = arith.constant dense<0.000000e+00> : vector<8x32xf32>
    %393 = tpu.matmul %391, %61, %cst_140 {dimension_numbers = #tpu.dot_dimension_numbers<[1], [0], [0], [1], [0, 0, 1, 1], [], []>} : vector<8x32xf32>, vector<32x32xf32>, vector<8x32xf32> -> vector<8x32xf32>
    %394 = arith.mulf %393, %63 : vector<8x32xf32>
    %395 = arith.addf %392, %394 : vector<8x32xf32>
    %cst_141 = arith.constant dense<0.000000e+00> : vector<8x32xf32>
    %396 = tpu.matmul %381, %384, %cst_141 {dimension_numbers = #tpu.dot_dimension_numbers<[1], [0], [0], [1], [0, 0, 1, 1], [], []>} : vector<8x32xf32>, vector<32x32xf32>, vector<8x32xf32> -> vector<8x32xf32>
    %397 = tpu.transpose %395, [1, 0] : vector<8x32xf32> -> vector<32x8xf32>
    %cst_142 = arith.constant dense<0.000000e+00> : vector<32x32xf32>
    %398 = tpu.matmul %397, %302, %cst_142 {dimension_numbers = #tpu.dot_dimension_numbers<[1], [0], [0], [1], [0, 0, 1, 1], [], []>} : vector<32x8xf32>, vector<8x32xf32>, vector<32x32xf32> -> vector<32x32xf32>
    %399 = arith.mulf %398, %178 : vector<32x32xf32>
    %cst_143 = arith.constant dense<0.000000e+00> : vector<8x32xf32>
    %400 = tpu.matmul %390, %399, %cst_143 {dimension_numbers = #tpu.dot_dimension_numbers<[1], [0], [0], [1], [0, 0, 1, 1], [], []>} : vector<8x32xf32>, vector<32x32xf32>, vector<8x32xf32> -> vector<8x32xf32>
    %cst_144 = arith.constant 0.353553385 : f32
    %401 = vector.broadcast %cst_144 : f32 to vector<8x32xf32>
    %402 = arith.mulf %400, %401 : vector<8x32xf32>
    %cst_145 = arith.constant dense<0xFF800000> : vector<8xf32>
    %403 = vector.multi_reduction <maximumf>, %402, %cst_145 [1] : vector<8x32xf32> to vector<8xf32>
    %404 = vector.shape_cast %403 : vector<8xf32> to vector<8x1xf32>
    %405 = vector.broadcast %404 : vector<8x1xf32> to vector<8x32xf32>
    %406 = arith.subf %402, %405 : vector<8x32xf32>
    %407 = math.exp %406 : vector<8x32xf32>
    %cst_146 = arith.constant dense<0.000000e+00> : vector<8x32xf32>
    %408 = tpu.matmul %407, %282, %cst_146 {dimension_numbers = #tpu.dot_dimension_numbers<[1], [0], [0], [1], [0, 0, 1, 1], [], []>} : vector<8x32xf32>, vector<32x32xf32>, vector<8x32xf32> -> vector<8x32xf32>
    %409 = tpu.reciprocal %408 {approx = true} : vector<8x32xf32> -> vector<8x32xf32>
    %410 = arith.mulf %407, %409 : vector<8x32xf32>
    %cst_147 = arith.constant dense<0.000000e+00> : vector<32x32xf32>
    %411 = tpu.matmul %322, %396, %cst_147 {dimension_numbers = #tpu.dot_dimension_numbers<[1], [0], [0], [1], [0, 0, 1, 1], [], []>} : vector<32x8xf32>, vector<8x32xf32>, vector<32x32xf32> -> vector<32x32xf32>
    %412 = arith.mulf %411, %230 : vector<32x32xf32>
    %cst_148 = arith.constant dense<0.000000e+00> : vector<8x32xf32>
    %413 = tpu.matmul %410, %412, %cst_148 {dimension_numbers = #tpu.dot_dimension_numbers<[1], [0], [0], [1], [0, 0, 1, 1], [], []>} : vector<8x32xf32>, vector<32x32xf32>, vector<8x32xf32> -> vector<8x32xf32>
    %cst_149 = arith.constant dense<0.000000e+00> : vector<8x32xf32>
    %414 = tpu.matmul %413, %385, %cst_149 {dimension_numbers = #tpu.dot_dimension_numbers<[1], [0], [0], [1], [0, 0, 1, 1], [], []>} : vector<8x32xf32>, vector<32x32xf32>, vector<8x32xf32> -> vector<8x32xf32>
    %415 = arith.addf %368, %414 : vector<8x32xf32>
    %c632 = arith.constant 632 : index
    %c0_150 = arith.constant 0 : index
    %416 = vector.load %arg2[%c632, %c0_150] : memref<1712x128xf32, #tpu.memory_space<vmem>>, vector<1x32xf32>
    %417 = arith.mulf %415, %415 : vector<8x32xf32>
    %cst_151 = arith.constant dense<0.000000e+00> : vector<8xf32>
    %418 = vector.multi_reduction <add>, %417, %cst_151 [1] : vector<8x32xf32> to vector<8xf32>
    %419 = vector.shape_cast %418 : vector<8xf32> to vector<8x1xf32>
    %cst_152 = arith.constant 3.200000e+01 : f32
    %420 = vector.broadcast %cst_152 : f32 to vector<8x1xf32>
    %421 = arith.divf %419, %420 : vector<8x1xf32>
    %cst_153 = arith.constant 9.99999997E-7 : f32
    %422 = vector.broadcast %cst_153 : f32 to vector<8x1xf32>
    %423 = arith.addf %421, %422 : vector<8x1xf32>
    %424 = math.rsqrt %423 : vector<8x1xf32>
    %425 = vector.broadcast %424 : vector<8x1xf32> to vector<8x32xf32>
    %426 = arith.mulf %415, %425 : vector<8x32xf32>
    %427 = vector.broadcast %416 : vector<1x32xf32> to vector<8x32xf32>
    %428 = arith.mulf %426, %427 : vector<8x32xf32>
    %c768 = arith.constant 768 : index
    %c0_154 = arith.constant 0 : index
    %429 = vector.load %arg2[%c768, %c0_154] : memref<1712x128xf32, #tpu.memory_space<vmem>>, vector<32x64xf32>
    %c800 = arith.constant 800 : index
    %c0_155 = arith.constant 0 : index
    %430 = vector.load %arg2[%c800, %c0_155] : memref<1712x128xf32, #tpu.memory_space<vmem>>, vector<32x64xf32>
    %c832 = arith.constant 832 : index
    %c0_156 = arith.constant 0 : index
    %431 = vector.load %arg2[%c832, %c0_156] : memref<1712x128xf32, #tpu.memory_space<vmem>>, vector<64x32xf32>
    %cst_157 = arith.constant dense<0.000000e+00> : vector<8x64xf32>
    %432 = tpu.matmul %428, %429, %cst_157 {dimension_numbers = #tpu.dot_dimension_numbers<[1], [0], [0], [1], [0, 0, 1, 1], [], []>} : vector<8x32xf32>, vector<32x64xf32>, vector<8x64xf32> -> vector<8x64xf32>
    %cst_158 = arith.constant dense<0.000000e+00> : vector<8x64xf32>
    %433 = tpu.matmul %428, %430, %cst_158 {dimension_numbers = #tpu.dot_dimension_numbers<[1], [0], [0], [1], [0, 0, 1, 1], [], []>} : vector<8x32xf32>, vector<32x64xf32>, vector<8x64xf32> -> vector<8x64xf32>
    %434 = arith.negf %432 : vector<8x64xf32>
    %435 = math.exp %434 : vector<8x64xf32>
    %cst_159 = arith.constant 1.000000e+00 : f32
    %436 = vector.broadcast %cst_159 : f32 to vector<8x64xf32>
    %437 = arith.addf %436, %435 : vector<8x64xf32>
    %438 = arith.divf %436, %437 : vector<8x64xf32>
    %439 = arith.mulf %432, %438 : vector<8x64xf32>
    %440 = arith.mulf %439, %433 : vector<8x64xf32>
    %cst_160 = arith.constant dense<0.000000e+00> : vector<8x32xf32>
    %441 = tpu.matmul %440, %431, %cst_160 {dimension_numbers = #tpu.dot_dimension_numbers<[1], [0], [0], [1], [0, 0, 1, 1], [], []>} : vector<8x64xf32>, vector<64x32xf32>, vector<8x32xf32> -> vector<8x32xf32>
    %442 = arith.addf %415, %441 : vector<8x32xf32>
    %c320 = arith.constant 320 : index
    %c0_161 = arith.constant 0 : index
    %443 = vector.load %arg2[%c320, %c0_161] : memref<1712x128xf32, #tpu.memory_space<vmem>>, vector<1x32xf32>
    %444 = arith.mulf %442, %442 : vector<8x32xf32>
    %cst_162 = arith.constant dense<0.000000e+00> : vector<8xf32>
    %445 = vector.multi_reduction <add>, %444, %cst_162 [1] : vector<8x32xf32> to vector<8xf32>
    %446 = vector.shape_cast %445 : vector<8xf32> to vector<8x1xf32>
    %cst_163 = arith.constant 3.200000e+01 : f32
    %447 = vector.broadcast %cst_163 : f32 to vector<8x1xf32>
    %448 = arith.divf %446, %447 : vector<8x1xf32>
    %cst_164 = arith.constant 9.99999997E-7 : f32
    %449 = vector.broadcast %cst_164 : f32 to vector<8x1xf32>
    %450 = arith.addf %448, %449 : vector<8x1xf32>
    %451 = math.rsqrt %450 : vector<8x1xf32>
    %452 = vector.broadcast %451 : vector<8x1xf32> to vector<8x32xf32>
    %453 = arith.mulf %442, %452 : vector<8x32xf32>
    %454 = vector.broadcast %443 : vector<1x32xf32> to vector<8x32xf32>
    %455 = arith.mulf %453, %454 : vector<8x32xf32>
    %c0_165 = arith.constant 0 : index
    %c0_166 = arith.constant 0 : index
    %456 = vector.load %arg1[%c0_165, %c0_166] : memref<8x8xf32, #tpu.memory_space<vmem>>, vector<8x8xf32>
    %cst_167 = arith.constant dense<0.000000e+00> : vector<8x32xf32>
    %457 = tpu.matmul %456, %302, %cst_167 {dimension_numbers = #tpu.dot_dimension_numbers<[1], [0], [0], [1], [0, 0, 1, 1], [], []>} : vector<8x8xf32>, vector<8x32xf32>, vector<8x32xf32> -> vector<8x32xf32>
    %458 = tpu.iota {dimensions = array<i32: 1>} : vector<80x128xi32>
    %459 = vector.broadcast %67 : vector<80x1xi32> to vector<80x128xi32>
    %460 = arith.cmpi eq, %459, %458 : vector<80x128xi32>
    %cst_168 = arith.constant 1.000000e+00 : f32
    %cst_169 = arith.constant 0.000000e+00 : f32
    %461 = vector.broadcast %cst_168 : f32 to vector<80x128xf32>
    %462 = vector.broadcast %cst_169 : f32 to vector<80x128xf32>
    %463 = arith.select %460, %461, %462 : vector<80x128xi1>, vector<80x128xf32>
    %cst_170 = arith.constant dense<0.000000e+00> : vector<80x32xf32>
    %464 = tpu.matmul %463, %64, %cst_170 {dimension_numbers = #tpu.dot_dimension_numbers<[1], [0], [0], [1], [0, 0, 1, 1], [], []>} : vector<80x128xf32>, vector<128x32xf32>, vector<80x32xf32> -> vector<80x32xf32>
    %465 = tpu.iota {dimensions = array<i32: 0>} : vector<8x80xi32>
    %466 = tpu.iota {dimensions = array<i32: 1>} : vector<8x80xi32>
    %c10_i32_171 = arith.constant 10 : i32
    %467 = vector.broadcast %c10_i32_171 : i32 to vector<8x80xi32>
    %468 = arith.muli %465, %467 : vector<8x80xi32>
    %469 = arith.subi %466, %468 : vector<8x80xi32>
    %c3_i32_172 = arith.constant 3 : i32
    %470 = vector.broadcast %c3_i32_172 : i32 to vector<8x80xi32>
    %471 = arith.cmpi slt, %469, %470 : vector<8x80xi32>
    %c7_i32_173 = arith.constant 7 : i32
    %472 = vector.broadcast %c7_i32_173 : i32 to vector<8x80xi32>
    %473 = arith.cmpi slt, %469, %472 : vector<8x80xi32>
    %cst_174 = arith.constant 2.500000e-01 : f32
    %cst_175 = arith.constant 0.333333343 : f32
    %474 = vector.broadcast %cst_174 : f32 to vector<8x80xf32>
    %475 = vector.broadcast %cst_175 : f32 to vector<8x80xf32>
    %476 = arith.select %473, %474, %475 : vector<8x80xi1>, vector<8x80xf32>
    %cst_176 = arith.constant 0.333333343 : f32
    %477 = vector.broadcast %cst_176 : f32 to vector<8x80xf32>
    %478 = arith.select %471, %477, %476 : vector<8x80xi1>, vector<8x80xf32>
    %479 = arith.cmpi sge, %466, %468 : vector<8x80xi32>
    %c10_i32_177 = arith.constant 10 : i32
    %480 = vector.broadcast %c10_i32_177 : i32 to vector<8x80xi32>
    %481 = arith.addi %468, %480 : vector<8x80xi32>
    %482 = arith.cmpi slt, %466, %481 : vector<8x80xi32>
    %483 = arith.andi %479, %482 : vector<8x80xi1>
    %cst_178 = arith.constant 0.000000e+00 : f32
    %484 = vector.broadcast %cst_178 : f32 to vector<8x80xf32>
    %485 = arith.select %483, %478, %484 : vector<8x80xi1>, vector<8x80xf32>
    %cst_179 = arith.constant dense<0.000000e+00> : vector<8x32xf32>
    %486 = tpu.matmul %485, %464, %cst_179 {dimension_numbers = #tpu.dot_dimension_numbers<[1], [0], [0], [1], [0, 0, 1, 1], [], []>} : vector<8x80xf32>, vector<80x32xf32>, vector<8x32xf32> -> vector<8x32xf32>
    %cst_180 = arith.constant dense<0.000000e+00> : vector<8x32xf32>
    %487 = tpu.matmul %486, %65, %cst_180 {dimension_numbers = #tpu.dot_dimension_numbers<[1], [0], [0], [1], [0, 0, 1, 1], [], []>} : vector<8x32xf32>, vector<32x32xf32>, vector<8x32xf32> -> vector<8x32xf32>
    %c896 = arith.constant 896 : index
    %c0_181 = arith.constant 0 : index
    %488 = vector.load %arg2[%c896, %c0_181] : memref<1712x128xf32, #tpu.memory_space<vmem>>, vector<1x32xf32>
    %489 = arith.mulf %487, %487 : vector<8x32xf32>
    %cst_182 = arith.constant dense<0.000000e+00> : vector<8xf32>
    %490 = vector.multi_reduction <add>, %489, %cst_182 [1] : vector<8x32xf32> to vector<8xf32>
    %491 = vector.shape_cast %490 : vector<8xf32> to vector<8x1xf32>
    %cst_183 = arith.constant 3.200000e+01 : f32
    %492 = vector.broadcast %cst_183 : f32 to vector<8x1xf32>
    %493 = arith.divf %491, %492 : vector<8x1xf32>
    %cst_184 = arith.constant 9.99999997E-7 : f32
    %494 = vector.broadcast %cst_184 : f32 to vector<8x1xf32>
    %495 = arith.addf %493, %494 : vector<8x1xf32>
    %496 = math.rsqrt %495 : vector<8x1xf32>
    %497 = vector.broadcast %496 : vector<8x1xf32> to vector<8x32xf32>
    %498 = arith.mulf %487, %497 : vector<8x32xf32>
    %499 = vector.broadcast %488 : vector<1x32xf32> to vector<8x32xf32>
    %500 = arith.mulf %498, %499 : vector<8x32xf32>
    %c920 = arith.constant 920 : index
    %c0_185 = arith.constant 0 : index
    %501 = vector.load %arg2[%c920, %c0_185] : memref<1712x128xf32, #tpu.memory_space<vmem>>, vector<32x32xf32>
    %c952 = arith.constant 952 : index
    %c0_186 = arith.constant 0 : index
    %502 = vector.load %arg2[%c952, %c0_186] : memref<1712x128xf32, #tpu.memory_space<vmem>>, vector<32x32xf32>
    %c984 = arith.constant 984 : index
    %c0_187 = arith.constant 0 : index
    %503 = vector.load %arg2[%c984, %c0_187] : memref<1712x128xf32, #tpu.memory_space<vmem>>, vector<32x32xf32>
    %c1016 = arith.constant 1016 : index
    %c0_188 = arith.constant 0 : index
    %504 = vector.load %arg2[%c1016, %c0_188] : memref<1712x128xf32, #tpu.memory_space<vmem>>, vector<32x32xf32>
    %cst_189 = arith.constant dense<0.000000e+00> : vector<8x32xf32>
    %505 = tpu.matmul %500, %501, %cst_189 {dimension_numbers = #tpu.dot_dimension_numbers<[1], [0], [0], [1], [0, 0, 1, 1], [], []>} : vector<8x32xf32>, vector<32x32xf32>, vector<8x32xf32> -> vector<8x32xf32>
    %506 = arith.mulf %505, %62 : vector<8x32xf32>
    %cst_190 = arith.constant dense<0.000000e+00> : vector<8x32xf32>
    %507 = tpu.matmul %505, %61, %cst_190 {dimension_numbers = #tpu.dot_dimension_numbers<[1], [0], [0], [1], [0, 0, 1, 1], [], []>} : vector<8x32xf32>, vector<32x32xf32>, vector<8x32xf32> -> vector<8x32xf32>
    %508 = arith.mulf %507, %63 : vector<8x32xf32>
    %509 = arith.addf %506, %508 : vector<8x32xf32>
    %cst_191 = arith.constant dense<0.000000e+00> : vector<8x32xf32>
    %510 = tpu.matmul %500, %502, %cst_191 {dimension_numbers = #tpu.dot_dimension_numbers<[1], [0], [0], [1], [0, 0, 1, 1], [], []>} : vector<8x32xf32>, vector<32x32xf32>, vector<8x32xf32> -> vector<8x32xf32>
    %511 = arith.mulf %510, %62 : vector<8x32xf32>
    %cst_192 = arith.constant dense<0.000000e+00> : vector<8x32xf32>
    %512 = tpu.matmul %510, %61, %cst_192 {dimension_numbers = #tpu.dot_dimension_numbers<[1], [0], [0], [1], [0, 0, 1, 1], [], []>} : vector<8x32xf32>, vector<32x32xf32>, vector<8x32xf32> -> vector<8x32xf32>
    %513 = arith.mulf %512, %63 : vector<8x32xf32>
    %514 = arith.addf %511, %513 : vector<8x32xf32>
    %cst_193 = arith.constant dense<0.000000e+00> : vector<8x32xf32>
    %515 = tpu.matmul %500, %503, %cst_193 {dimension_numbers = #tpu.dot_dimension_numbers<[1], [0], [0], [1], [0, 0, 1, 1], [], []>} : vector<8x32xf32>, vector<32x32xf32>, vector<8x32xf32> -> vector<8x32xf32>
    %516 = tpu.transpose %514, [1, 0] : vector<8x32xf32> -> vector<32x8xf32>
    %cst_194 = arith.constant dense<0.000000e+00> : vector<32x32xf32>
    %517 = tpu.matmul %516, %302, %cst_194 {dimension_numbers = #tpu.dot_dimension_numbers<[1], [0], [0], [1], [0, 0, 1, 1], [], []>} : vector<32x8xf32>, vector<8x32xf32>, vector<32x32xf32> -> vector<32x32xf32>
    %518 = arith.mulf %517, %178 : vector<32x32xf32>
    %cst_195 = arith.constant dense<0.000000e+00> : vector<8x32xf32>
    %519 = tpu.matmul %509, %518, %cst_195 {dimension_numbers = #tpu.dot_dimension_numbers<[1], [0], [0], [1], [0, 0, 1, 1], [], []>} : vector<8x32xf32>, vector<32x32xf32>, vector<8x32xf32> -> vector<8x32xf32>
    %cst_196 = arith.constant 0.353553385 : f32
    %520 = vector.broadcast %cst_196 : f32 to vector<8x32xf32>
    %521 = arith.mulf %519, %520 : vector<8x32xf32>
    %522 = arith.addf %521, %457 : vector<8x32xf32>
    %cst_197 = arith.constant dense<0xFF800000> : vector<8xf32>
    %523 = vector.multi_reduction <maximumf>, %522, %cst_197 [1] : vector<8x32xf32> to vector<8xf32>
    %524 = vector.shape_cast %523 : vector<8xf32> to vector<8x1xf32>
    %525 = vector.broadcast %524 : vector<8x1xf32> to vector<8x32xf32>
    %526 = arith.subf %522, %525 : vector<8x32xf32>
    %527 = math.exp %526 : vector<8x32xf32>
    %cst_198 = arith.constant dense<0.000000e+00> : vector<8x32xf32>
    %528 = tpu.matmul %527, %282, %cst_198 {dimension_numbers = #tpu.dot_dimension_numbers<[1], [0], [0], [1], [0, 0, 1, 1], [], []>} : vector<8x32xf32>, vector<32x32xf32>, vector<8x32xf32> -> vector<8x32xf32>
    %529 = tpu.reciprocal %528 {approx = true} : vector<8x32xf32> -> vector<8x32xf32>
    %530 = arith.mulf %527, %529 : vector<8x32xf32>
    %cst_199 = arith.constant dense<0.000000e+00> : vector<32x32xf32>
    %531 = tpu.matmul %322, %515, %cst_199 {dimension_numbers = #tpu.dot_dimension_numbers<[1], [0], [0], [1], [0, 0, 1, 1], [], []>} : vector<32x8xf32>, vector<8x32xf32>, vector<32x32xf32> -> vector<32x32xf32>
    %532 = arith.mulf %531, %230 : vector<32x32xf32>
    %cst_200 = arith.constant dense<0.000000e+00> : vector<8x32xf32>
    %533 = tpu.matmul %530, %532, %cst_200 {dimension_numbers = #tpu.dot_dimension_numbers<[1], [0], [0], [1], [0, 0, 1, 1], [], []>} : vector<8x32xf32>, vector<32x32xf32>, vector<8x32xf32> -> vector<8x32xf32>
    %cst_201 = arith.constant dense<0.000000e+00> : vector<8x32xf32>
    %534 = tpu.matmul %533, %504, %cst_201 {dimension_numbers = #tpu.dot_dimension_numbers<[1], [0], [0], [1], [0, 0, 1, 1], [], []>} : vector<8x32xf32>, vector<32x32xf32>, vector<8x32xf32> -> vector<8x32xf32>
    %535 = arith.addf %487, %534 : vector<8x32xf32>
    %c904 = arith.constant 904 : index
    %c0_202 = arith.constant 0 : index
    %536 = vector.load %arg2[%c904, %c0_202] : memref<1712x128xf32, #tpu.memory_space<vmem>>, vector<1x32xf32>
    %537 = arith.mulf %535, %535 : vector<8x32xf32>
    %cst_203 = arith.constant dense<0.000000e+00> : vector<8xf32>
    %538 = vector.multi_reduction <add>, %537, %cst_203 [1] : vector<8x32xf32> to vector<8xf32>
    %539 = vector.shape_cast %538 : vector<8xf32> to vector<8x1xf32>
    %cst_204 = arith.constant 3.200000e+01 : f32
    %540 = vector.broadcast %cst_204 : f32 to vector<8x1xf32>
    %541 = arith.divf %539, %540 : vector<8x1xf32>
    %cst_205 = arith.constant 9.99999997E-7 : f32
    %542 = vector.broadcast %cst_205 : f32 to vector<8x1xf32>
    %543 = arith.addf %541, %542 : vector<8x1xf32>
    %544 = math.rsqrt %543 : vector<8x1xf32>
    %545 = vector.broadcast %544 : vector<8x1xf32> to vector<8x32xf32>
    %546 = arith.mulf %535, %545 : vector<8x32xf32>
    %547 = vector.broadcast %536 : vector<1x32xf32> to vector<8x32xf32>
    %548 = arith.mulf %546, %547 : vector<8x32xf32>
    %c1048 = arith.constant 1048 : index
    %c0_206 = arith.constant 0 : index
    %549 = vector.load %arg2[%c1048, %c0_206] : memref<1712x128xf32, #tpu.memory_space<vmem>>, vector<32x32xf32>
    %c1080 = arith.constant 1080 : index
    %c0_207 = arith.constant 0 : index
    %550 = vector.load %arg2[%c1080, %c0_207] : memref<1712x128xf32, #tpu.memory_space<vmem>>, vector<32x32xf32>
    %c1112 = arith.constant 1112 : index
    %c0_208 = arith.constant 0 : index
    %551 = vector.load %arg2[%c1112, %c0_208] : memref<1712x128xf32, #tpu.memory_space<vmem>>, vector<32x32xf32>
    %c1144 = arith.constant 1144 : index
    %c0_209 = arith.constant 0 : index
    %552 = vector.load %arg2[%c1144, %c0_209] : memref<1712x128xf32, #tpu.memory_space<vmem>>, vector<32x32xf32>
    %cst_210 = arith.constant dense<0.000000e+00> : vector<8x32xf32>
    %553 = tpu.matmul %548, %549, %cst_210 {dimension_numbers = #tpu.dot_dimension_numbers<[1], [0], [0], [1], [0, 0, 1, 1], [], []>} : vector<8x32xf32>, vector<32x32xf32>, vector<8x32xf32> -> vector<8x32xf32>
    %cst_211 = arith.constant dense<0.000000e+00> : vector<8x32xf32>
    %554 = tpu.matmul %455, %550, %cst_211 {dimension_numbers = #tpu.dot_dimension_numbers<[1], [0], [0], [1], [0, 0, 1, 1], [], []>} : vector<8x32xf32>, vector<32x32xf32>, vector<8x32xf32> -> vector<8x32xf32>
    %cst_212 = arith.constant dense<0.000000e+00> : vector<8x32xf32>
    %555 = tpu.matmul %455, %551, %cst_212 {dimension_numbers = #tpu.dot_dimension_numbers<[1], [0], [0], [1], [0, 0, 1, 1], [], []>} : vector<8x32xf32>, vector<32x32xf32>, vector<8x32xf32> -> vector<8x32xf32>
    %556 = tpu.transpose %554, [1, 0] : vector<8x32xf32> -> vector<32x8xf32>
    %cst_213 = arith.constant dense<0.000000e+00> : vector<32x32xf32>
    %557 = tpu.matmul %556, %302, %cst_213 {dimension_numbers = #tpu.dot_dimension_numbers<[1], [0], [0], [1], [0, 0, 1, 1], [], []>} : vector<32x8xf32>, vector<8x32xf32>, vector<32x32xf32> -> vector<32x32xf32>
    %558 = arith.mulf %557, %178 : vector<32x32xf32>
    %cst_214 = arith.constant dense<0.000000e+00> : vector<8x32xf32>
    %559 = tpu.matmul %553, %558, %cst_214 {dimension_numbers = #tpu.dot_dimension_numbers<[1], [0], [0], [1], [0, 0, 1, 1], [], []>} : vector<8x32xf32>, vector<32x32xf32>, vector<8x32xf32> -> vector<8x32xf32>
    %cst_215 = arith.constant 0.353553385 : f32
    %560 = vector.broadcast %cst_215 : f32 to vector<8x32xf32>
    %561 = arith.mulf %559, %560 : vector<8x32xf32>
    %cst_216 = arith.constant dense<0xFF800000> : vector<8xf32>
    %562 = vector.multi_reduction <maximumf>, %561, %cst_216 [1] : vector<8x32xf32> to vector<8xf32>
    %563 = vector.shape_cast %562 : vector<8xf32> to vector<8x1xf32>
    %564 = vector.broadcast %563 : vector<8x1xf32> to vector<8x32xf32>
    %565 = arith.subf %561, %564 : vector<8x32xf32>
    %566 = math.exp %565 : vector<8x32xf32>
    %cst_217 = arith.constant dense<0.000000e+00> : vector<8x32xf32>
    %567 = tpu.matmul %566, %282, %cst_217 {dimension_numbers = #tpu.dot_dimension_numbers<[1], [0], [0], [1], [0, 0, 1, 1], [], []>} : vector<8x32xf32>, vector<32x32xf32>, vector<8x32xf32> -> vector<8x32xf32>
    %568 = tpu.reciprocal %567 {approx = true} : vector<8x32xf32> -> vector<8x32xf32>
    %569 = arith.mulf %566, %568 : vector<8x32xf32>
    %cst_218 = arith.constant dense<0.000000e+00> : vector<32x32xf32>
    %570 = tpu.matmul %322, %555, %cst_218 {dimension_numbers = #tpu.dot_dimension_numbers<[1], [0], [0], [1], [0, 0, 1, 1], [], []>} : vector<32x8xf32>, vector<8x32xf32>, vector<32x32xf32> -> vector<32x32xf32>
    %571 = arith.mulf %570, %230 : vector<32x32xf32>
    %cst_219 = arith.constant dense<0.000000e+00> : vector<8x32xf32>
    %572 = tpu.matmul %569, %571, %cst_219 {dimension_numbers = #tpu.dot_dimension_numbers<[1], [0], [0], [1], [0, 0, 1, 1], [], []>} : vector<8x32xf32>, vector<32x32xf32>, vector<8x32xf32> -> vector<8x32xf32>
    %cst_220 = arith.constant dense<0.000000e+00> : vector<8x32xf32>
    %573 = tpu.matmul %572, %552, %cst_220 {dimension_numbers = #tpu.dot_dimension_numbers<[1], [0], [0], [1], [0, 0, 1, 1], [], []>} : vector<8x32xf32>, vector<32x32xf32>, vector<8x32xf32> -> vector<8x32xf32>
    %574 = arith.addf %535, %573 : vector<8x32xf32>
    %c912 = arith.constant 912 : index
    %c0_221 = arith.constant 0 : index
    %575 = vector.load %arg2[%c912, %c0_221] : memref<1712x128xf32, #tpu.memory_space<vmem>>, vector<1x32xf32>
    %576 = arith.mulf %574, %574 : vector<8x32xf32>
    %cst_222 = arith.constant dense<0.000000e+00> : vector<8xf32>
    %577 = vector.multi_reduction <add>, %576, %cst_222 [1] : vector<8x32xf32> to vector<8xf32>
    %578 = vector.shape_cast %577 : vector<8xf32> to vector<8x1xf32>
    %cst_223 = arith.constant 3.200000e+01 : f32
    %579 = vector.broadcast %cst_223 : f32 to vector<8x1xf32>
    %580 = arith.divf %578, %579 : vector<8x1xf32>
    %cst_224 = arith.constant 9.99999997E-7 : f32
    %581 = vector.broadcast %cst_224 : f32 to vector<8x1xf32>
    %582 = arith.addf %580, %581 : vector<8x1xf32>
    %583 = math.rsqrt %582 : vector<8x1xf32>
    %584 = vector.broadcast %583 : vector<8x1xf32> to vector<8x32xf32>
    %585 = arith.mulf %574, %584 : vector<8x32xf32>
    %586 = vector.broadcast %575 : vector<1x32xf32> to vector<8x32xf32>
    %587 = arith.mulf %585, %586 : vector<8x32xf32>
    %c1176 = arith.constant 1176 : index
    %c0_225 = arith.constant 0 : index
    %588 = vector.load %arg2[%c1176, %c0_225] : memref<1712x128xf32, #tpu.memory_space<vmem>>, vector<32x64xf32>
    %c1208 = arith.constant 1208 : index
    %c0_226 = arith.constant 0 : index
    %589 = vector.load %arg2[%c1208, %c0_226] : memref<1712x128xf32, #tpu.memory_space<vmem>>, vector<32x64xf32>
    %c1240 = arith.constant 1240 : index
    %c0_227 = arith.constant 0 : index
    %590 = vector.load %arg2[%c1240, %c0_227] : memref<1712x128xf32, #tpu.memory_space<vmem>>, vector<64x32xf32>
    %cst_228 = arith.constant dense<0.000000e+00> : vector<8x64xf32>
    %591 = tpu.matmul %587, %588, %cst_228 {dimension_numbers = #tpu.dot_dimension_numbers<[1], [0], [0], [1], [0, 0, 1, 1], [], []>} : vector<8x32xf32>, vector<32x64xf32>, vector<8x64xf32> -> vector<8x64xf32>
    %cst_229 = arith.constant dense<0.000000e+00> : vector<8x64xf32>
    %592 = tpu.matmul %587, %589, %cst_229 {dimension_numbers = #tpu.dot_dimension_numbers<[1], [0], [0], [1], [0, 0, 1, 1], [], []>} : vector<8x32xf32>, vector<32x64xf32>, vector<8x64xf32> -> vector<8x64xf32>
    %593 = arith.negf %591 : vector<8x64xf32>
    %594 = math.exp %593 : vector<8x64xf32>
    %cst_230 = arith.constant 1.000000e+00 : f32
    %595 = vector.broadcast %cst_230 : f32 to vector<8x64xf32>
    %596 = arith.addf %595, %594 : vector<8x64xf32>
    %597 = arith.divf %595, %596 : vector<8x64xf32>
    %598 = arith.mulf %591, %597 : vector<8x64xf32>
    %599 = arith.mulf %598, %592 : vector<8x64xf32>
    %cst_231 = arith.constant dense<0.000000e+00> : vector<8x32xf32>
    %600 = tpu.matmul %599, %590, %cst_231 {dimension_numbers = #tpu.dot_dimension_numbers<[1], [0], [0], [1], [0, 0, 1, 1], [], []>} : vector<8x64xf32>, vector<64x32xf32>, vector<8x32xf32> -> vector<8x32xf32>
    %601 = arith.addf %574, %600 : vector<8x32xf32>
    %c1304 = arith.constant 1304 : index
    %c0_232 = arith.constant 0 : index
    %602 = vector.load %arg2[%c1304, %c0_232] : memref<1712x128xf32, #tpu.memory_space<vmem>>, vector<1x32xf32>
    %603 = arith.mulf %601, %601 : vector<8x32xf32>
    %cst_233 = arith.constant dense<0.000000e+00> : vector<8xf32>
    %604 = vector.multi_reduction <add>, %603, %cst_233 [1] : vector<8x32xf32> to vector<8xf32>
    %605 = vector.shape_cast %604 : vector<8xf32> to vector<8x1xf32>
    %cst_234 = arith.constant 3.200000e+01 : f32
    %606 = vector.broadcast %cst_234 : f32 to vector<8x1xf32>
    %607 = arith.divf %605, %606 : vector<8x1xf32>
    %cst_235 = arith.constant 9.99999997E-7 : f32
    %608 = vector.broadcast %cst_235 : f32 to vector<8x1xf32>
    %609 = arith.addf %607, %608 : vector<8x1xf32>
    %610 = math.rsqrt %609 : vector<8x1xf32>
    %611 = vector.broadcast %610 : vector<8x1xf32> to vector<8x32xf32>
    %612 = arith.mulf %601, %611 : vector<8x32xf32>
    %613 = vector.broadcast %602 : vector<1x32xf32> to vector<8x32xf32>
    %614 = arith.mulf %612, %613 : vector<8x32xf32>
    %c1328 = arith.constant 1328 : index
    %c0_236 = arith.constant 0 : index
    %615 = vector.load %arg2[%c1328, %c0_236] : memref<1712x128xf32, #tpu.memory_space<vmem>>, vector<32x32xf32>
    %c1360 = arith.constant 1360 : index
    %c0_237 = arith.constant 0 : index
    %616 = vector.load %arg2[%c1360, %c0_237] : memref<1712x128xf32, #tpu.memory_space<vmem>>, vector<32x32xf32>
    %c1392 = arith.constant 1392 : index
    %c0_238 = arith.constant 0 : index
    %617 = vector.load %arg2[%c1392, %c0_238] : memref<1712x128xf32, #tpu.memory_space<vmem>>, vector<32x32xf32>
    %c1424 = arith.constant 1424 : index
    %c0_239 = arith.constant 0 : index
    %618 = vector.load %arg2[%c1424, %c0_239] : memref<1712x128xf32, #tpu.memory_space<vmem>>, vector<32x32xf32>
    %cst_240 = arith.constant dense<0.000000e+00> : vector<8x32xf32>
    %619 = tpu.matmul %614, %615, %cst_240 {dimension_numbers = #tpu.dot_dimension_numbers<[1], [0], [0], [1], [0, 0, 1, 1], [], []>} : vector<8x32xf32>, vector<32x32xf32>, vector<8x32xf32> -> vector<8x32xf32>
    %620 = arith.mulf %619, %62 : vector<8x32xf32>
    %cst_241 = arith.constant dense<0.000000e+00> : vector<8x32xf32>
    %621 = tpu.matmul %619, %61, %cst_241 {dimension_numbers = #tpu.dot_dimension_numbers<[1], [0], [0], [1], [0, 0, 1, 1], [], []>} : vector<8x32xf32>, vector<32x32xf32>, vector<8x32xf32> -> vector<8x32xf32>
    %622 = arith.mulf %621, %63 : vector<8x32xf32>
    %623 = arith.addf %620, %622 : vector<8x32xf32>
    %cst_242 = arith.constant dense<0.000000e+00> : vector<8x32xf32>
    %624 = tpu.matmul %614, %616, %cst_242 {dimension_numbers = #tpu.dot_dimension_numbers<[1], [0], [0], [1], [0, 0, 1, 1], [], []>} : vector<8x32xf32>, vector<32x32xf32>, vector<8x32xf32> -> vector<8x32xf32>
    %625 = arith.mulf %624, %62 : vector<8x32xf32>
    %cst_243 = arith.constant dense<0.000000e+00> : vector<8x32xf32>
    %626 = tpu.matmul %624, %61, %cst_243 {dimension_numbers = #tpu.dot_dimension_numbers<[1], [0], [0], [1], [0, 0, 1, 1], [], []>} : vector<8x32xf32>, vector<32x32xf32>, vector<8x32xf32> -> vector<8x32xf32>
    %627 = arith.mulf %626, %63 : vector<8x32xf32>
    %628 = arith.addf %625, %627 : vector<8x32xf32>
    %cst_244 = arith.constant dense<0.000000e+00> : vector<8x32xf32>
    %629 = tpu.matmul %614, %617, %cst_244 {dimension_numbers = #tpu.dot_dimension_numbers<[1], [0], [0], [1], [0, 0, 1, 1], [], []>} : vector<8x32xf32>, vector<32x32xf32>, vector<8x32xf32> -> vector<8x32xf32>
    %630 = tpu.transpose %628, [1, 0] : vector<8x32xf32> -> vector<32x8xf32>
    %cst_245 = arith.constant dense<0.000000e+00> : vector<32x32xf32>
    %631 = tpu.matmul %630, %302, %cst_245 {dimension_numbers = #tpu.dot_dimension_numbers<[1], [0], [0], [1], [0, 0, 1, 1], [], []>} : vector<32x8xf32>, vector<8x32xf32>, vector<32x32xf32> -> vector<32x32xf32>
    %632 = arith.mulf %631, %178 : vector<32x32xf32>
    %cst_246 = arith.constant dense<0.000000e+00> : vector<8x32xf32>
    %633 = tpu.matmul %623, %632, %cst_246 {dimension_numbers = #tpu.dot_dimension_numbers<[1], [0], [0], [1], [0, 0, 1, 1], [], []>} : vector<8x32xf32>, vector<32x32xf32>, vector<8x32xf32> -> vector<8x32xf32>
    %cst_247 = arith.constant 0.353553385 : f32
    %634 = vector.broadcast %cst_247 : f32 to vector<8x32xf32>
    %635 = arith.mulf %633, %634 : vector<8x32xf32>
    %636 = arith.addf %635, %457 : vector<8x32xf32>
    %cst_248 = arith.constant dense<0xFF800000> : vector<8xf32>
    %637 = vector.multi_reduction <maximumf>, %636, %cst_248 [1] : vector<8x32xf32> to vector<8xf32>
    %638 = vector.shape_cast %637 : vector<8xf32> to vector<8x1xf32>
    %639 = vector.broadcast %638 : vector<8x1xf32> to vector<8x32xf32>
    %640 = arith.subf %636, %639 : vector<8x32xf32>
    %641 = math.exp %640 : vector<8x32xf32>
    %cst_249 = arith.constant dense<0.000000e+00> : vector<8x32xf32>
    %642 = tpu.matmul %641, %282, %cst_249 {dimension_numbers = #tpu.dot_dimension_numbers<[1], [0], [0], [1], [0, 0, 1, 1], [], []>} : vector<8x32xf32>, vector<32x32xf32>, vector<8x32xf32> -> vector<8x32xf32>
    %643 = tpu.reciprocal %642 {approx = true} : vector<8x32xf32> -> vector<8x32xf32>
    %644 = arith.mulf %641, %643 : vector<8x32xf32>
    %cst_250 = arith.constant dense<0.000000e+00> : vector<32x32xf32>
    %645 = tpu.matmul %322, %629, %cst_250 {dimension_numbers = #tpu.dot_dimension_numbers<[1], [0], [0], [1], [0, 0, 1, 1], [], []>} : vector<32x8xf32>, vector<8x32xf32>, vector<32x32xf32> -> vector<32x32xf32>
    %646 = arith.mulf %645, %230 : vector<32x32xf32>
    %cst_251 = arith.constant dense<0.000000e+00> : vector<8x32xf32>
    %647 = tpu.matmul %644, %646, %cst_251 {dimension_numbers = #tpu.dot_dimension_numbers<[1], [0], [0], [1], [0, 0, 1, 1], [], []>} : vector<8x32xf32>, vector<32x32xf32>, vector<8x32xf32> -> vector<8x32xf32>
    %cst_252 = arith.constant dense<0.000000e+00> : vector<8x32xf32>
    %648 = tpu.matmul %647, %618, %cst_252 {dimension_numbers = #tpu.dot_dimension_numbers<[1], [0], [0], [1], [0, 0, 1, 1], [], []>} : vector<8x32xf32>, vector<32x32xf32>, vector<8x32xf32> -> vector<8x32xf32>
    %649 = arith.addf %601, %648 : vector<8x32xf32>
    %c1312 = arith.constant 1312 : index
    %c0_253 = arith.constant 0 : index
    %650 = vector.load %arg2[%c1312, %c0_253] : memref<1712x128xf32, #tpu.memory_space<vmem>>, vector<1x32xf32>
    %651 = arith.mulf %649, %649 : vector<8x32xf32>
    %cst_254 = arith.constant dense<0.000000e+00> : vector<8xf32>
    %652 = vector.multi_reduction <add>, %651, %cst_254 [1] : vector<8x32xf32> to vector<8xf32>
    %653 = vector.shape_cast %652 : vector<8xf32> to vector<8x1xf32>
    %cst_255 = arith.constant 3.200000e+01 : f32
    %654 = vector.broadcast %cst_255 : f32 to vector<8x1xf32>
    %655 = arith.divf %653, %654 : vector<8x1xf32>
    %cst_256 = arith.constant 9.99999997E-7 : f32
    %656 = vector.broadcast %cst_256 : f32 to vector<8x1xf32>
    %657 = arith.addf %655, %656 : vector<8x1xf32>
    %658 = math.rsqrt %657 : vector<8x1xf32>
    %659 = vector.broadcast %658 : vector<8x1xf32> to vector<8x32xf32>
    %660 = arith.mulf %649, %659 : vector<8x32xf32>
    %661 = vector.broadcast %650 : vector<1x32xf32> to vector<8x32xf32>
    %662 = arith.mulf %660, %661 : vector<8x32xf32>
    %c1456 = arith.constant 1456 : index
    %c0_257 = arith.constant 0 : index
    %663 = vector.load %arg2[%c1456, %c0_257] : memref<1712x128xf32, #tpu.memory_space<vmem>>, vector<32x32xf32>
    %c1488 = arith.constant 1488 : index
    %c0_258 = arith.constant 0 : index
    %664 = vector.load %arg2[%c1488, %c0_258] : memref<1712x128xf32, #tpu.memory_space<vmem>>, vector<32x32xf32>
    %c1520 = arith.constant 1520 : index
    %c0_259 = arith.constant 0 : index
    %665 = vector.load %arg2[%c1520, %c0_259] : memref<1712x128xf32, #tpu.memory_space<vmem>>, vector<32x32xf32>
    %c1552 = arith.constant 1552 : index
    %c0_260 = arith.constant 0 : index
    %666 = vector.load %arg2[%c1552, %c0_260] : memref<1712x128xf32, #tpu.memory_space<vmem>>, vector<32x32xf32>
    %cst_261 = arith.constant dense<0.000000e+00> : vector<8x32xf32>
    %667 = tpu.matmul %662, %663, %cst_261 {dimension_numbers = #tpu.dot_dimension_numbers<[1], [0], [0], [1], [0, 0, 1, 1], [], []>} : vector<8x32xf32>, vector<32x32xf32>, vector<8x32xf32> -> vector<8x32xf32>
    %cst_262 = arith.constant dense<0.000000e+00> : vector<8x32xf32>
    %668 = tpu.matmul %455, %664, %cst_262 {dimension_numbers = #tpu.dot_dimension_numbers<[1], [0], [0], [1], [0, 0, 1, 1], [], []>} : vector<8x32xf32>, vector<32x32xf32>, vector<8x32xf32> -> vector<8x32xf32>
    %cst_263 = arith.constant dense<0.000000e+00> : vector<8x32xf32>
    %669 = tpu.matmul %455, %665, %cst_263 {dimension_numbers = #tpu.dot_dimension_numbers<[1], [0], [0], [1], [0, 0, 1, 1], [], []>} : vector<8x32xf32>, vector<32x32xf32>, vector<8x32xf32> -> vector<8x32xf32>
    %670 = tpu.transpose %668, [1, 0] : vector<8x32xf32> -> vector<32x8xf32>
    %cst_264 = arith.constant dense<0.000000e+00> : vector<32x32xf32>
    %671 = tpu.matmul %670, %302, %cst_264 {dimension_numbers = #tpu.dot_dimension_numbers<[1], [0], [0], [1], [0, 0, 1, 1], [], []>} : vector<32x8xf32>, vector<8x32xf32>, vector<32x32xf32> -> vector<32x32xf32>
    %672 = arith.mulf %671, %178 : vector<32x32xf32>
    %cst_265 = arith.constant dense<0.000000e+00> : vector<8x32xf32>
    %673 = tpu.matmul %667, %672, %cst_265 {dimension_numbers = #tpu.dot_dimension_numbers<[1], [0], [0], [1], [0, 0, 1, 1], [], []>} : vector<8x32xf32>, vector<32x32xf32>, vector<8x32xf32> -> vector<8x32xf32>
    %cst_266 = arith.constant 0.353553385 : f32
    %674 = vector.broadcast %cst_266 : f32 to vector<8x32xf32>
    %675 = arith.mulf %673, %674 : vector<8x32xf32>
    %cst_267 = arith.constant dense<0xFF800000> : vector<8xf32>
    %676 = vector.multi_reduction <maximumf>, %675, %cst_267 [1] : vector<8x32xf32> to vector<8xf32>
    %677 = vector.shape_cast %676 : vector<8xf32> to vector<8x1xf32>
    %678 = vector.broadcast %677 : vector<8x1xf32> to vector<8x32xf32>
    %679 = arith.subf %675, %678 : vector<8x32xf32>
    %680 = math.exp %679 : vector<8x32xf32>
    %cst_268 = arith.constant dense<0.000000e+00> : vector<8x32xf32>
    %681 = tpu.matmul %680, %282, %cst_268 {dimension_numbers = #tpu.dot_dimension_numbers<[1], [0], [0], [1], [0, 0, 1, 1], [], []>} : vector<8x32xf32>, vector<32x32xf32>, vector<8x32xf32> -> vector<8x32xf32>
    %682 = tpu.reciprocal %681 {approx = true} : vector<8x32xf32> -> vector<8x32xf32>
    %683 = arith.mulf %680, %682 : vector<8x32xf32>
    %cst_269 = arith.constant dense<0.000000e+00> : vector<32x32xf32>
    %684 = tpu.matmul %322, %669, %cst_269 {dimension_numbers = #tpu.dot_dimension_numbers<[1], [0], [0], [1], [0, 0, 1, 1], [], []>} : vector<32x8xf32>, vector<8x32xf32>, vector<32x32xf32> -> vector<32x32xf32>
    %685 = arith.mulf %684, %230 : vector<32x32xf32>
    %cst_270 = arith.constant dense<0.000000e+00> : vector<8x32xf32>
    %686 = tpu.matmul %683, %685, %cst_270 {dimension_numbers = #tpu.dot_dimension_numbers<[1], [0], [0], [1], [0, 0, 1, 1], [], []>} : vector<8x32xf32>, vector<32x32xf32>, vector<8x32xf32> -> vector<8x32xf32>
    %cst_271 = arith.constant dense<0.000000e+00> : vector<8x32xf32>
    %687 = tpu.matmul %686, %666, %cst_271 {dimension_numbers = #tpu.dot_dimension_numbers<[1], [0], [0], [1], [0, 0, 1, 1], [], []>} : vector<8x32xf32>, vector<32x32xf32>, vector<8x32xf32> -> vector<8x32xf32>
    %688 = arith.addf %649, %687 : vector<8x32xf32>
    %c1320 = arith.constant 1320 : index
    %c0_272 = arith.constant 0 : index
    %689 = vector.load %arg2[%c1320, %c0_272] : memref<1712x128xf32, #tpu.memory_space<vmem>>, vector<1x32xf32>
    %690 = arith.mulf %688, %688 : vector<8x32xf32>
    %cst_273 = arith.constant dense<0.000000e+00> : vector<8xf32>
    %691 = vector.multi_reduction <add>, %690, %cst_273 [1] : vector<8x32xf32> to vector<8xf32>
    %692 = vector.shape_cast %691 : vector<8xf32> to vector<8x1xf32>
    %cst_274 = arith.constant 3.200000e+01 : f32
    %693 = vector.broadcast %cst_274 : f32 to vector<8x1xf32>
    %694 = arith.divf %692, %693 : vector<8x1xf32>
    %cst_275 = arith.constant 9.99999997E-7 : f32
    %695 = vector.broadcast %cst_275 : f32 to vector<8x1xf32>
    %696 = arith.addf %694, %695 : vector<8x1xf32>
    %697 = math.rsqrt %696 : vector<8x1xf32>
    %698 = vector.broadcast %697 : vector<8x1xf32> to vector<8x32xf32>
    %699 = arith.mulf %688, %698 : vector<8x32xf32>
    %700 = vector.broadcast %689 : vector<1x32xf32> to vector<8x32xf32>
    %701 = arith.mulf %699, %700 : vector<8x32xf32>
    %c1584 = arith.constant 1584 : index
    %c0_276 = arith.constant 0 : index
    %702 = vector.load %arg2[%c1584, %c0_276] : memref<1712x128xf32, #tpu.memory_space<vmem>>, vector<32x64xf32>
    %c1616 = arith.constant 1616 : index
    %c0_277 = arith.constant 0 : index
    %703 = vector.load %arg2[%c1616, %c0_277] : memref<1712x128xf32, #tpu.memory_space<vmem>>, vector<32x64xf32>
    %c1648 = arith.constant 1648 : index
    %c0_278 = arith.constant 0 : index
    %704 = vector.load %arg2[%c1648, %c0_278] : memref<1712x128xf32, #tpu.memory_space<vmem>>, vector<64x32xf32>
    %cst_279 = arith.constant dense<0.000000e+00> : vector<8x64xf32>
    %705 = tpu.matmul %701, %702, %cst_279 {dimension_numbers = #tpu.dot_dimension_numbers<[1], [0], [0], [1], [0, 0, 1, 1], [], []>} : vector<8x32xf32>, vector<32x64xf32>, vector<8x64xf32> -> vector<8x64xf32>
    %cst_280 = arith.constant dense<0.000000e+00> : vector<8x64xf32>
    %706 = tpu.matmul %701, %703, %cst_280 {dimension_numbers = #tpu.dot_dimension_numbers<[1], [0], [0], [1], [0, 0, 1, 1], [], []>} : vector<8x32xf32>, vector<32x64xf32>, vector<8x64xf32> -> vector<8x64xf32>
    %707 = arith.negf %705 : vector<8x64xf32>
    %708 = math.exp %707 : vector<8x64xf32>
    %cst_281 = arith.constant 1.000000e+00 : f32
    %709 = vector.broadcast %cst_281 : f32 to vector<8x64xf32>
    %710 = arith.addf %709, %708 : vector<8x64xf32>
    %711 = arith.divf %709, %710 : vector<8x64xf32>
    %712 = arith.mulf %705, %711 : vector<8x64xf32>
    %713 = arith.mulf %712, %706 : vector<8x64xf32>
    %cst_282 = arith.constant dense<0.000000e+00> : vector<8x32xf32>
    %714 = tpu.matmul %713, %704, %cst_282 {dimension_numbers = #tpu.dot_dimension_numbers<[1], [0], [0], [1], [0, 0, 1, 1], [], []>} : vector<8x64xf32>, vector<64x32xf32>, vector<8x32xf32> -> vector<8x32xf32>
    %715 = arith.addf %688, %714 : vector<8x32xf32>
    %c328 = arith.constant 328 : index
    %c0_283 = arith.constant 0 : index
    %716 = vector.load %arg2[%c328, %c0_283] : memref<1712x128xf32, #tpu.memory_space<vmem>>, vector<1x32xf32>
    %717 = arith.mulf %715, %715 : vector<8x32xf32>
    %cst_284 = arith.constant dense<0.000000e+00> : vector<8xf32>
    %718 = vector.multi_reduction <add>, %717, %cst_284 [1] : vector<8x32xf32> to vector<8xf32>
    %719 = vector.shape_cast %718 : vector<8xf32> to vector<8x1xf32>
    %cst_285 = arith.constant 3.200000e+01 : f32
    %720 = vector.broadcast %cst_285 : f32 to vector<8x1xf32>
    %721 = arith.divf %719, %720 : vector<8x1xf32>
    %cst_286 = arith.constant 9.99999997E-7 : f32
    %722 = vector.broadcast %cst_286 : f32 to vector<8x1xf32>
    %723 = arith.addf %721, %722 : vector<8x1xf32>
    %724 = math.rsqrt %723 : vector<8x1xf32>
    %725 = vector.broadcast %724 : vector<8x1xf32> to vector<8x32xf32>
    %726 = arith.mulf %715, %725 : vector<8x32xf32>
    %727 = vector.broadcast %716 : vector<1x32xf32> to vector<8x32xf32>
    %728 = arith.mulf %726, %727 : vector<8x32xf32>
    %729 = tpu.iota {dimensions = array<i32: 1>} : vector<128x128xi32>
    %730 = vector.broadcast %68 : vector<128x1xi32> to vector<128x128xi32>
    %731 = arith.cmpi eq, %730, %729 : vector<128x128xi32>
    %cst_287 = arith.constant 1.000000e+00 : f32
    %cst_288 = arith.constant 0.000000e+00 : f32
    %732 = vector.broadcast %cst_287 : f32 to vector<128x128xf32>
    %733 = vector.broadcast %cst_288 : f32 to vector<128x128xf32>
    %734 = arith.select %731, %732, %733 : vector<128x128xi1>, vector<128x128xf32>
    %c128 = arith.constant 128 : index
    %c0_289 = arith.constant 0 : index
    %735 = vector.load %arg2[%c128, %c0_289] : memref<1712x128xf32, #tpu.memory_space<vmem>>, vector<128x32xf32>
    %cst_290 = arith.constant dense<0.000000e+00> : vector<128x32xf32>
    %736 = tpu.matmul %734, %735, %cst_290 {dimension_numbers = #tpu.dot_dimension_numbers<[1], [0], [0], [1], [0, 0, 1, 1], [], []>} : vector<128x128xf32>, vector<128x32xf32>, vector<128x32xf32> -> vector<128x32xf32>
    %737 = tpu.iota {dimensions = array<i32: 0>} : vector<128x8xi32>
    %738 = tpu.iota {dimensions = array<i32: 1>} : vector<128x8xi32>
    %c16_i32_291 = arith.constant 16 : i32
    %739 = vector.broadcast %c16_i32_291 : i32 to vector<128x8xi32>
    %740 = arith.muli %738, %739 : vector<128x8xi32>
    %741 = arith.cmpi sge, %737, %740 : vector<128x8xi32>
    %c1_i32 = arith.constant 1 : i32
    %742 = vector.broadcast %c1_i32 : i32 to vector<128x8xi32>
    %743 = arith.addi %738, %742 : vector<128x8xi32>
    %c16_i32_292 = arith.constant 16 : i32
    %744 = vector.broadcast %c16_i32_292 : i32 to vector<128x8xi32>
    %745 = arith.muli %743, %744 : vector<128x8xi32>
    %746 = arith.cmpi slt, %737, %745 : vector<128x8xi32>
    %747 = arith.andi %741, %746 : vector<128x8xi1>
    %cst_293 = arith.constant 1.000000e+00 : f32
    %cst_294 = arith.constant 0.000000e+00 : f32
    %748 = vector.broadcast %cst_293 : f32 to vector<128x8xf32>
    %749 = vector.broadcast %cst_294 : f32 to vector<128x8xf32>
    %750 = arith.select %747, %748, %749 : vector<128x8xi1>, vector<128x8xf32>
    %cst_295 = arith.constant dense<0.000000e+00> : vector<128x32xf32>
    %751 = tpu.matmul %750, %728, %cst_295 {dimension_numbers = #tpu.dot_dimension_numbers<[1], [0], [0], [1], [0, 0, 1, 1], [], []>} : vector<128x8xf32>, vector<8x32xf32>, vector<128x32xf32> -> vector<128x32xf32>
    %752 = arith.addf %736, %751 : vector<128x32xf32>
    %c256 = arith.constant 256 : index
    %c0_296 = arith.constant 0 : index
    %753 = vector.load %arg2[%c256, %c0_296] : memref<1712x128xf32, #tpu.memory_space<vmem>>, vector<32x128xf32>
    %cst_297 = arith.constant dense<0.000000e+00> : vector<128x128xf32>
    %754 = tpu.matmul %752, %753, %cst_297 {dimension_numbers = #tpu.dot_dimension_numbers<[1], [0], [0], [1], [0, 0, 1, 1], [], []>} : vector<128x32xf32>, vector<32x128xf32>, vector<128x128xf32> -> vector<128x128xf32>
    %c0_298 = arith.constant 0 : index
    %c0_299 = arith.constant 0 : index
    %755 = vector.load %arg3[%c0_298, %c0_299] : memref<128x128xf32, #tpu.memory_space<vmem>>, vector<128x128xf32>
    tpu.vector_store %arg3[%c0_298, %c0_299], %754 {strides = array<i32>} : memref<128x128xf32, #tpu.memory_space<vmem>>, vector<128x128xf32>,
    return
  }
}

</mosaic_0001>

<bundles_post_ra>
// kernel: forward.1
= control target key start
LH: loop header
LB: loop body
LE: loop exit
PB: predicated region body
PF: predicated region fallthrough
CT: control target
= control target key end

     0   :  { %8 = vsyncpa [#allocation3], 0  ;;  %s4097_s15 = smov [#allocation2]   ;;  %s4098_s17 = smov 128   ;;  %s5140_s0 = inlined_call_operand.vmem [shape: s32[288,1], index: 0, kind: input, shape index: {}]   ;;  %s5141_s1 = inlined_call_operand.vmem [shape: f32[8,8], index: 1, kind: input, shape index: {}]   ;;  %s5142_s2 = inlined_call_operand.hbm [shape: f32[1712,128], index: 2, kind: input, shape index: {}]   ;;  %s5143_s3 = inlined_call_operand.vmem [shape: f32[128,128], index: 3, kind: output, shape index: {}]  }
   0x1   :  { %s17_s14 = sshll.u32 %s5142_s2, 4  ;;  %s19_s16 = sshll.u32 %s4097_s15, 4  ;;  %s18_s14 = int_to_ptr.hbm [resolvable:$true] %s17_s14  ;;  %s20_s16 = int_to_ptr.vmem [resolvable:$true] %s19_s16 }
   0x2   :  { %s4099_s18 = smov 8  }
   0x3   :  { %25 = dma.hbm_to_vmem [thread:$0]  %s18_s14, 27392, %s20_s16, [#allocation3], %s4098_s17, %s4098_s17, %s4099_s18  }
   0x4   :  { %4095 = dma.done.wait [#allocation3], 27392  }
   0x5   :  { %4096 = vsyncadd [#allocation3], 4294939904  ;;  %v4100_v0 = vmov 0   ;;  %v186_v1 = vld [vmem:[%s5140_s0 + $0x10] sm:$0xff]  ;;  %v184_v2 = vld [vmem:[%s5140_s0] sm:$0xff]  ;;  %v30_v27 = vlaneseq  ;;  %v4101_v30 = vmov 1.0  }
   0x6   :  { %3977 = vset.pattern.permute.xlu1 %v4100_v0  ;;  %3976 = vset.pattern.permute.xlu0 %v4100_v0  ;;  %v188_v3 = vld [vmem:[%s5140_s0 + $0x20] sm:$0xff]  ;;  %v179_v4 = vld [vmem:[#allocation2 + $0x78] sm:$0xff]  ;;  %v178_v5 = vld [vmem:[#allocation2 + $0x70] sm:$0xff]  ;;  %v4102_v57 = vmov 0.33333334   ;;  %vm5144_vm15 = vcmask 654336  }
   0x7   :  { %3978 = vset.pattern.permute.xlu2 %v4100_v0  ;;  %227 = vperm.xlu1 %3977, %v186_v1   ;;  %v177_v6 = vld [vmem:[#allocation2 + $0x68] sm:$0xff]  ;;  %v187_v7 = vld [vmem:[%s5140_s0 + $0x18] sm:$0xff]  ;;  %v176_v10 = vld [vmem:[#allocation2 + $0x60] sm:$0xff]  ;;  %v4182_v28 = vand.u32 127, %v30_v27  ;;  %v4204_v52 = vshrl.u32 %v30_v27, 7 }
   0x8   :  { %221 = vperm.xlu0 %3976, %v184_v2   ;;  %233 = vperm.xlu2 %3978, %v188_v3   ;;  %v185_v8 = vld [vmem:[%s5140_s0 + $0x8] sm:$0xff]  ;;  %v175_v11 = vld [vmem:[#allocation2 + $0x58] sm:$0xff]  ;;  %v174_v12 = vld [vmem:[#allocation2 + $0x50] sm:$0xff]  ;;  %v4103_v2 = vmov 32.0  }
   0x9   :  { %270 = vmatpush.msra.mxu0 %v179_v4  ;;  %v189_v9 = vld [vmem:[%s5140_s0 + $0x28] sm:$0xff]  ;;  %v191_v14 = vld [vmem:[%s5140_s0 + $0x38] sm:$0xff]  ;;  %v190_v15 = vld [vmem:[%s5140_s0 + $0x30] sm:$0xff]  ;;  %v317_v54 = vmul.u32 10, %v4204_v52  ;;  %3991 = vrcp.f32 %v4103_v2 }
   0xa   :  { %v173_v13 = vld [vmem:[#allocation2 + $0x48] sm:$0xff]  ;;  %v172_v16 = vld [vmem:[#allocation2 + $0x40] sm:$0xff]  ;;  %v4155_v18 = vld [vmem:[#allocation2 + $0x38] sm:$0xff] }
   0xb   :  { %271 = vmatpush.msra.mxu0 %v178_v5  ;;  %v192_v17 = vld [vmem:[%s5140_s0 + $0x40] sm:$0xff]  ;;  %v4157_v19 = vld [vmem:[#allocation2 + $0x30] sm:$0xff]  ;;  %v4160_v20 = vld [vmem:[#allocation2 + $0x28] sm:$0xff]  ;;  %v318_v55 = vsub.s32 %v4182_v28, %v317_v54  ;;  %v324_v56 = vadd.s32 10, %v317_v54  ;;  %vm323_vm12 = vcmp.ge.s32.totalorder %v4182_v28, %v317_v54 }
   0xc   :  { %v193_v21 = vld [vmem:[%s5140_s0 + $0x48] sm:$0xff]  ;;  %v4166_v22 = vld [vmem:[#allocation2 + $0x20] sm:$0xff]  ;;  %v4169_v23 = vld [vmem:[#allocation2 + $0x18] sm:$0xff] }
   0xd   :  { %272 = vmatpush.msra.mxu0 %v177_v6  ;;  %v4172_v24 = vld [vmem:[#allocation2 + $0x10] sm:$0xff]  ;;  %v4175_v25 = vld [vmem:[#allocation2 + $0x8] sm:$0xff]  ;;  %v4179_v26 = vld [vmem:[#allocation2] sm:$0xff]  ;;  %vm320_vm10 = vcmp.lt.s32.totalorder %v318_v55, 7  ;;  %vm319_vm11 = vcmp.lt.s32.totalorder %v318_v55, 3  ;;  %vm325_vm13 = vcmp.lt.s32.totalorder %v4182_v28, %v324_v56 }
   0xe   :  { %v183_v48 = vld [vmem:[#allocation2 + $0x138] sm:$0xff]  ;;  %v182_v49 = vld [vmem:[#allocation2 + $0x130] sm:$0xff]  ;;  %v181_v50 = vld [vmem:[#allocation2 + $0x128] sm:$0xff]  ;;  %v321_v58 = vsel %vm320_vm10, 0.25, %v4102_v57 }
   0xf   :  { %230 = vperm.xlu1 %3977, %v187_v7   ;;  %273 = vmatpush.msra.mxu0 %v176_v10  ;;  %v322_v59 = vsel %vm319_vm11, 0.33333334, %v321_v58  ;;  %vm326_vm14 = vmand %vm323_vm12, %vm325_vm13  ;;  %v180_v61 = vld [vmem:[#allocation2 + $0x120] sm:$0xff]  ;;  %v3992_v3 = vpop.eup %3991  ;;  %v406_v6 = vld [vmem:[#allocation2 + $0x188] sm:$0xff]  ;;  %v137_v58 = vadd.s32 4, %v4204_v52 }
  0x10   :  { %224 = vperm.xlu0 %3976, %v185_v8   ;;  %236 = vperm.xlu2 %3978, %v189_v9   ;;  %v4210_v60 = vsel %vm326_vm14, %v322_v59, 0.0  ;;  %v382_v4 = vmul.f32 32.0, %v3992_v3  ;;  %v410_v7 = vld [vmem:[#allocation2 + $0x1a8] sm:$0xff]  ;;  %v405_v8 = vld [vmem:[#allocation2 + $0x180] sm:$0xff]  ;;  %vm71_vm14 = vcmp.ge.s32.totalorder %v4182_v28, 8  ;;  %v4345_v2 = vld [vmem:[#allocation2 + $0x150] sm:$0xff] }
  0x11   :  { %274 = vmatpush.msra.mxu0 %v175_v11  ;;  %368 = vmatpush.msra.mxu2 %v183_v48  ;;  %v409_v9 = vld [vmem:[#allocation2 + $0x1a0] sm:$0xff]  ;;  %v404_v11 = vld [vmem:[#allocation2 + $0x178] sm:$0xff] }
  0x12   :  { %v383_v5 = vsub.f32 1.0, %v382_v4  ;;  %480 = vmatpush.msra.mxu3 %v410_v7  ;;  %v3979_v54 = vld [vmem:[#allocation2 + $0x160] ss:$0 sm:$0xff] }
  0x13   :  { %275 = vmatpush.msra.mxu0 %v174_v12  ;;  %369 = vmatpush.msra.mxu2 %v182_v49  ;;  %v408_v12 = vld [vmem:[#allocation2 + $0x198] sm:$0xff] }
  0x14   :  { %v384_v10 = vmul.f32 %v3992_v3, %v383_v5  ;;  %481 = vmatpush.msra.mxu3 %v409_v9 }
  0x15   :  { %276 = vmatpush.msra.mxu0 %v173_v13  ;;  %370 = vmatpush.msra.mxu2 %v181_v50  ;;  %v403_v13 = vld [vmem:[#allocation2 + $0x170] sm:$0xff] }
  0x16   :  { %482 = vmatpush.msra.mxu3 %v408_v12 }
  0x17   :  { %242 = vperm.xlu1 %3977, %v191_v14   ;;  %277 = vmatpush.msra.mxu0 %v172_v16  ;;  %v407_v14 = vld [vmem:[#allocation2 + $0x190] sm:$0xff]  ;;  %v414_v16 = vld [vmem:[#allocation2 + $0x1c8] sm:$0xff] }
  0x18   :  { %239 = vperm.xlu0 %3976, %v190_v15   ;;  %245 = vperm.xlu2 %3978, %v192_v17   ;;  %v385_v15 = vadd.f32 %v3992_v3, %v384_v10  ;;  %v413_v17 = vld [vmem:[#allocation2 + $0x1c0] sm:$0xff] }
  0x19   :  { %278 = vmatpush.msra.mxu0 %v4155_v18  ;;  %371 = vmatpush.msra.mxu2 %v180_v61 }
  0x1a   :  { %483 = vmatpush.msra.mxu3 %v407_v14 }
  0x1b   :  { %279 = vmatpush.msra.mxu0 %v4157_v19 }
  0x1c   :  { %526 = vmatpush.msrb.mxu3 %v414_v16 }
  0x1d   :  { %280 = vmatpush.msra.mxu0 %v4160_v20 }
  0x1e   :  { %527 = vmatpush.msrb.mxu3 %v413_v17 }
  0x1f   :  { %281 = vmatpush.msra.mxu0 %v4166_v22 }
  0x20   :  { %248 = vperm.xlu0 %3976, %v193_v21   ;;  %v412_v21 = vld [vmem:[#allocation2 + $0x1b8] sm:$0xff] }
  0x21   :  { %282 = vmatpush.msra.mxu0 %v4169_v23  ;;  %528 = vmatpush.msrb.mxu3 %v412_v21 }
  0x23   :  { %283 = vmatpush.msra.mxu0 %v4172_v24 }
  0x25   :  { %284 = vmatpush.msra.mxu0 %v4175_v25 }
  0x27   :  { %285 = vmatpush.msra.mxu0 %v4179_v26 }
  0x62   :  { %v234_v34 = vpop.permute.xlu2 %233 }
  0x63   :  { %vm254_vm4 = vcmp.eq.s32.totalorder %v234_v34, %v4182_v28  ;;  %v4224_v34 = vadd.s32 24, %v4204_v52 }
  0x6a   :  { %v237_v35 = vpop.permute.xlu2 %236 }
  0x6b   :  { %vm255_vm5 = vcmp.eq.s32.totalorder %v237_v35, %v4182_v28  ;;  %v145_v35 = vadd.s32 4, %v4182_v28 }
  0x72   :  { %v246_v38 = vpop.permute.xlu2 %245 }
  0x73   :  { %vm258_vm8 = vcmp.eq.s32.totalorder %v246_v38, %v4182_v28  ;;  %v4236_v38 = vadd.s32 8, %v4204_v52 }
  0x79   :  { %v228_v32 = vpop.permute.xlu1 %227 }
  0x7a   :  { %v222_v29 = vpop.permute.xlu0 %221  ;;  %vm252_vm2 = vcmp.eq.s32.totalorder %v228_v32, %v4182_v28 }
  0x7b   :  { %vm250_vm0 = vcmp.eq.s32.totalorder %v222_v29, %v4182_v28  ;;  %v411_v29 = vld [vmem:[#allocation2 + $0x1b0] sm:$0xff] }
  0x7c   :  { %3714 = vmatmul.msk.f32.vlgmr.msra.gmra.mxu0 %vm250_vm0, %v4101_v30  ;;  %vm5146_vm0 = vcmask 261120   ;;  %529 = vmatpush.msrb.mxu3 %v411_v29 }
  0x81   :  { %v231_v33 = vpop.permute.xlu1 %230 }
  0x82   :  { %v225_v31 = vpop.permute.xlu0 %224  ;;  %vm253_vm3 = vcmp.eq.s32.totalorder %v231_v33, %v4182_v28 }
  0x83   :  { %vm251_vm1 = vcmp.eq.s32.totalorder %v225_v31, %v4182_v28 }
  0x84   :  { %3715 = vmatmul.msk.f32.gmra.mxu0 %vm251_vm1, %v4101_v30  ;;  %vm386_vm1 = vweird.f32 %v3992_v3 }
  0x85   :  { %v4220_v27 = vsel %vm386_vm1, %v3992_v3, %v385_v15  ;;  %vm76_vm1 = vcmp.lt.s32.totalorder %v4182_v28, 16  ;;  %v4347_v3 = vld [vmem:[#allocation2 + $0x158] sm:$0xff]  ;;  %v4104_v15 = vmov 0.0  }
  0x89   :  { %v243_v37 = vpop.permute.xlu1 %242 }
  0x8a   :  { %v240_v36 = vpop.permute.xlu0 %239  ;;  %vm257_vm7 = vcmp.eq.s32.totalorder %v243_v37, %v4182_v28  ;;  %v140_v37 = vadd.s32 4, %v4224_v34 }
  0x8b   :  { %vm256_vm6 = vcmp.eq.s32.totalorder %v240_v36, %v4182_v28  ;;  %v4230_v36 = vadd.s32 16, %v4204_v52 }
  0x8c   :  { %3716 = vmatmul.msk.f32.gmra.mxu0 %vm252_vm2, %v4101_v30  ;;  %vm123_vm2 = vcmp.ge.s32.totalorder %v4182_v28, 24 }
  0x8d   :  { %vm148_vm10 = vcmp.eq.s32.totalorder %v4230_v36, %v145_v35 }
  0x92   :  { %v249_v39 = vpop.permute.xlu0 %248 }
  0x93   :  { %vm259_vm9 = vcmp.eq.s32.totalorder %v249_v39, %v4182_v28 }
  0x94   :  { %3717 = vmatmul.msk.f32.gmra.mxu0 %vm253_vm3, %v4101_v30  ;;  %vm128_vm3 = vcmp.lt.s32.totalorder %v4182_v28, 32 }
  0x9c   :  { %3718 = vmatmul.msk.f32.gmra.mxu0 %vm254_vm4, %v4101_v30  ;;  %vm97_vm4 = vcmp.ge.s32.totalorder %v4182_v28, 16 }
  0xa4   :  { %3719 = vmatmul.msk.f32.gmra.mxu0 %vm255_vm5, %v4101_v30  ;;  %vm102_vm5 = vcmp.lt.s32.totalorder %v4182_v28, 24 }
  0xac   :  { %3720 = vmatmul.msk.f32.gmra.mxu0 %vm256_vm6, %v4101_v30  ;;  %vm4238_vm6 = vmand %vm123_vm2, %vm128_vm3 }
  0xad   :  { %v4358_v16 = vsel %vm4238_vm6, 1.0, %v4104_v15 }
  0xb4   :  { %3721 = vmatmul.msk.f32.gmra.mxu0 %vm257_vm7, %v4101_v30  ;;  %vm149_vm7 = vcmp.eq.s32.totalorder %v4224_v34, %v145_v35 }
  0xbc   :  { %3722 = vmatmul.msk.f32.gmra.mxu0 %vm258_vm8, %v4101_v30  ;;  %vm144_vm8 = vcmp.eq.s32.totalorder %v4182_v28, %v140_v37 }
  0xbd   :  { %vm153_vm11 = vmor %vm144_vm8, %vm149_vm7 }
  0xbe   :  { %vm4254_vm13 = vmand %vm4238_vm6, %vm153_vm11 }
  0xbf   :  { %3727 = vmatpush.msk.msrb.mxu2 %vm4254_vm13, %v4101_v30  ;;  %vm4274_vm7 = vmand %vm71_vm14, %vm76_vm1  ;;  %vm141_vm1 = vcmp.eq.s32.totalorder %v4182_v28, %v137_v58 }
  0xc4   :  { %3723 = vmatmul.msk.f32.gmra.mxu0 %vm259_vm9, %v4101_v30  ;;  %vm4245_vm9 = vmand %vm97_vm4, %vm102_vm5  ;;  %vm147_vm5 = vcmp.eq.s32.totalorder %v4236_v38, %v145_v35 }
  0xc5   :  { %v4363_v17 = vsel %vm4245_vm9, 1.0, %v4104_v15 }
  0xf9   :  { %v287_v40 = vpop.f32.mrf.mxu0 }
 0x101   :  { %v290_v41 = vpop.f32.mrf.mxu0 }
 0x109   :  { %v293_v42 = vpop.f32.mrf.mxu0 }
 0x111   :  { %v296_v43 = vpop.f32.mrf.mxu0 }
 0x119   :  { %v299_v44 = vpop.f32.mrf.mxu0 }
 0x121   :  { %v302_v45 = vpop.f32.mrf.mxu0 }
 0x129   :  { %v305_v46 = vpop.f32.mrf.mxu0 }
 0x131   :  { %v308_v47 = vpop.f32.mrf.mxu0 }
 0x139   :  { %v311_v51 = vpop.f32.mrf.mxu0 }
 0x141   :  { %v314_v53 = vpop.f32.mrf.mxu0 }
 0x142   :  { %338 = vmatpush.msra.mxu1 %v314_v53 }
 0x144   :  { %339 = vmatpush.msra.mxu1 %v311_v51 }
 0x146   :  { %340 = vmatpush.msra.mxu1 %v308_v47  ;;  %v5163_v47 = vmov 0 }
 0x147   :  { %v5164_v47 = vsel %vm4274_vm7, 4294967295, %v5163_v47 }
 0x148   :  { %341 = vmatpush.msra.mxu1 %v305_v46 }
 0x14a   :  { %342 = vmatpush.msra.mxu1 %v302_v45 }
 0x14c   :  { %343 = vmatpush.msra.mxu1 %v299_v44 }
 0x14e   :  { %344 = vmatpush.msra.mxu1 %v296_v43 }
 0x150   :  { %345 = vmatpush.msra.mxu1 %v293_v42  ;;  %v138_v42 = vadd.s32 4, %v4236_v38 }
 0x152   :  { %346 = vmatpush.msra.mxu1 %v290_v41  ;;  %v5157_v41 = vmov 0  ;;  %vm142_vm4 = vcmp.eq.s32.totalorder %v4182_v28, %v138_v42 }
 0x153   :  { %v5158_v41 = vsel %vm4245_vm9, 4294967295, %v5157_v41  ;;  %vm151_vm8 = vmor %vm142_vm4, %vm147_vm5  ;;  %vm5145_vm4 = vcmp.lt.s32.totalorder %v4182_v28, 8 }
 0x154   :  { %347 = vmatpush.msra.mxu1 %v287_v40  ;;  %v139_v40 = vadd.s32 4, %v4230_v36 }
 0x155   :  { %3724 = vmatmul.msk.f32.vlgmr.msra.gmra.mxu1 %vm5144_vm15, %v4210_v60 }
 0x156   :  { %434 = vmatpush.msrb.mxu1 %v406_v6  ;;  %vm143_vm12 = vcmp.eq.s32.totalorder %v4182_v28, %v139_v40 }
 0x157   :  { %vm152_vm2 = vmor %vm143_vm12, %vm148_vm10 }
 0x158   :  { %435 = vmatpush.msrb.mxu1 %v405_v8  ;;  %vm4265_vm3 = vmand %vm4245_vm9, %vm152_vm2  ;;  %vm146_vm2 = vcmp.eq.s32.totalorder %v4204_v52, %v145_v35  ;;  %v4376_v35 = vsel %vm5145_vm4, 1.0, %v4104_v15 }
 0x159   :  { %3728 = vmatpush.msk.msrb.mxu2 %vm4265_vm3, %v4101_v30  ;;  %vm4280_vm10 = vmand %vm4274_vm7, %vm151_vm8 }
 0x15a   :  { %436 = vmatpush.msrb.mxu1 %v404_v11  ;;  %vm150_vm5 = vmor %vm141_vm1, %vm146_vm2  ;;  %vm543_vm1 = vcmp.eq.s32.totalorder %v4182_v28, %v4224_v34 }
 0x15b   :  { %3729 = vmatpush.msk.msrb.mxu2 %vm4280_vm10, %v4101_v30  ;;  %vm4306_vm8 = vmand %vm5145_vm4, %vm150_vm5 }
 0x15c   :  { %437 = vmatpush.msrb.mxu1 %v403_v13 }
 0x15d   :  { %3730 = vmatpush.msk.msrb.mxu2 %vm4306_vm8, %v4101_v30 }
 0x1d2   :  { %v349_v62 = vpop.f32.mrf.mxu1 }
 0x1d3   :  { %3725 = vmatmul.msk.f32.vlgmr.msra.gmra.mxu2 %vm5146_vm0, %v349_v62 }
 0x1d4   :  { %3733 = vmatpush.msk.msra.mxu2 %vm4254_vm13, %v4101_v30 }
 0x1d6   :  { %3734 = vmatpush.msk.msra.mxu2 %vm4265_vm3, %v4101_v30 }
 0x1d8   :  { %3735 = vmatpush.msk.msra.mxu2 %vm4280_vm10, %v4101_v30 }
 0x1da   :  { %3736 = vmatpush.msk.msra.mxu2 %vm4306_vm8, %v4101_v30 }
 0x256   :  { %v4215_v63 = vpop.f32.mrf.mxu2 }
 0x257   :  { %v377_v0 = vmul.f32 %v4215_v63, %v4215_v63 }
 0x259   :  { %v378_v1 = vsel %vm5146_vm0, %v377_v0, 0.0  ;;  %v5169_v0 = vmov 0 }
 0x25a   :  { %379 = vadd.xlane.f32.xlu1 %v378_v1 }
 0x2cd   :  { %v380_v31 = vpop.xlane.xlu1 %379 }
 0x2ce   :  { %v388_v32 = vmul.f32 %v4220_v27, %v380_v31  ;;  %v4369_v31 = vsel %vm4274_vm7, 1.0, %v4104_v15 }
 0x2d0   :  { %v389_v33 = vadd.f32 1e-06, %v388_v32 }
 0x2d2   :  { %3993 = vrsqrt.f32 %v389_v33  ;;  %vm396_vm12 = vweird.f32 %v389_v33 }
 0x2d8   :  { %v3994_v44 = vpop.eup %3993 }
 0x2d9   :  { %v391_v46 = vmul.f32 %v3994_v44, %v389_v33  ;;  %vm397_vm11 = vweird.f32 %v3994_v44 }
 0x2da   :  { %vm398_vm14 = vmor %vm396_vm12, %vm397_vm11  ;;  %vm538_vm11 = vcmp.eq.s32.totalorder %v4182_v28, %v4204_v52  ;;  %vm539_vm12 = vcmp.eq.s32.totalorder %v4182_v28, %v4236_v38 }
 0x2db   :  { %v392_v48 = vmul.f32 %v3994_v44, %v391_v46  ;;  %vm540_vm2 = vmor %vm538_vm11, %vm539_vm12  ;;  %vm5154_vm11 = vcmask 64512   ;;  %vm546_vm12 = vcmp.eq.s32.totalorder %v4204_v52, %v4182_v28 }
 0x2dd   :  { %v393_v50 = vmul.f32 0.5, %v392_v48  ;;  %v550_v48 = vadd.s32 8, %v4182_v28 }
 0x2df   :  { %v394_v51 = vsub.f32 1.5, %v393_v50  ;;  %v4386_v50 = vsel %vm546_vm12, 1.0, %v4104_v15 }
 0x2e1   :  { %v395_v53 = vmul.f32 %v3994_v44, %v394_v51  ;;  %v559_v51 = vadd.s32 16, %v4182_v28 }
 0x2e3   :  { %v399_v55 = vsel %vm398_vm14, %v3994_v44, %v395_v53  ;;  %vm541_vm14 = vcmp.eq.s32.totalorder %v4182_v28, %v4230_v36 }
 0x2e4   :  { %v400_v56 = vmul.f32 %v399_v55, %v4215_v63  ;;  %vm542_vm5 = vmor %vm540_vm2, %vm541_vm14  ;;  %vm547_vm14 = vcmp.eq.s32.totalorder %v4236_v38, %v4182_v28 }
 0x2e5   :  { %vm4338_vm15 = vmor %vm542_vm5, %vm543_vm1  ;;  %vm552_vm1 = vcmp.eq.s32.totalorder %v4236_v38, %v550_v48  ;;  %vm548_vm5 = vcmp.eq.s32.totalorder %v4230_v36, %v4182_v28 }
 0x2e6   :  { %v402_v57 = vmul.f32 %v3979_v54, %v400_v56  ;;  %v5170_v0 = vsel %vm4338_vm15, 4294967295, %v5169_v0  ;;  %3739 = vmatpush.msk.msrb.mxu0 %vm4338_vm15, %v4101_v30  ;;  %vm556_vm2 = vmor %vm547_vm14, %vm552_vm1  ;;  %vm549_vm15 = vcmp.eq.s32.totalorder %v4224_v34, %v4182_v28  ;;  %vm554_vm14 = vcmp.eq.s32.totalorder %v4224_v34, %v550_v48 }
 0x2e7   :  { %v4398_v53 = vsel %vm556_vm2, 1.0, %v4104_v15  ;;  %v568_v54 = vadd.s32 24, %v4182_v28 }
 0x2e8   :  { %3726 = vmatmul.msk.f32.vlgmr.msrb.gmra.mxu1 %vm5146_vm0, %v402_v57  ;;  %3732 = vmatmul.msk.f32.vlgmr.msra.gmra.mxu3 %vm5146_vm0, %v402_v57 }
 0x2e9   :  { %3745 = vmatpush.msk.msra.mxu3 %vm4238_vm6, %v4101_v30  ;;  %vm572_vm2 = vcmp.eq.s32.totalorder %v4224_v34, %v568_v54  ;;  %v829_v54 = vld [vmem:[#allocation2 + $0x208] sm:$0xff] }
 0x2eb   :  { %3746 = vmatpush.msk.msra.mxu3 %vm4245_vm9, %v4101_v30  ;;  %vm563_vm9 = vcmp.eq.s32.totalorder %v4224_v34, %v559_v51 }
 0x2ed   :  { %3747 = vmatpush.msk.msra.mxu3 %vm4274_vm7, %v4101_v30  ;;  %vm558_vm7 = vmor %vm549_vm15, %vm554_vm14  ;;  %vm5171_vm15 = vcmask 261120  }
 0x2ef   :  { %3748 = vmatpush.msk.msra.mxu3 %vm5145_vm4, %v4101_v30  ;;  %vm553_vm4 = vcmp.eq.s32.totalorder %v4230_v36, %v550_v48 }
 0x2f0   :  { %3738 = vmatmul.msk.f32.vlgmr.msrb.gmra.mxu3 %vm5146_vm0, %v402_v57  ;;  %vm557_vm12 = vmor %vm548_vm5, %vm553_vm4 }
 0x2f1   :  { %vm567_vm4 = vmor %vm558_vm7, %vm563_vm9 }
 0x2f2   :  { %vm576_vm5 = vmor %vm567_vm4, %vm572_vm2 }
 0x2f3   :  { %v4415_v56 = vsel %vm576_vm5, 1.0, %v4104_v15 }
 0x365   :  { %v439_v61 = vpop.f32.mrf.mxu1 }
 0x366   :  { %3731 = vmatmul.msk.f32.vlgmr.msrb.gmra.mxu2 %vm5146_vm0, %v439_v61  ;;  %v442_v40 = vmul.f32 %v439_v61, %v4345_v2 }
 0x36b   :  { %v485_v62 = vpop.f32.mrf.mxu3 }
 0x36c   :  { %v488_v5 = vmul.f32 %v485_v62, %v4345_v2 }
 0x36e   :  { %3737 = vmatmul.msk.f32.vlgmr.msra.gmra.mxu2 %vm5146_vm0, %v485_v62 }
 0x373   :  { %v531_v46 = vpop.f32.mrf.mxu3 }
 0x3e9   :  { %v463_v1 = vpop.f32.mrf.mxu2 }
 0x3ea   :  { %v466_v33 = vmul.f32 %v463_v1, %v4347_v3 }
 0x3ec   :  { %v467_v44 = vadd.f32 %v466_v33, %v442_v40  ;;  %v415_v40 = vld [vmem:[#allocation2 + $0x1d0] sm:$0xff] }
 0x3f1   :  { %v509_v4 = vpop.f32.mrf.mxu2 }
 0x3f2   :  { %v512_v6 = vmul.f32 %v509_v4, %v4347_v3 }
 0x3f4   :  { %v513_v7 = vadd.f32 %v512_v6, %v488_v5 }
 0x3f6   :  { %581 = vxpose.xlu2.b32.start.end [1/1] (short) (narrow) %v513_v7, 32 }
 0x48f   :  { %v597_v8 = vpop.trf.xlu2 }
 0x490   :  { %3740 = vmatmul.msk.f32.vlgmr.msrb.gmra.mxu0 %vm5154_vm11, %v597_v8 }
 0x497   :  { %v598_v9 = vpop.trf.xlu2 }
 0x498   :  { %3741 = vmatmul.msk.f32.gmra.mxu0 %vm5154_vm11, %v598_v9 }
 0x49f   :  { %v599_v10 = vpop.trf.xlu2 }
 0x4a0   :  { %3742 = vmatmul.msk.f32.gmra.mxu0 %vm5154_vm11, %v599_v10 }
 0x4a7   :  { %v600_v11 = vpop.trf.xlu2 }
 0x4a8   :  { %3743 = vmatmul.msk.f32.gmra.mxu0 %vm5154_vm11, %v600_v11 }
 0x50d   :  { %v643_v12 = vpop.f32.mrf.mxu0 }
 0x50e   :  { %v655_v42 = vmul.f32 %v643_v12, %v4376_v35 }
 0x515   :  { %v646_v13 = vpop.f32.mrf.mxu0 }
 0x516   :  { %v656_v37 = vmul.f32 %v646_v13, %v4369_v31 }
 0x51d   :  { %v649_v14 = vpop.f32.mrf.mxu0 }
 0x51e   :  { %v657_v32 = vmul.f32 %v649_v14, %v4363_v17  ;;  %v418_v14 = vld [vmem:[#allocation2 + $0x1e8] sm:$0xff] }
 0x525   :  { %v652_v21 = vpop.f32.mrf.mxu0 }
 0x526   :  { %v658_v29 = vmul.f32 %v652_v21, %v4358_v16  ;;  %v417_v21 = vld [vmem:[#allocation2 + $0x1e0] sm:$0xff] }
 0x528   :  { %674 = vmatpush.msrb.mxu2 %v658_v29  ;;  %v416_v29 = vld [vmem:[#allocation2 + $0x1d8] sm:$0xff] }
 0x52a   :  { %675 = vmatpush.msrb.mxu2 %v657_v32 }
 0x52c   :  { %676 = vmatpush.msrb.mxu2 %v656_v37 }
 0x52e   :  { %677 = vmatpush.msrb.mxu2 %v655_v42 }
 0x52f   :  { %3744 = vmatmul.msk.f32.vlgmr.msrb.gmra.mxu2 %vm5146_vm0, %v467_v44  ;;  %vm562_vm0 = vcmp.eq.s32.totalorder %v4230_v36, %v559_v51 }
 0x530   :  { %741 = vmatpush.msra.mxu2 %v531_v46  ;;  %vm566_vm1 = vmor %vm557_vm12, %vm562_vm0 }
 0x531   :  { %v4409_v55 = vsel %vm566_vm1, 1.0, %v4104_v15  ;;  %vm5172_vm0 = vmmov %vm5171_vm15 }
 0x532   :  { %vm5173_vm9 = vmmov %vm5172_vm0 }
 0x533   :  { %vm5174_vm7 = vmmov %vm5172_vm0 }
 0x534   :  { %vm5175_vm12 = vmmov %vm5172_vm0 }
 0x535   :  { %vm5176_vm2 = vmmov %vm5172_vm0 }
 0x536   :  { %vm5177_vm5 = vmmov %vm5172_vm0 }
 0x537   :  { %3750 = vmatmul.msk.f32.vlgmr.msra.gmra.mxu2 %vm5154_vm11, %v4386_v50 }
 0x53f   :  { %3751 = vmatmul.msk.f32.gmra.mxu2 %vm5154_vm11, %v4398_v53 }
 0x547   :  { %3752 = vmatmul.msk.f32.gmra.mxu2 %vm5154_vm11, %v4409_v55 }
 0x54f   :  { %3753 = vmatmul.msk.f32.gmra.mxu2 %vm5154_vm11, %v4415_v56 }
 0x5b2   :  { %v679_v57 = vpop.f32.mrf.mxu2 }
 0x5b3   :  { %v682_v58 = vmul.f32 0.35355338, %v679_v57  ;;  %v833_v57 = vld [vmem:[#allocation2 + $0x228] sm:$0xff] }
 0x5b4   :  { %877 = vmatpush.msra.mxu1 %v833_v57 }
 0x5b5   :  { %v683_v61 = vsel %vm5171_vm15, %v682_v58, -inf }
 0x5b6   :  { %684 = vmax.xlane.f32.xlu0 %v683_v61  ;;  %v832_v61 = vld [vmem:[#allocation2 + $0x220] sm:$0xff] }
 0x5b7   :  { %878 = vmatpush.msra.mxu1 %v832_v61 }
 0x5ba   :  { %v743_v62 = vpop.f32.mrf.mxu2 }
 0x5bb   :  { %v755_v13 = vmul.f32 %v743_v62, %v4376_v35  ;;  %v827_v62 = vld [vmem:[#allocation2 + $0x1f8] sm:$0xff] }
 0x5c2   :  { %v746_v1 = vpop.f32.mrf.mxu2 }
 0x5c3   :  { %v756_v12 = vmul.f32 %v746_v1, %v4369_v31  ;;  %v831_v1 = vld [vmem:[#allocation2 + $0x218] sm:$0xff] }
 0x5c4   :  { %879 = vmatpush.msra.mxu1 %v831_v1 }
 0x5ca   :  { %v749_v6 = vpop.f32.mrf.mxu2 }
 0x5cb   :  { %v757_v10 = vmul.f32 %v749_v6, %v4363_v17 }
 0x5d2   :  { %v752_v8 = vpop.f32.mrf.mxu2 }
 0x5d3   :  { %v758_v11 = vmul.f32 %v752_v8, %v4358_v16 }
 0x5d5   :  { %774 = vmatpush.msrb.mxu3 %v758_v11 }
 0x5d7   :  { %775 = vmatpush.msrb.mxu3 %v757_v10 }
 0x5d9   :  { %776 = vmatpush.msrb.mxu3 %v756_v12 }
 0x5db   :  { %777 = vmatpush.msrb.mxu3 %v755_v13 }
 0x629   :  { %v685_v4 = vpop.xlane.xlu0 %684 }
 0x62a   :  { %v686_v5 = vsub.f32 %v682_v58, %v685_v4  ;;  %v828_v58 = vld [vmem:[#allocation2 + $0x200] sm:$0xff]  ;;  %v830_v4 = vld [vmem:[#allocation2 + $0x210] sm:$0xff] }
 0x62b   :  { %880 = vmatpush.msra.mxu1 %v830_v4 }
 0x62c   :  { %v687_v7 = vmul.f32 1.442695, %v686_v5 }
 0x62d   :  { %3761 = vmatpush.msk.msrb.mxu1 %vm4254_vm13, %v4101_v30 }
 0x62e   :  { %3995 = vpow2.f32 %v687_v7 }
 0x62f   :  { %3762 = vmatpush.msk.msrb.mxu1 %vm4265_vm3, %v4101_v30 }
 0x631   :  { %3763 = vmatpush.msk.msrb.mxu1 %vm4280_vm10, %v4101_v30 }
 0x633   :  { %3764 = vmatpush.msk.msrb.mxu1 %vm4306_vm8, %v4101_v30 }
 0x634   :  { %v3996_v9 = vpop.eup %3995 }
 0x635   :  { %3749 = vmatmul.msk.f32.vlgmr.msra.gmra.mxu3 %vm5172_vm0, %v3996_v9 }
 0x636   :  { %797 = vmatpush.msra.mxu3 %v418_v14  ;;  %v3980_v14 = vld [vmem:[#allocation2 + $0x168] ss:$0 sm:$0xff] }
 0x638   :  { %798 = vmatpush.msra.mxu3 %v417_v21 }
 0x63a   :  { %799 = vmatpush.msra.mxu3 %v416_v29 }
 0x63c   :  { %800 = vmatpush.msra.mxu3 %v415_v40  ;;  %v839_v40 = vld [vmem:[#allocation2 + $0x258] sm:$0xff] }
 0x6b8   :  { %v709_v32 = vpop.f32.mrf.mxu3 }
 0x6b9   :  { %3997 = vrcp.f32 %v709_v32 }
 0x6bf   :  { %v3998_v33 = vpop.eup %3997 }
 0x6c0   :  { %v713_v37 = vmul.f32 %v3998_v33, %v3996_v9  ;;  %v841_v33 = vld [vmem:[#allocation2 + $0x268] sm:$0xff] }
 0x6c1   :  { %918 = vmatpush.msrb.mxu2 %v841_v33 }
 0x6c2   :  { %3754 = vmatmul.msk.f32.vlgmr.msrb.gmra.mxu3 %vm5173_vm9, %v713_v37  ;;  %v840_v37 = vld [vmem:[#allocation2 + $0x260] sm:$0xff] }
 0x6c3   :  { %857 = vmatpush.msrb.mxu3 %v829_v54  ;;  %919 = vmatpush.msrb.mxu2 %v840_v37  ;;  %v834_v54 = vld [vmem:[#allocation2 + $0x230] sm:$0xff]  ;;  %v954_v37 = vld [vmem:[#allocation2 + $0x298] sm:$0xff] }
 0x6c5   :  { %858 = vmatpush.msrb.mxu3 %v828_v58  ;;  %920 = vmatpush.msrb.mxu2 %v839_v40  ;;  %v962_v40 = vld [vmem:[#allocation2 + $0x2d8] sm:$0xff] }
 0x6c7   :  { %859 = vmatpush.msrb.mxu3 %v827_v62 }
 0x745   :  { %v779_v42 = vpop.f32.mrf.mxu3 }
 0x746   :  { %3755 = vmatmul.msk.f32.vlgmr.msra.gmra.mxu3 %vm5174_vm7, %v779_v42  ;;  %v838_v42 = vld [vmem:[#allocation2 + $0x250] sm:$0xff] }
 0x747   :  { %921 = vmatpush.msrb.mxu2 %v838_v42  ;;  %v953_v42 = vld [vmem:[#allocation2 + $0x290] sm:$0xff] }
 0x7c9   :  { %v802_v44 = vpop.f32.mrf.mxu3 }
 0x7ca   :  { %v4428_v46 = vadd.f32 %v802_v44, %v4215_v63  ;;  %v826_v63 = vld [vmem:[#allocation2 + $0x1f0] sm:$0xff]  ;;  %v837_v44 = vld [vmem:[#allocation2 + $0x248] sm:$0xff] }
 0x7cb   :  { %860 = vmatpush.msrb.mxu3 %v826_v63  ;;  %922 = vmatpush.msrb.mxu2 %v837_v44  ;;  %v961_v44 = vld [vmem:[#allocation2 + $0x2d0] sm:$0xff] }
 0x7cc   :  { %v807_v48 = vmul.f32 %v4428_v46, %v4428_v46 }
 0x7cd   :  { %982 = vmatpush.msra.mxu3 %v954_v37 }
 0x7ce   :  { %v808_v51 = vsel %vm5175_vm12, %v807_v48, 0.0  ;;  %v836_v48 = vld [vmem:[#allocation2 + $0x240] sm:$0xff]  ;;  %vm5153_vm12 = vcmask 523264  }
 0x7cf   :  { %809 = vadd.xlane.f32.xlu2 %v808_v51  ;;  %923 = vmatpush.msrb.mxu2 %v836_v48  ;;  %v835_v51 = vld [vmem:[#allocation2 + $0x238] sm:$0xff]  ;;  %v952_v48 = vld [vmem:[#allocation2 + $0x288] sm:$0xff] }
 0x7d0   :  { %983 = vmatpush.msra.mxu3 %v953_v42 }
 0x7d1   :  { %924 = vmatpush.msrb.mxu2 %v835_v51  ;;  %v960_v51 = vld [vmem:[#allocation2 + $0x2c8] sm:$0xff] }
 0x7d2   :  { %984 = vmatpush.msra.mxu3 %v952_v48  ;;  %v196_v48 = vld [vmem:[%s5140_s0 + $0x60] sm:$0xff] }
 0x7d3   :  { %925 = vmatpush.msrb.mxu2 %v834_v54  ;;  %v959_v54 = vld [vmem:[#allocation2 + $0x2c0] sm:$0xff] }
 0x7d5   :  { %1074 = vmatpush.msra.mxu2 %v962_v40 }
 0x7d7   :  { %1075 = vmatpush.msra.mxu2 %v961_v44 }
 0x7d9   :  { %1076 = vmatpush.msra.mxu2 %v960_v51 }
 0x7db   :  { %1077 = vmatpush.msra.mxu2 %v959_v54 }
 0x842   :  { %v810_v5 = vpop.xlane.xlu2 %809 }
 0x843   :  { %v811_v6 = vmul.f32 %v810_v5, %v4220_v27 }
 0x845   :  { %v812_v7 = vadd.f32 1e-06, %v811_v6 }
 0x847   :  { %3999 = vrsqrt.f32 %v812_v7  ;;  %vm819_vm1 = vweird.f32 %v812_v7 }
 0x84d   :  { %v4000_v8 = vpop.eup %3999 }
 0x84e   :  { %v814_v9 = vmul.f32 %v4000_v8, %v812_v7  ;;  %vm820_vm14 = vweird.f32 %v4000_v8 }
 0x84f   :  { %vm821_vm4 = vmor %vm819_vm1, %vm820_vm14  ;;  %vm5179_vm1 = vnez %v5158_v41 }
 0x850   :  { %v815_v10 = vmul.f32 %v4000_v8, %v814_v9  ;;  %vm5178_vm14 = vmmov %vm5176_vm2 }
 0x852   :  { %v816_v11 = vmul.f32 0.5, %v815_v10 }
 0x854   :  { %v817_v12 = vsub.f32 1.5, %v816_v11 }
 0x856   :  { %v818_v13 = vmul.f32 %v4000_v8, %v817_v12 }
 0x858   :  { %v822_v21 = vsel %vm821_vm4, %v4000_v8, %v818_v13  ;;  %vm5180_vm4 = vnez %v5164_v47 }
 0x859   :  { %v823_v29 = vmul.f32 %v822_v21, %v4428_v46 }
 0x85b   :  { %v825_v32 = vmul.f32 %v3980_v14, %v823_v29 }
 0x85d   :  { %3756 = vmatmul.msk.f32.vlgmr.msrb.gmra.mxu3 %vm5176_vm2, %v825_v32  ;;  %3757 = vmatmul.msk.f32.vlgmr.msra.gmra.mxu1 %vm5177_vm5, %v825_v32  ;;  %vm5181_vm2 = vcmp.lt.s32.totalorder %v4182_v28, 8 }
 0x85e   :  { %3767 = vmatpush.msk.msra.mxu1 %vm4254_vm13, %v4101_v30 }
 0x860   :  { %3768 = vmatpush.msk.msra.mxu1 %vm4265_vm3, %v4101_v30 }
 0x862   :  { %3769 = vmatpush.msk.msra.mxu1 %vm4280_vm10, %v4101_v30 }
 0x864   :  { %3770 = vmatpush.msk.msra.mxu1 %vm4306_vm8, %v4101_v30 }
 0x8da   :  { %v882_v13 = vpop.f32.mrf.mxu1 }
 0x8e0   :  { %v862_v57 = vpop.f32.mrf.mxu3 }
 0x8e1   :  { %v3758_v58 = vmul.f32 -1.442695, %v862_v57 }
 0x8e3   :  { %4001 = vpow2.f32 %v3758_v58  ;;  %v957_v58 = vld [vmem:[#allocation2 + $0x2b0] sm:$0xff] }
 0x8e9   :  { %v4002_v61 = vpop.eup %4001 }
 0x8ea   :  { %v888_v62 = vadd.f32 1.0, %v4002_v61  ;;  %v956_v61 = vld [vmem:[#allocation2 + $0x2a8] sm:$0xff] }
 0x8ec   :  { %4003 = vrcp.f32 %v888_v62  ;;  %v900_v5 = vand.u32 2147483648, %v888_v62  ;;  %v898_v7 = vand.u32 2147483647, %v888_v62  ;;  %vm894_vm0 = vweird.f32 %v888_v62 }
 0x8ee   :  { %v901_v9 = vor.u32 1.1754944e-38, %v900_v5  ;;  %vm899_vm7 = vcmp.eq.f32.partialorder %v898_v7, 8.507059e+37 }
 0x8f2   :  { %v4004_v1 = vpop.eup %4003 }
 0x8f3   :  { %v890_v63 = vmul.f32 %v4004_v1, %v888_v62  ;;  %vm895_vm15 = vweird.f32 %v4004_v1  ;;  %v955_v62 = vld [vmem:[#allocation2 + $0x2a0] sm:$0xff] }
 0x8f4   :  { %vm896_vm9 = vmor %vm894_vm0, %vm895_vm15 }
 0x8f5   :  { %v891_v4 = vsub.f32 1.0, %v890_v63 }
 0x8f7   :  { %v892_v6 = vmul.f32 %v4004_v1, %v891_v4 }
 0x8f9   :  { %v893_v8 = vadd.f32 %v4004_v1, %v892_v6 }
 0x8fb   :  { %v897_v10 = vsel %vm896_vm9, %v4004_v1, %v893_v8  ;;  %vm5182_vm9 = vmmov %vm5178_vm14 }
 0x8fc   :  { %v902_v11 = vsel %vm899_vm7, %v901_v9, %v897_v10  ;;  %vm5183_vm7 = vmmov %vm5182_vm9 }
 0x8fd   :  { %v904_v12 = vmul.f32 %v902_v11, %v862_v57  ;;  %v958_v57 = vld [vmem:[#allocation2 + $0x2b8] sm:$0xff]  ;;  %v3981_v11 = vld [vmem:[#allocation2 + $0x270] ss:$0 sm:$0xff] }
 0x8ff   :  { %v905_v14 = vmul.f32 %v904_v12, %v882_v13 }
 0x901   :  { %3759 = vmatmul.msk.f32.vlgmr.msrb.gmra.mxu2 %vm5153_vm12, %v905_v14 }
 0x902   :  { %3779 = vmatpush.msk.msrb.mxu2 %vm4238_vm6, %v4101_v30 }
 0x904   :  { %3780 = vmatpush.msk.msrb.mxu2 %vm5179_vm1, %v4101_v30 }
 0x906   :  { %3781 = vmatpush.msk.msrb.mxu2 %vm5180_vm4, %v4101_v30 }
 0x908   :  { %3782 = vmatpush.msk.msrb.mxu2 %vm5181_vm2, %v4101_v30  ;;  %vm5185_vm2 = vmmov %vm5183_vm7 }
 0x909   :  { %vm5186_vm12 = vmmov %vm5185_vm2 }
 0x90a   :  { %vm5187_vm11 = vmmov %vm5185_vm2 }
 0x984   :  { %v927_v21 = vpop.f32.mrf.mxu2 }
 0x985   :  { %v4463_v29 = vadd.f32 %v927_v21, %v4428_v46  ;;  %v951_v46 = vld [vmem:[#allocation2 + $0x280] sm:$0xff] }
 0x986   :  { %985 = vmatpush.msra.mxu3 %v951_v46 }
 0x987   :  { %v932_v32 = vmul.f32 %v4463_v29, %v4463_v29 }
 0x988   :  { %1028 = vmatpush.msrb.mxu3 %v958_v57 }
 0x989   :  { %v933_v33 = vsel %vm5178_vm14, %v932_v32, 0.0  ;;  %vm5184_vm14 = vnez %v5170_v0  ;;  %v2789_v0 = vld [vmem:[#allocation2 + $0x5b8] sm:$0xff] }
 0x98a   :  { %934 = vadd.xlane.f32.xlu1 %v933_v33  ;;  %1029 = vmatpush.msrb.mxu3 %v957_v58 }
 0x98c   :  { %1030 = vmatpush.msrb.mxu3 %v956_v61 }
 0x98e   :  { %1031 = vmatpush.msrb.mxu3 %v955_v62 }
 0x9fd   :  { %v935_v1 = vpop.xlane.xlu1 %934 }
 0x9fe   :  { %v936_v63 = vmul.f32 %v935_v1, %v4220_v27 }
 0xa00   :  { %v937_v4 = vadd.f32 1e-06, %v936_v63 }
 0xa02   :  { %4005 = vrsqrt.f32 %v937_v4  ;;  %vm944_vm15 = vweird.f32 %v937_v4 }
 0xa08   :  { %v4006_v5 = vpop.eup %4005 }
 0xa09   :  { %v939_v6 = vmul.f32 %v4006_v5, %v937_v4  ;;  %vm945_vm5 = vweird.f32 %v4006_v5 }
 0xa0a   :  { %vm946_vm0 = vmor %vm944_vm15, %vm945_vm5  ;;  %vm5188_vm5 = vcmask 64512  }
 0xa0b   :  { %v940_v7 = vmul.f32 %v4006_v5, %v939_v6  ;;  %vm5191_vm15 = vmmov %vm5188_vm5 }
 0xa0d   :  { %v941_v8 = vmul.f32 0.5, %v940_v7 }
 0xa0f   :  { %v942_v9 = vsub.f32 1.5, %v941_v8 }
 0xa11   :  { %v943_v10 = vmul.f32 %v4006_v5, %v942_v9 }
 0xa13   :  { %v947_v12 = vsel %vm946_vm0, %v4006_v5, %v943_v10  ;;  %vm5192_vm0 = vmmov %vm5185_vm2 }
 0xa14   :  { %v948_v13 = vmul.f32 %v947_v12, %v4463_v29  ;;  %v4058_v12 = vld [vmem:[#allocation2 + $0x70] sm:$0xff] }
 0xa16   :  { %v950_v14 = vmul.f32 %v3981_v11, %v948_v13  ;;  %v4057_v11 = vld [vmem:[#allocation2 + $0x78] sm:$0xff]  ;;  %v4059_v13 = vld [vmem:[#allocation2 + $0x68] sm:$0xff] }
 0xa18   :  { %3760 = vmatmul.msk.f32.vlgmr.msra.gmra.mxu3 %vm5182_vm9, %v950_v14  ;;  %3772 = vmatmul.msk.f32.vlgmr.msra.gmra.mxu2 %vm5183_vm7, %v950_v14  ;;  %vm5193_vm9 = vmmov %vm5188_vm5 }
 0xa19   :  { %3773 = vmatpush.msk.msra.mxu3 %vm5184_vm14, %v4101_v30  ;;  %vm5194_vm7 = vmmov %vm5188_vm5 }
 0xa20   :  { %3766 = vmatmul.msk.f32.vlgmr.msrb.gmra.mxu3 %vm5185_vm2, %v950_v14  ;;  %v4062_v14 = vld [vmem:[#allocation2 + $0x50] sm:$0xff]  ;;  %vm5195_vm2 = vmmov %vm5188_vm5 }
 0xa9b   :  { %v987_v21 = vpop.f32.mrf.mxu3  ;;  %v1079_v10 = vpop.f32.mrf.mxu2 }
 0xa9c   :  { %3765 = vmatmul.msk.f32.vlgmr.msrb.gmra.mxu1 %vm5186_vm12, %v987_v21  ;;  %vm5189_vm12 = vmmov %vm5188_vm5  ;;  %v990_v7 = vmul.f32 %v987_v21, %v4345_v2  ;;  %v4063_v21 = vld [vmem:[#allocation2 + $0x48] sm:$0xff] }
 0xaa3   :  { %v1033_v32 = vpop.f32.mrf.mxu3 }
 0xaa4   :  { %3771 = vmatmul.msk.f32.vlgmr.msra.gmra.mxu1 %vm5187_vm11, %v1033_v32  ;;  %v1036_v40 = vmul.f32 %v1033_v32, %v4345_v2  ;;  %vm5190_vm11 = vmmov %vm5188_vm5  ;;  %v4061_v2 = vld [vmem:[#allocation2 + $0x58] sm:$0xff]  ;;  %v4064_v32 = vld [vmem:[#allocation2 + $0x40] sm:$0xff] }
 0xb19   :  { %v1011_v33 = vpop.f32.mrf.mxu1 }
 0xb1a   :  { %v1014_v5 = vmul.f32 %v1011_v33, %v4347_v3  ;;  %v200_v33 = vld [vmem:[%s5140_s0 + $0x80] sm:$0xff] }
 0xb1c   :  { %v1015_v9 = vadd.f32 %v1014_v5, %v990_v7 }
 0xb21   :  { %v1057_v37 = vpop.f32.mrf.mxu1 }
 0xb22   :  { %v1060_v42 = vmul.f32 %v1057_v37, %v4347_v3  ;;  %v4060_v3 = vld [vmem:[#allocation2 + $0x60] sm:$0xff]  ;;  %v201_v37 = vld [vmem:[%s5140_s0 + $0x88] sm:$0xff] }
 0xb24   :  { %v1061_v44 = vadd.f32 %v1060_v42, %v1036_v40  ;;  %v202_v40 = vld [vmem:[%s5140_s0 + $0x90] sm:$0xff]  ;;  %v203_v42 = vld [vmem:[%s5140_s0 + $0x98] sm:$0xff] }
 0xb26   :  { %1082 = vxpose.xlu0.b32.start.end [1/1] (short) (narrow) %v1061_v44, 32 }
 0xbac   :  { %1469 = vperm.xlu0 %3976, %v196_v48  }
 0xbca   :  { %v1098_v51 = vpop.trf.xlu0 }
 0xbcb   :  { %3774 = vmatmul.msk.f32.vlgmr.msra.gmra.mxu3 %vm5188_vm5, %v1098_v51  ;;  %vm5196_vm5 = vmmov %vm5195_vm2 }
 0xbd2   :  { %v1099_v46 = vpop.trf.xlu0 }
 0xbd3   :  { %3775 = vmatmul.msk.f32.gmra.mxu3 %vm5189_vm12, %v1099_v46  ;;  %vm5197_vm12 = vmmov %vm5192_vm0 }
 0xbda   :  { %v1100_v54 = vpop.trf.xlu0 }
 0xbdb   :  { %3776 = vmatmul.msk.f32.gmra.mxu3 %vm5190_vm11, %v1100_v54  ;;  %vm5198_vm11 = vmmov %vm5192_vm0 }
 0xbe2   :  { %v1101_v57 = vpop.trf.xlu0 }
 0xbe3   :  { %3777 = vmatmul.msk.f32.gmra.mxu3 %vm5191_vm15, %v1101_v57 }
 0xc4e   :  { %v1143_v58 = vpop.f32.mrf.mxu3 }
 0xc4f   :  { %v1155_v8 = vmul.f32 %v1143_v58, %v4376_v35  ;;  %v1470_v58 = vpop.permute.xlu0 %1469 }
 0xc56   :  { %v1146_v61 = vpop.f32.mrf.mxu3 }
 0xc57   :  { %v1156_v6 = vmul.f32 %v1146_v61, %v4369_v31 }
 0xc5e   :  { %v1149_v62 = vpop.f32.mrf.mxu3 }
 0xc5f   :  { %v1157_v4 = vmul.f32 %v1149_v62, %v4363_v17 }
 0xc66   :  { %v1152_v1 = vpop.f32.mrf.mxu3 }
 0xc67   :  { %v1158_v63 = vmul.f32 %v1152_v1, %v4358_v16 }
 0xc69   :  { %1174 = vmatpush.msrb.mxu1 %v1158_v63 }
 0xc6b   :  { %1175 = vmatpush.msrb.mxu1 %v1157_v4 }
 0xc6d   :  { %1176 = vmatpush.msrb.mxu1 %v1156_v6 }
 0xc6f   :  { %1177 = vmatpush.msrb.mxu1 %v1155_v8 }
 0xc70   :  { %3778 = vmatmul.msk.f32.vlgmr.msrb.gmra.mxu1 %vm5192_vm0, %v1015_v9 }
 0xc71   :  { %1229 = vmatpush.msra.mxu1 %v1079_v10 }
 0xc73   :  { %1512 = vmatpush.msrb.mxu1 %v4057_v11 }
 0xc75   :  { %1513 = vmatpush.msrb.mxu1 %v4058_v12 }
 0xc77   :  { %1514 = vmatpush.msrb.mxu1 %v4059_v13 }
 0xc78   :  { %3784 = vmatmul.msk.f32.vlgmr.msra.gmra.mxu1 %vm5193_vm9, %v4386_v50  ;;  %vm1494_vm9 = vcmp.eq.s32.totalorder %v1470_v58, %v4182_v28 }
 0xc79   :  { %1515 = vmatpush.msrb.mxu1 %v4060_v3 }
 0xc7b   :  { %1516 = vmatpush.msrb.mxu1 %v4061_v2 }
 0xc7d   :  { %1517 = vmatpush.msrb.mxu1 %v4062_v14 }
 0xc7f   :  { %1518 = vmatpush.msrb.mxu1 %v4063_v21 }
 0xc80   :  { %3785 = vmatmul.msk.f32.gmra.mxu1 %vm5194_vm7, %v4398_v53 }
 0xc81   :  { %1519 = vmatpush.msrb.mxu1 %v4064_v32  ;;  %v966_v32 = vld [vmem:[#allocation2 + $0x2f8] sm:$0xff] }
 0xc83   :  { %1520 = vmatpush.msrb.mxu1 %v4155_v18 }
 0xc85   :  { %1521 = vmatpush.msrb.mxu1 %v4157_v19 }
 0xc87   :  { %1522 = vmatpush.msrb.mxu1 %v4160_v20 }
 0xc88   :  { %3786 = vmatmul.msk.f32.gmra.mxu1 %vm5195_vm2, %v4409_v55 }
 0xc89   :  { %1523 = vmatpush.msrb.mxu1 %v4166_v22  ;;  %v194_v22 = vld [vmem:[%s5140_s0 + $0x50] sm:$0xff] }
 0xc8b   :  { %1524 = vmatpush.msrb.mxu1 %v4169_v23  ;;  %v195_v23 = vld [vmem:[%s5140_s0 + $0x58] sm:$0xff] }
 0xc8d   :  { %1525 = vmatpush.msrb.mxu1 %v4172_v24  ;;  %v197_v24 = vld [vmem:[%s5140_s0 + $0x68] sm:$0xff] }
 0xc8f   :  { %1526 = vmatpush.msrb.mxu1 %v4175_v25  ;;  %v198_v25 = vld [vmem:[%s5140_s0 + $0x70] sm:$0xff] }
 0xc90   :  { %3787 = vmatmul.msk.f32.gmra.mxu1 %vm5196_vm5, %v4415_v56 }
 0xc91   :  { %1527 = vmatpush.msrb.mxu1 %v4179_v26  ;;  %v199_v26 = vld [vmem:[%s5140_s0 + $0x78] sm:$0xff] }
 0xced   :  { %v1179_v18 = vpop.f32.mrf.mxu1 }
 0xcee   :  { %v1182_v19 = vmul.f32 0.35355338, %v1179_v18  ;;  %v965_v18 = vld [vmem:[#allocation2 + $0x2f0] sm:$0xff] }
 0xcf0   :  { %v1183_v20 = vsel %vm5197_vm12, %v1182_v19, -inf }
 0xcf1   :  { %1184 = vmax.xlane.f32.xlu1 %v1183_v20 }
 0xcf5   :  { %v1231_v63 = vpop.f32.mrf.mxu1 }
 0xcf6   :  { %v1243_v13 = vmul.f32 %v1231_v63, %v4376_v35  ;;  %v1317_v63 = vld [vmem:[#allocation2 + $0x318] sm:$0xff] }
 0xcf7   :  { %1345 = vmatpush.msra.mxu0 %v1317_v63 }
 0xcfd   :  { %v1234_v5 = vpop.f32.mrf.mxu1 }
 0xcfe   :  { %v1244_v12 = vmul.f32 %v1234_v5, %v4369_v31  ;;  %v1315_v5 = vld [vmem:[#allocation2 + $0x308] sm:$0xff] }
 0xd05   :  { %v1237_v6 = vpop.f32.mrf.mxu1 }
 0xd06   :  { %v1245_v9 = vmul.f32 %v1237_v6, %v4363_v17  ;;  %v1314_v6 = vld [vmem:[#allocation2 + $0x300] sm:$0xff] }
 0xd0a   :  { %1463 = vperm.xlu1 %3977, %v194_v22   ;;  %v963_v22 = vld [vmem:[#allocation2 + $0x2e0] sm:$0xff] }
 0xd0d   :  { %v1240_v8 = vpop.f32.mrf.mxu1 }
 0xd0e   :  { %v1246_v10 = vmul.f32 %v1240_v8, %v4358_v16 }
 0xd10   :  { %1262 = vmatpush.msra.mxu2 %v1246_v10 }
 0xd12   :  { %1466 = vperm.xlu1 %3977, %v195_v23   ;;  %1263 = vmatpush.msra.mxu2 %v1245_v9  ;;  %v1321_v23 = vld [vmem:[#allocation2 + $0x338] sm:$0xff] }
 0xd14   :  { %1264 = vmatpush.msra.mxu2 %v1244_v12 }
 0xd16   :  { %1265 = vmatpush.msra.mxu2 %v1243_v13 }
 0xd1a   :  { %1472 = vperm.xlu1 %3977, %v197_v24   ;;  %v1320_v24 = vld [vmem:[#allocation2 + $0x330] sm:$0xff] }
 0xd22   :  { %1475 = vperm.xlu1 %3977, %v198_v25   ;;  %v1319_v25 = vld [vmem:[#allocation2 + $0x328] sm:$0xff] }
 0xd2a   :  { %1478 = vperm.xlu1 %3977, %v199_v26  }
 0xd32   :  { %1481 = vperm.xlu1 %3977, %v200_v33  }
 0xd3a   :  { %1484 = vperm.xlu1 %3977, %v201_v37  }
 0xd42   :  { %1487 = vperm.xlu1 %3977, %v202_v40  }
 0xd4a   :  { %1490 = vperm.xlu1 %3977, %v203_v42  }
 0xd64   :  { %v1185_v44 = vpop.xlane.xlu1 %1184 }
 0xd65   :  { %v1186_v48 = vsub.f32 %v1182_v19, %v1185_v44  ;;  %v964_v19 = vld [vmem:[#allocation2 + $0x2e8] sm:$0xff]  ;;  %v1318_v44 = vld [vmem:[#allocation2 + $0x320] sm:$0xff] }
 0xd67   :  { %v1187_v51 = vmul.f32 1.442695, %v1186_v48 }
 0xd69   :  { %4007 = vpow2.f32 %v1187_v51 }
 0xd6f   :  { %v4008_v46 = vpop.eup %4007 }
 0xd70   :  { %3783 = vmatmul.msk.f32.vlgmr.msrb.gmra.mxu2 %vm5198_vm11, %v4008_v46 }
 0xd71   :  { %1285 = vmatpush.msrb.mxu2 %v966_v32 }
 0xd73   :  { %1286 = vmatpush.msrb.mxu2 %v965_v18  ;;  %v1329_v18 = vld [vmem:[#allocation2 + $0x378] sm:$0xff] }
 0xd74   :  { %1405 = vmatpush.msrb.mxu3 %v1329_v18  ;;  %v1623_v18 = vld [vmem:[#allocation2 + $0x3a0] sm:$0xff] }
 0xd75   :  { %1287 = vmatpush.msrb.mxu2 %v964_v19  ;;  %v1328_v19 = vld [vmem:[#allocation2 + $0x370] sm:$0xff] }
 0xd76   :  { %1406 = vmatpush.msrb.mxu3 %v1328_v19  ;;  %v1631_v19 = vld [vmem:[#allocation2 + $0x3e0] sm:$0xff] }
 0xd77   :  { %1288 = vmatpush.msrb.mxu2 %v963_v22  ;;  %v1326_v22 = vld [vmem:[#allocation2 + $0x360] sm:$0xff] }
 0xd7c   :  { %v1464_v54 = vpop.permute.xlu1 %1463 }
 0xd7d   :  { %vm1492_vm15 = vcmp.eq.s32.totalorder %v1464_v54, %v4182_v28 }
 0xd7e   :  { %3796 = vmatmul.msk.f32.vlgmr.msrb.gmra.mxu1 %vm1492_vm15, %v4101_v30 }
 0xd84   :  { %v1467_v57 = vpop.permute.xlu1 %1466 }
 0xd85   :  { %vm1493_vm0 = vcmp.eq.s32.totalorder %v1467_v57, %v4182_v28 }
 0xd86   :  { %3797 = vmatmul.msk.f32.gmra.mxu1 %vm1493_vm0, %v4101_v30 }
 0xd8c   :  { %v1473_v61 = vpop.permute.xlu1 %1472 }
 0xd8d   :  { %vm1495_vm7 = vcmp.eq.s32.totalorder %v1473_v61, %v4182_v28 }
 0xd8e   :  { %3798 = vmatmul.msk.f32.gmra.mxu1 %vm1494_vm9, %v4101_v30  ;;  %vm5199_vm9 = vcmask 261120  }
 0xd94   :  { %v1476_v62 = vpop.permute.xlu1 %1475 }
 0xd95   :  { %vm1496_vm2 = vcmp.eq.s32.totalorder %v1476_v62, %v4182_v28 }
 0xd96   :  { %3799 = vmatmul.msk.f32.gmra.mxu1 %vm1495_vm7, %v4101_v30  ;;  %vm5200_vm7 = vmmov %vm5199_vm9 }
 0xd9c   :  { %v1479_v1 = vpop.permute.xlu1 %1478 }
 0xd9d   :  { %vm1497_vm5 = vcmp.eq.s32.totalorder %v1479_v1, %v4182_v28 }
 0xd9e   :  { %3800 = vmatmul.msk.f32.gmra.mxu1 %vm1496_vm2, %v4101_v30  ;;  %vm5201_vm2 = vmmov %vm5200_vm7 }
 0xda4   :  { %v1482_v4 = vpop.permute.xlu1 %1481 }
 0xda5   :  { %vm1498_vm12 = vcmp.eq.s32.totalorder %v1482_v4, %v4182_v28  ;;  %v1316_v4 = vld [vmem:[#allocation2 + $0x310] sm:$0xff] }
 0xda6   :  { %3801 = vmatmul.msk.f32.gmra.mxu1 %vm1497_vm5, %v4101_v30  ;;  %1346 = vmatpush.msra.mxu0 %v1316_v4 }
 0xda8   :  { %1347 = vmatpush.msra.mxu0 %v1315_v5 }
 0xdaa   :  { %1348 = vmatpush.msra.mxu0 %v1314_v6 }
 0xdac   :  { %v1485_v7 = vpop.permute.xlu1 %1484  ;;  %3794 = vmatpush.msk.msrb.mxu0 %vm5184_vm14, %v4101_v30 }
 0xdad   :  { %vm1499_vm11 = vcmp.eq.s32.totalorder %v1485_v7, %v4182_v28 }
 0xdae   :  { %3802 = vmatmul.msk.f32.gmra.mxu1 %vm1498_vm12, %v4101_v30 }
 0xdb4   :  { %v1488_v11 = vpop.permute.xlu1 %1487 }
 0xdb5   :  { %vm1500_vm15 = vcmp.eq.s32.totalorder %v1488_v11, %v4182_v28 }
 0xdb6   :  { %3803 = vmatmul.msk.f32.gmra.mxu1 %vm1499_vm11, %v4101_v30 }
 0xdbc   :  { %v1491_v3 = vpop.permute.xlu1 %1490 }
 0xdbd   :  { %vm1501_vm0 = vcmp.eq.s32.totalorder %v1491_v3, %v4182_v28 }
 0xdbe   :  { %3804 = vmatmul.msk.f32.gmra.mxu1 %vm1500_vm15, %v4101_v30  ;;  %vm5202_vm15 = vmmov %vm5201_vm2 }
 0xdc6   :  { %3805 = vmatmul.msk.f32.gmra.mxu1 %vm1501_vm0, %v4101_v30  ;;  %vm5203_vm0 = vmmov %vm5201_vm2 }
 0xdf3   :  { %v1209_v2 = vpop.f32.mrf.mxu2 }
 0xdf4   :  { %4009 = vrcp.f32 %v1209_v2  ;;  %v3982_v2 = vld [vmem:[#allocation2 + $0x278] ss:$0 sm:$0xff] }
 0xdfa   :  { %v4010_v14 = vpop.eup %4009 }
 0xdfb   :  { %v1213_v21 = vmul.f32 %v4010_v14, %v4008_v46  ;;  %v1529_v20 = vpop.f32.mrf.mxu1 }
 0xdfd   :  { %3788 = vmatmul.msk.f32.vlgmr.msra.gmra.mxu2 %vm5199_vm9, %v1213_v21  ;;  %vm5204_vm9 = vcmask 654336  }
 0xdfe   :  { %1365 = vmatpush.msra.mxu2 %v1321_v23  ;;  %v1325_v23 = vld [vmem:[#allocation2 + $0x358] sm:$0xff] }
 0xe00   :  { %1366 = vmatpush.msra.mxu2 %v1320_v24  ;;  %v1324_v24 = vld [vmem:[#allocation2 + $0x350] sm:$0xff] }
 0xe02   :  { %1367 = vmatpush.msra.mxu2 %v1319_v25  ;;  %v1323_v25 = vld [vmem:[#allocation2 + $0x348] sm:$0xff] }
 0xe03   :  { %v1532_v26 = vpop.f32.mrf.mxu1 }
 0xe04   :  { %1368 = vmatpush.msra.mxu2 %v1318_v44  ;;  %v4068_v44 = vld [vmem:[#allocation2 + $0x120] sm:$0xff] }
 0xe0b   :  { %v1535_v33 = vpop.f32.mrf.mxu1 }
 0xe13   :  { %v1538_v37 = vpop.f32.mrf.mxu1 }
 0xe1b   :  { %v1541_v40 = vpop.f32.mrf.mxu1 }
 0xe23   :  { %v1544_v42 = vpop.f32.mrf.mxu1 }
 0xe2b   :  { %v1547_v48 = vpop.f32.mrf.mxu1 }
 0xe33   :  { %v1550_v51 = vpop.f32.mrf.mxu1 }
 0xe3b   :  { %v1553_v46 = vpop.f32.mrf.mxu1 }
 0xe43   :  { %v1556_v57 = vpop.f32.mrf.mxu1 }
 0xe80   :  { %v1267_v54 = vpop.f32.mrf.mxu2 }
 0xe81   :  { %3789 = vmatmul.msk.f32.vlgmr.msrb.gmra.mxu2 %vm5200_vm7, %v1267_v54 }
 0xe82   :  { %1565 = vmatpush.msrb.mxu2 %v1556_v57 }
 0xe84   :  { %1566 = vmatpush.msrb.mxu2 %v1553_v46 }
 0xe86   :  { %1567 = vmatpush.msrb.mxu2 %v1550_v51 }
 0xe88   :  { %1568 = vmatpush.msrb.mxu2 %v1547_v48 }
 0xe8a   :  { %1569 = vmatpush.msrb.mxu2 %v1544_v42  ;;  %v4067_v42 = vld [vmem:[#allocation2 + $0x128] sm:$0xff] }
 0xe8c   :  { %1570 = vmatpush.msrb.mxu2 %v1541_v40  ;;  %v4065_v40 = vld [vmem:[#allocation2 + $0x138] sm:$0xff] }
 0xe8e   :  { %1571 = vmatpush.msrb.mxu2 %v1538_v37 }
 0xe90   :  { %1572 = vmatpush.msrb.mxu2 %v1535_v33 }
 0xe92   :  { %1573 = vmatpush.msrb.mxu2 %v1532_v26  ;;  %v1322_v26 = vld [vmem:[#allocation2 + $0x340] sm:$0xff] }
 0xe94   :  { %1574 = vmatpush.msrb.mxu2 %v1529_v20  ;;  %v1327_v20 = vld [vmem:[#allocation2 + $0x368] sm:$0xff] }
 0xe95   :  { %1407 = vmatpush.msrb.mxu3 %v1327_v20  ;;  %v1622_v20 = vld [vmem:[#allocation2 + $0x398] sm:$0xff] }
 0xe97   :  { %1408 = vmatpush.msrb.mxu3 %v1326_v22  ;;  %v1630_v22 = vld [vmem:[#allocation2 + $0x3d8] sm:$0xff] }
 0xe99   :  { %1409 = vmatpush.msrb.mxu3 %v1325_v23  ;;  %v1629_v23 = vld [vmem:[#allocation2 + $0x3d0] sm:$0xff] }
 0xe9b   :  { %1410 = vmatpush.msrb.mxu3 %v1324_v24  ;;  %v1628_v24 = vld [vmem:[#allocation2 + $0x3c8] sm:$0xff] }
 0xe9d   :  { %1411 = vmatpush.msrb.mxu3 %v1323_v25  ;;  %v1627_v25 = vld [vmem:[#allocation2 + $0x3c0] sm:$0xff] }
 0xe9f   :  { %1412 = vmatpush.msrb.mxu3 %v1322_v26  ;;  %v1626_v26 = vld [vmem:[#allocation2 + $0x3b8] sm:$0xff] }
 0xea1   :  { %1594 = vmatpush.msra.mxu3 %v4065_v40 }
 0xf04   :  { %v1290_v58 = vpop.f32.mrf.mxu2 }
 0xf05   :  { %v4578_v61 = vadd.f32 %v1290_v58, %v4463_v29 }
 0xf07   :  { %v1295_v62 = vmul.f32 %v4578_v61, %v4578_v61 }
 0xf09   :  { %v1296_v1 = vsel %vm5201_vm2, %v1295_v62, 0.0 }
 0xf0a   :  { %1297 = vadd.xlane.f32.xlu1 %v1296_v1 }
 0xf7d   :  { %v1298_v29 = vpop.xlane.xlu1 %1297 }
 0xf7e   :  { %v1299_v7 = vmul.f32 %v1298_v29, %v4220_v27 }
 0xf80   :  { %v1300_v8 = vadd.f32 1e-06, %v1299_v7 }
 0xf82   :  { %4011 = vrsqrt.f32 %v1300_v8  ;;  %vm1307_vm12 = vweird.f32 %v1300_v8 }
 0xf88   :  { %v4012_v9 = vpop.eup %4011 }
 0xf89   :  { %v1302_v10 = vmul.f32 %v4012_v9, %v1300_v8  ;;  %vm1308_vm5 = vweird.f32 %v4012_v9 }
 0xf8a   :  { %vm1309_vm11 = vmor %vm1307_vm12, %vm1308_vm5 }
 0xf8b   :  { %v1303_v11 = vmul.f32 %v4012_v9, %v1302_v10 }
 0xf8d   :  { %v1304_v12 = vmul.f32 0.5, %v1303_v11 }
 0xf8f   :  { %v1305_v13 = vsub.f32 1.5, %v1304_v12 }
 0xf91   :  { %v1306_v3 = vmul.f32 %v4012_v9, %v1305_v13 }
 0xf93   :  { %v1310_v14 = vsel %vm1309_vm11, %v4012_v9, %v1306_v3  ;;  %vm5205_vm11 = vcmask 523264   ;;  %v1438_v3 = vld [vmem:[%s5141_s1] sm:$0xff] }
 0xf94   :  { %v1311_v21 = vmul.f32 %v1310_v14, %v4578_v61  ;;  %v1633_v14 = vld [vmem:[#allocation2 + $0x3f0] sm:$0xff] }
 0xf96   :  { %v1313_v32 = vmul.f32 %v3982_v2, %v1311_v21  ;;  %v1625_v2 = vld [vmem:[#allocation2 + $0x3b0] sm:$0xff]  ;;  %v1624_v21 = vld [vmem:[#allocation2 + $0x3a8] sm:$0xff] }
 0xf98   :  { %3790 = vmatmul.msk.f32.vlgmr.msra.gmra.mxu0 %vm5202_vm15, %v1313_v32  ;;  %3791 = vmatmul.msk.f32.vlgmr.msra.gmra.mxu2 %vm5203_vm0, %v1313_v32  ;;  %vm5206_vm15 = vmmov %vm5203_vm0  ;;  %v1632_v32 = vld [vmem:[#allocation2 + $0x3e8] sm:$0xff] }
 0xf99   :  { %1653 = vmatpush.msra.mxu0 %v1625_v2  ;;  %1745 = vmatpush.msra.mxu2 %v1633_v14 }
 0xf9b   :  { %1654 = vmatpush.msra.mxu0 %v1624_v21  ;;  %1746 = vmatpush.msra.mxu2 %v1632_v32 }
 0xf9d   :  { %1655 = vmatpush.msra.mxu0 %v1623_v18  ;;  %1747 = vmatpush.msra.mxu2 %v1631_v19 }
 0xf9f   :  { %1656 = vmatpush.msra.mxu0 %v1622_v20  ;;  %1748 = vmatpush.msra.mxu2 %v1630_v22 }
 0xfa0   :  { %3806 = vmatmul.msk.f32.vlgmr.msrb.gmra.mxu2 %vm5204_vm9, %v4210_v60  ;;  %v4066_v60 = vld [vmem:[#allocation2 + $0x130] sm:$0xff]  ;;  %vm5207_vm9 = vcmask 64512  }
 0xfa1   :  { %1595 = vmatpush.msra.mxu3 %v4066_v60  ;;  %3795 = vmatmul.msk.f32.vlgmr.msrb.gmra.mxu0 %vm5207_vm9, %v1438_v3  ;;  %vm5211_vm9 = vmmov %vm5203_vm0 }
 0xfa2   :  { %1699 = vmatpush.msrb.mxu0 %v1629_v23  ;;  %3827 = vmatpush.msk.msrb.mxu2 %vm4238_vm6, %v4101_v30 }
 0xfa3   :  { %1596 = vmatpush.msra.mxu3 %v4067_v42 }
 0xfa4   :  { %1700 = vmatpush.msrb.mxu0 %v1628_v24  ;;  %3828 = vmatpush.msk.msrb.mxu2 %vm5179_vm1, %v4101_v30 }
 0xfa5   :  { %1597 = vmatpush.msra.mxu3 %v4068_v44 }
 0xfa6   :  { %1701 = vmatpush.msrb.mxu0 %v1627_v25  ;;  %3829 = vmatpush.msk.msrb.mxu2 %vm5180_vm4, %v4101_v30 }
 0xfa8   :  { %1702 = vmatpush.msrb.mxu0 %v1626_v26 }
0x1015   :  { %v1350_v33 = vpop.f32.mrf.mxu0 }
0x1016   :  { %v3792_v37 = vmul.f32 -1.442695, %v1350_v33 }
0x1018   :  { %4013 = vpow2.f32 %v3792_v37 }
0x101b   :  { %v1370_v7 = vpop.f32.mrf.mxu2 }
0x101e   :  { %v4014_v48 = vpop.eup %4013 }
0x101f   :  { %v1376_v51 = vadd.f32 1.0, %v4014_v48 }
0x1021   :  { %4015 = vrcp.f32 %v1376_v51  ;;  %v1388_v58 = vand.u32 2147483648, %v1376_v51  ;;  %v1386_v1 = vand.u32 2147483647, %v1376_v51  ;;  %vm1382_vm2 = vweird.f32 %v1376_v51 }
0x1023   :  { %v1389_v4 = vor.u32 1.1754944e-38, %v1388_v58  ;;  %vm1387_vm12 = vcmp.eq.f32.partialorder %v1386_v1, 8.507059e+37  ;;  %v1576_v9 = vpop.f32.mrf.mxu2  ;;  %v4649_v1 = vpop.f32.mrf.mxu0 }
0x1027   :  { %v4016_v46 = vpop.eup %4015 }
0x1028   :  { %v1378_v54 = vmul.f32 %v4016_v46, %v1376_v51  ;;  %vm1383_vm7 = vweird.f32 %v4016_v46 }
0x1029   :  { %vm1384_vm5 = vmor %vm1382_vm2, %vm1383_vm7  ;;  %vm5208_vm7 = vcmp.lt.s32.totalorder %v4182_v28, 8 }
0x102a   :  { %v1379_v57 = vsub.f32 1.0, %v1378_v54  ;;  %3830 = vmatpush.msk.msrb.mxu2 %vm5208_vm7, %v4101_v30  ;;  %v3983_v54 = vld [vmem:[#allocation2 + $0x380] ss:$0 sm:$0xff]  ;;  %vm5212_vm7 = vmmov %vm5203_vm0 }
0x102c   :  { %v1380_v62 = vmul.f32 %v4016_v46, %v1379_v57 }
0x102e   :  { %v1381_v63 = vadd.f32 %v4016_v46, %v1380_v62 }
0x1030   :  { %v1385_v5 = vsel %vm1384_vm5, %v4016_v46, %v1381_v63 }
0x1031   :  { %v1390_v6 = vsel %vm1387_vm12, %v1389_v4, %v1385_v5 }
0x1032   :  { %v1392_v29 = vmul.f32 %v1390_v6, %v1350_v33 }
0x1034   :  { %v1393_v8 = vmul.f32 %v1392_v29, %v1370_v7  ;;  %v4653_v7 = vld [vmem:[#allocation2 + $0x150] sm:$0xff] }
0x1036   :  { %3793 = vmatmul.msk.f32.vlgmr.msrb.gmra.mxu3 %vm5205_vm11, %v1393_v8  ;;  %vm5209_vm11 = vmmov %vm5203_vm0 }
0x1037   :  { %3809 = vmatpush.msk.msrb.mxu3 %vm4254_vm13, %v4101_v30 }
0x1039   :  { %3810 = vmatpush.msk.msrb.mxu3 %vm4265_vm3, %v4101_v30 }
0x103b   :  { %3811 = vmatpush.msk.msrb.mxu3 %vm4280_vm10, %v4101_v30 }
0x103d   :  { %3812 = vmatpush.msk.msrb.mxu3 %vm4306_vm8, %v4101_v30 }
0x103e   :  { %3807 = vmatmul.msk.f32.vlgmr.msra.gmra.mxu3 %vm5206_vm15, %v1576_v9  ;;  %vm5210_vm15 = vmmov %vm5203_vm0  ;;  %v4656_v9 = vld [vmem:[#allocation2 + $0x158] sm:$0xff] }
0x103f   :  { %3815 = vmatpush.msk.msra.mxu3 %vm4254_vm13, %v4101_v30 }
0x1041   :  { %3816 = vmatpush.msk.msra.mxu3 %vm4265_vm3, %v4101_v30 }
0x1043   :  { %3817 = vmatpush.msk.msra.mxu3 %vm4280_vm10, %v4101_v30 }
0x1045   :  { %3818 = vmatpush.msk.msra.mxu3 %vm4306_vm8, %v4101_v30 }
0x10b9   :  { %v4618_v10 = vpop.f32.mrf.mxu3 }
0x10c1   :  { %v4620_v11 = vpop.f32.mrf.mxu3 }
0x10c2   :  { %v1603_v12 = vmul.f32 %v4620_v11, %v4620_v11 }
0x10c4   :  { %v1604_v13 = vsel %vm5203_vm0, %v1603_v12, 0.0 }
0x10c5   :  { %1605 = vadd.xlane.f32.xlu2 %v1604_v13 }
0x1138   :  { %v1606_v33 = vpop.xlane.xlu2 %1605 }
0x1139   :  { %v1607_v37 = vmul.f32 %v1606_v33, %v4220_v27 }
0x113b   :  { %v1608_v40 = vadd.f32 1e-06, %v1607_v37 }
0x113d   :  { %4017 = vrsqrt.f32 %v1608_v40  ;;  %vm1615_vm5 = vweird.f32 %v1608_v40 }
0x1143   :  { %v4018_v60 = vpop.eup %4017 }
0x1144   :  { %v1610_v42 = vmul.f32 %v4018_v60, %v1608_v40  ;;  %vm1616_vm2 = vweird.f32 %v4018_v60 }
0x1145   :  { %vm1617_vm12 = vmor %vm1615_vm5, %vm1616_vm2  ;;  %vm5213_vm2 = vcmask 64512  }
0x1146   :  { %v1611_v44 = vmul.f32 %v4018_v60, %v1610_v42  ;;  %vm5214_vm5 = vmmov %vm5213_vm2 }
0x1148   :  { %v1612_v48 = vmul.f32 0.5, %v1611_v44  ;;  %v1417_v44 = vadd.f32 %v4618_v10, %v4578_v61 }
0x114a   :  { %v1613_v51 = vsub.f32 1.5, %v1612_v48 }
0x114c   :  { %v1614_v46 = vmul.f32 %v4018_v60, %v1613_v51  ;;  %v1419_v51 = vmul.f32 %v1417_v44, %v1417_v44 }
0x114e   :  { %v1618_v57 = vsel %vm1617_vm12, %v4018_v60, %v1614_v46  ;;  %vm5215_vm12 = vmmov %vm5213_vm2 }
0x114f   :  { %v1619_v58 = vmul.f32 %v1618_v57, %v4620_v11  ;;  %v1992_v57 = vld [vmem:[#allocation2 + $0x448] sm:$0xff] }
0x1151   :  { %v1621_v62 = vmul.f32 %v3983_v54, %v1619_v58  ;;  %v1993_v54 = vld [vmem:[#allocation2 + $0x450] sm:$0xff] }
0x1153   :  { %3808 = vmatmul.msk.f32.vlgmr.msra.gmra.mxu0 %vm5209_vm11, %v1621_v62  ;;  %3820 = vmatmul.msk.f32.vlgmr.msra.gmra.mxu2 %vm5210_vm15, %v1621_v62  ;;  %vm5216_vm11 = vmmov %vm5213_vm2 }
0x1154   :  { %3821 = vmatpush.msk.msra.mxu0 %vm5184_vm14, %v4101_v30  ;;  %vm5217_vm15 = vmmov %vm5213_vm2 }
0x115b   :  { %3814 = vmatmul.msk.f32.vlgmr.msrb.gmra.mxu0 %vm5203_vm0, %v1621_v62  ;;  %vm5218_vm0 = vmmov %vm5213_vm2  ;;  %v1991_v62 = vld [vmem:[#allocation2 + $0x440] sm:$0xff] }
0x11d0   :  { %v1658_v63 = vpop.f32.mrf.mxu0 }
0x11d1   :  { %3813 = vmatmul.msk.f32.vlgmr.msrb.gmra.mxu3 %vm5211_vm9, %v1658_v63  ;;  %vm5219_vm9 = vmmov %vm5218_vm0  ;;  %v1661_v26 = vmul.f32 %v4653_v7, %v1658_v63 }
0x11d6   :  { %v1750_v4 = vpop.f32.mrf.mxu2 }
0x11d7   :  { %1901 = vmatpush.msrb.mxu0 %v1750_v4  ;;  %v1990_v4 = vld [vmem:[#allocation2 + $0x438] sm:$0xff] }
0x11d8   :  { %v1704_v5 = vpop.f32.mrf.mxu0 }
0x11d9   :  { %3819 = vmatmul.msk.f32.vlgmr.msra.gmra.mxu3 %vm5212_vm7, %v1704_v5  ;;  %v1707_v8 = vmul.f32 %v4653_v7, %v1704_v5  ;;  %vm5220_vm7 = vmmov %vm5218_vm0 }
0x1254   :  { %v1682_v6 = vpop.f32.mrf.mxu3 }
0x1255   :  { %v1685_v24 = vmul.f32 %v4656_v9, %v1682_v6 }
0x1257   :  { %v1686_v37 = vadd.f32 %v1685_v24, %v1661_v26 }
0x125c   :  { %v1728_v29 = vpop.f32.mrf.mxu3 }
0x125d   :  { %v1731_v12 = vmul.f32 %v4656_v9, %v1728_v29 }
0x125f   :  { %v1732_v13 = vadd.f32 %v1731_v12, %v1707_v8 }
0x1261   :  { %1753 = vxpose.xlu2.b32.start.end [1/1] (short) (narrow) %v1732_v13, 32 }
0x12fa   :  { %v1769_v3 = vpop.trf.xlu2 }
0x12fb   :  { %3822 = vmatmul.msk.f32.vlgmr.msra.gmra.mxu0 %vm5213_vm2, %v1769_v3  ;;  %vm5221_vm2 = vcmask 261120  }
0x12fc   :  { %2040 = vmatpush.msra.mxu0 %v1993_v54 }
0x12fe   :  { %2041 = vmatpush.msra.mxu0 %v1992_v57 }
0x1300   :  { %2042 = vmatpush.msra.mxu0 %v1991_v62 }
0x1302   :  { %v1770_v2 = vpop.trf.xlu2  ;;  %2043 = vmatpush.msra.mxu0 %v1990_v4 }
0x1303   :  { %3823 = vmatmul.msk.f32.gmra.mxu0 %vm5214_vm5, %v1770_v2  ;;  %vm5222_vm5 = vmmov %vm5221_vm2 }
0x130a   :  { %v1771_v14 = vpop.trf.xlu2 }
0x130b   :  { %3824 = vmatmul.msk.f32.gmra.mxu0 %vm5215_vm12, %v1771_v14  ;;  %vm5223_vm12 = vmmov %vm5221_vm2 }
0x130c   :  { %v1420_v46 = vsel %vm5223_vm12, %v1419_v51, 0.0  ;;  %vm5227_vm12 = vmmov %vm5221_vm2 }
0x1312   :  { %v1772_v21 = vpop.trf.xlu2 }
0x1313   :  { %3825 = vmatmul.msk.f32.gmra.mxu0 %vm5216_vm11, %v1772_v21  ;;  %vm5224_vm11 = vmmov %vm5221_vm2 }
0x131b   :  { %3832 = vmatmul.msk.f32.vlgmr.msrb.gmra.mxu0 %vm5217_vm15, %v4386_v50 }
0x131c   :  { %3841 = vmatpush.msk.msrb.mxu0 %vm5184_vm14, %v4101_v30 }
0x1323   :  { %3833 = vmatmul.msk.f32.gmra.mxu0 %vm5218_vm0, %v4398_v53 }
0x132b   :  { %3834 = vmatmul.msk.f32.gmra.mxu0 %vm5219_vm9, %v4409_v55 }
0x1333   :  { %3835 = vmatmul.msk.f32.gmra.mxu0 %vm5220_vm7, %v4415_v56  ;;  %vm5225_vm7 = vmmov %vm5221_vm2 }
0x1378   :  { %v1814_v32 = vpop.f32.mrf.mxu0 }
0x1379   :  { %v1826_v33 = vmul.f32 %v1814_v32, %v4376_v35 }
0x1380   :  { %v1817_v18 = vpop.f32.mrf.mxu0 }
0x1381   :  { %v1827_v25 = vmul.f32 %v1817_v18, %v4369_v31 }
0x1388   :  { %v1820_v19 = vpop.f32.mrf.mxu0 }
0x1389   :  { %v1828_v23 = vmul.f32 %v1820_v19, %v4363_v17 }
0x1390   :  { %v1823_v20 = vpop.f32.mrf.mxu0 }
0x1391   :  { %v1829_v22 = vmul.f32 %v1823_v20, %v4358_v16 }
0x1393   :  { %1845 = vmatpush.msrb.mxu3 %v1829_v22 }
0x1395   :  { %1846 = vmatpush.msrb.mxu3 %v1828_v23  ;;  %v3984_v23 = vld [vmem:[#allocation2 + $0x140] ss:$0 sm:$0xff] }
0x1397   :  { %1847 = vmatpush.msrb.mxu3 %v1827_v25 }
0x1398   :  { %v1903_v6 = vpop.f32.mrf.mxu0 }
0x1399   :  { %1848 = vmatpush.msrb.mxu3 %v1826_v33  ;;  %v1915_v33 = vmul.f32 %v1903_v6, %v4376_v35  ;;  %v1988_v6 = vld [vmem:[#allocation2 + $0x428] sm:$0xff] }
0x139a   :  { %3826 = vmatmul.msk.f32.vlgmr.msrb.gmra.mxu3 %vm5221_vm2, %v1686_v37 }
0x13a0   :  { %v1906_v12 = vpop.f32.mrf.mxu0 }
0x13a1   :  { %v1916_v25 = vmul.f32 %v1906_v12, %v4369_v31  ;;  %v1994_v12 = vld [vmem:[#allocation2 + $0x458] sm:$0xff] }
0x13a8   :  { %v1909_v3 = vpop.f32.mrf.mxu0 }
0x13a9   :  { %v1917_v20 = vmul.f32 %v1909_v3, %v4363_v17 }
0x13b0   :  { %v1912_v18 = vpop.f32.mrf.mxu0 }
0x13b1   :  { %v1918_v22 = vmul.f32 %v1912_v18, %v4358_v16 }
0x13b3   :  { %1934 = vmatpush.msra.mxu2 %v1918_v22  ;;  %v3985_v22 = vld [vmem:[#allocation2 + $0x388] ss:$0 sm:$0xff] }
0x13b5   :  { %1935 = vmatpush.msra.mxu2 %v1917_v20 }
0x13b7   :  { %1936 = vmatpush.msra.mxu2 %v1916_v25 }
0x13b9   :  { %1937 = vmatpush.msra.mxu2 %v1915_v33 }
0x141d   :  { %v1850_v40 = vpop.f32.mrf.mxu3 }
0x141e   :  { %v1853_v60 = vmul.f32 0.35355338, %v1850_v40  ;;  %v1637_v40 = vld [vmem:[#allocation2 + $0x410] sm:$0xff] }
0x1420   :  { %v1854_v42 = vadd.f32 %v1853_v60, %v4649_v1  ;;  %v1636_v60 = vld [vmem:[#allocation2 + $0x408] sm:$0xff] }
0x1422   :  { %v1855_v48 = vsel %vm5222_vm5, %v1854_v42, -inf  ;;  %vm5226_vm5 = vmmov %vm5221_vm2 }
0x1423   :  { %1856 = vmax.xlane.f32.xlu1 %v1855_v48 }
0x142b   :  { %1421 = vadd.xlane.f32.xlu1 %v1420_v46  ;;  %v1634_v46 = vld [vmem:[#allocation2 + $0x3f8] sm:$0xff] }
0x1496   :  { %v1857_v58 = vpop.xlane.xlu1 %1856 }
0x1497   :  { %v1858_v63 = vsub.f32 %v1854_v42, %v1857_v58  ;;  %v1635_v42 = vld [vmem:[#allocation2 + $0x400] sm:$0xff] }
0x1499   :  { %v1859_v5 = vmul.f32 1.442695, %v1858_v63 }
0x149b   :  { %4019 = vpow2.f32 %v1859_v5  ;;  %v1989_v5 = vld [vmem:[#allocation2 + $0x430] sm:$0xff] }
0x149e   :  { %v1422_v61 = vpop.xlane.xlu1 %1421 }
0x149f   :  { %v1423_v10 = vmul.f32 %v1422_v61, %v4220_v27  ;;  %v1987_v61 = vld [vmem:[#allocation2 + $0x420] sm:$0xff] }
0x14a1   :  { %v4020_v29 = vpop.eup %4019  ;;  %v1424_v8 = vadd.f32 1e-06, %v1423_v10  ;;  %v1986_v10 = vld [vmem:[#allocation2 + $0x418] sm:$0xff] }
0x14a2   :  { %3831 = vmatmul.msk.f32.vlgmr.msrb.gmra.mxu2 %vm5224_vm11, %v4020_v29 }
0x14a3   :  { %4021 = vrsqrt.f32 %v1424_v8  ;;  %vm1431_vm0 = vweird.f32 %v1424_v8  ;;  %1957 = vmatpush.msrb.mxu2 %v1637_v40 }
0x14a5   :  { %1958 = vmatpush.msrb.mxu2 %v1636_v60 }
0x14a7   :  { %1959 = vmatpush.msrb.mxu2 %v1635_v42 }
0x14a9   :  { %v4022_v13 = vpop.eup %4021  ;;  %1960 = vmatpush.msrb.mxu2 %v1634_v46 }
0x14aa   :  { %v1426_v2 = vmul.f32 %v4022_v13, %v1424_v8  ;;  %vm1432_vm15 = vweird.f32 %v4022_v13  ;;  %v1996_v8 = vld [vmem:[#allocation2 + $0x468] sm:$0xff] }
0x14ab   :  { %vm1433_vm9 = vmor %vm1431_vm0, %vm1432_vm15 }
0x14ac   :  { %v1427_v14 = vmul.f32 %v4022_v13, %v1426_v2 }
0x14ae   :  { %v1428_v21 = vmul.f32 0.5, %v1427_v14 }
0x14b0   :  { %v1429_v32 = vsub.f32 1.5, %v1428_v21 }
0x14b2   :  { %v1430_v19 = vmul.f32 %v4022_v13, %v1429_v32 }
0x14b4   :  { %v1434_v24 = vsel %vm1433_vm9, %v4022_v13, %v1430_v19  ;;  %vm5228_vm9 = vmmov %vm5221_vm2 }
0x14b5   :  { %v1435_v26 = vmul.f32 %v1434_v24, %v1417_v44 }
0x14b7   :  { %v4692_v37 = vmul.f32 %v3984_v23, %v1435_v26 }
0x14b9   :  { %3839 = vmatmul.msk.f32.vlgmr.msra.gmra.mxu0 %vm5225_vm7, %v4692_v37  ;;  %vm5229_vm7 = vcmp.lt.s32.totalorder %v4182_v28, 8 }
0x1525   :  { %v1881_v48 = vpop.f32.mrf.mxu2 }
0x1526   :  { %4023 = vrcp.f32 %v1881_v48 }
0x152c   :  { %v4024_v51 = vpop.eup %4023 }
0x152d   :  { %v1885_v44 = vmul.f32 %v4024_v51, %v4020_v29  ;;  %v1997_v29 = vld [vmem:[#allocation2 + $0x470] sm:$0xff] }
0x152f   :  { %3836 = vmatmul.msk.f32.vlgmr.msra.gmra.mxu2 %vm5221_vm2, %v1885_v44 }
0x1530   :  { %2017 = vmatpush.msra.mxu2 %v1989_v5 }
0x1532   :  { %2018 = vmatpush.msra.mxu2 %v1988_v6 }
0x1534   :  { %2019 = vmatpush.msra.mxu2 %v1987_v61 }
0x1536   :  { %v2045_v4 = vpop.f32.mrf.mxu0  ;;  %2020 = vmatpush.msra.mxu2 %v1986_v10  ;;  %v204_v10 = vld [vmem:[%s5140_s0 + $0xa0] sm:$0xff] }
0x15b2   :  { %v1939_v54 = vpop.f32.mrf.mxu2 }
0x15b3   :  { %3837 = vmatmul.msk.f32.vlgmr.msrb.gmra.mxu2 %vm5226_vm5, %v1939_v54  ;;  %vm5230_vm5 = vcmask 64512  }
0x15b4   :  { %2060 = vmatpush.msrb.mxu2 %v1997_v29  ;;  %v205_v29 = vld [vmem:[%s5140_s0 + $0xa8] sm:$0xff] }
0x15b6   :  { %2061 = vmatpush.msrb.mxu2 %v1996_v8 }
0x1636   :  { %v1962_v57 = vpop.f32.mrf.mxu2 }
0x1637   :  { %v4699_v58 = vadd.f32 %v1962_v57, %v4620_v11  ;;  %v1995_v11 = vld [vmem:[#allocation2 + $0x460] sm:$0xff] }
0x1638   :  { %2062 = vmatpush.msrb.mxu2 %v1995_v11 }
0x1639   :  { %v1967_v62 = vmul.f32 %v4699_v58, %v4699_v58 }
0x163a   :  { %2063 = vmatpush.msrb.mxu2 %v1994_v12 }
0x163b   :  { %v1968_v63 = vsel %vm5227_vm12, %v1967_v62, 0.0  ;;  %vm5231_vm12 = vmmov %vm5230_vm5 }
0x163c   :  { %1969 = vadd.xlane.f32.xlu1 %v1968_v63 }
0x1676   :  { %2068 = vxpose.xlu1.b32.start.end [1/1] (short) (narrow) %v2045_v4, 32 }
0x16af   :  { %v1970_v13 = vpop.xlane.xlu1 %1969 }
0x16b0   :  { %v1971_v3 = vmul.f32 %v1970_v13, %v4220_v27 }
0x16b2   :  { %v1972_v2 = vadd.f32 1e-06, %v1971_v3 }
0x16b4   :  { %4025 = vrsqrt.f32 %v1972_v2  ;;  %vm1979_vm15 = vweird.f32 %v1972_v2 }
0x16ba   :  { %v4026_v14 = vpop.eup %4025 }
0x16bb   :  { %v1974_v21 = vmul.f32 %v4026_v14, %v1972_v2  ;;  %vm1980_vm11 = vweird.f32 %v4026_v14 }
0x16bc   :  { %vm1981_vm0 = vmor %vm1979_vm15, %vm1980_vm11 }
0x16bd   :  { %v1975_v32 = vmul.f32 %v4026_v14, %v1974_v21  ;;  %vm5232_vm11 = vmmov %vm5230_vm5 }
0x16be   :  { %vm5233_vm15 = vmmov %vm5230_vm5 }
0x16bf   :  { %v1976_v18 = vmul.f32 0.5, %v1975_v32 }
0x16c1   :  { %v1977_v19 = vsub.f32 1.5, %v1976_v18 }
0x16c3   :  { %v1978_v20 = vmul.f32 %v4026_v14, %v1977_v19 }
0x16c5   :  { %v1982_v23 = vsel %vm1981_vm0, %v4026_v14, %v1978_v20  ;;  %vm5234_vm0 = vmmov %vm5221_vm2 }
0x16c6   :  { %v1983_v24 = vmul.f32 %v1982_v23, %v4699_v58  ;;  %v2000_v23 = vld [vmem:[#allocation2 + $0x488] sm:$0xff] }
0x16c8   :  { %v1985_v25 = vmul.f32 %v3985_v22, %v1983_v24  ;;  %v2001_v22 = vld [vmem:[#allocation2 + $0x490] sm:$0xff]  ;;  %v1999_v24 = vld [vmem:[#allocation2 + $0x480] sm:$0xff] }
0x16c9   :  { %2271 = vmatpush.msra.mxu1 %v2001_v22  ;;  %v2312_v22 = vld [vmem:[#allocation2 + $0x4f8] sm:$0xff] }
0x16ca   :  { %3838 = vmatmul.msk.f32.vlgmr.msra.gmra.mxu2 %vm5228_vm9, %v1985_v25  ;;  %vm5235_vm9 = vmmov %vm5230_vm5 }
0x16cb   :  { %3847 = vmatpush.msk.msra.mxu2 %vm4238_vm6, %v4101_v30  ;;  %2272 = vmatpush.msra.mxu1 %v2000_v23  ;;  %v2311_v23 = vld [vmem:[#allocation2 + $0x4f0] sm:$0xff] }
0x16cd   :  { %3848 = vmatpush.msk.msra.mxu2 %vm5179_vm1, %v4101_v30  ;;  %2273 = vmatpush.msra.mxu1 %v1999_v24  ;;  %v2310_v24 = vld [vmem:[#allocation2 + $0x4e8] sm:$0xff] }
0x16cf   :  { %3849 = vmatpush.msk.msra.mxu2 %vm5180_vm4, %v4101_v30 }
0x16d1   :  { %3850 = vmatpush.msk.msra.mxu2 %vm5229_vm7, %v4101_v30  ;;  %vm5236_vm7 = vmmov %vm5230_vm5 }
0x16d2   :  { %3840 = vmatmul.msk.f32.vlgmr.msrb.gmra.mxu2 %vm5221_vm2, %v4692_v37  ;;  %vm5237_vm2 = vmmov %vm5230_vm5 }
0x171a   :  { %v2084_v26 = vpop.trf.xlu1 }
0x171b   :  { %3842 = vmatmul.msk.f32.vlgmr.msrb.gmra.mxu0 %vm5230_vm5, %v2084_v26  ;;  %vm5238_vm5 = vmmov %vm5237_vm2 }
0x1722   :  { %v2085_v33 = vpop.trf.xlu1 }
0x1723   :  { %3843 = vmatmul.msk.f32.gmra.mxu0 %vm5231_vm12, %v2085_v33  ;;  %vm5239_vm12 = vmmov %vm5234_vm0 }
0x172a   :  { %v2086_v40 = vpop.trf.xlu1 }
0x172b   :  { %3844 = vmatmul.msk.f32.gmra.mxu0 %vm5232_vm11, %v2086_v40  ;;  %vm5240_vm11 = vmmov %vm5234_vm0  ;;  %v1998_v40 = vld [vmem:[#allocation2 + $0x478] sm:$0xff] }
0x172c   :  { %2274 = vmatpush.msra.mxu1 %v1998_v40 }
0x1732   :  { %v2087_v60 = vpop.trf.xlu1 }
0x1733   :  { %3845 = vmatmul.msk.f32.gmra.mxu0 %vm5233_vm15, %v2087_v60  ;;  %vm5241_vm15 = vmmov %vm5234_vm0 }
0x174d   :  { %v2022_v44 = vpop.f32.mrf.mxu2 }
0x1755   :  { %v2065_v4 = vpop.f32.mrf.mxu2 }
0x1798   :  { %v2129_v42 = vpop.f32.mrf.mxu0 }
0x1799   :  { %v2141_v63 = vmul.f32 %v2129_v42, %v4376_v35 }
0x17a0   :  { %v2132_v48 = vpop.f32.mrf.mxu0 }
0x17a1   :  { %v2142_v62 = vmul.f32 %v2132_v48, %v4369_v31 }
0x17a8   :  { %v2135_v51 = vpop.f32.mrf.mxu0 }
0x17a9   :  { %v2143_v57 = vmul.f32 %v2135_v51, %v4363_v17 }
0x17b0   :  { %v2138_v46 = vpop.f32.mrf.mxu0 }
0x17b1   :  { %v2144_v54 = vmul.f32 %v2138_v46, %v4358_v16  ;;  %v2303_v46 = vld [vmem:[#allocation2 + $0x4b0] sm:$0xff] }
0x17b3   :  { %2160 = vmatpush.msra.mxu3 %v2144_v54  ;;  %v2307_v54 = vld [vmem:[#allocation2 + $0x4d0] sm:$0xff] }
0x17b4   :  { %2351 = vmatpush.msrb.mxu1 %v2307_v54 }
0x17b5   :  { %2161 = vmatpush.msra.mxu3 %v2143_v57  ;;  %v2302_v57 = vld [vmem:[#allocation2 + $0x4a8] sm:$0xff] }
0x17b7   :  { %2162 = vmatpush.msra.mxu3 %v2142_v62  ;;  %v2306_v62 = vld [vmem:[#allocation2 + $0x4c8] sm:$0xff] }
0x17b8   :  { %2352 = vmatpush.msrb.mxu1 %v2306_v62 }
0x17b9   :  { %2163 = vmatpush.msra.mxu3 %v2141_v63  ;;  %v2301_v63 = vld [vmem:[#allocation2 + $0x4a0] sm:$0xff] }
0x17ba   :  { %3846 = vmatmul.msk.f32.vlgmr.msra.gmra.mxu3 %vm5234_vm0, %v2022_v44 }
0x17bb   :  { %2215 = vmatpush.msrb.mxu3 %v2065_v4  ;;  %v2305_v4 = vld [vmem:[#allocation2 + $0x4c0] sm:$0xff] }
0x17bc   :  { %2353 = vmatpush.msrb.mxu1 %v2305_v4 }
0x17c2   :  { %3852 = vmatmul.msk.f32.vlgmr.msrb.gmra.mxu3 %vm5235_vm9, %v4386_v50  ;;  %vm5242_vm9 = vmmov %vm5234_vm0 }
0x17ca   :  { %3853 = vmatmul.msk.f32.gmra.mxu3 %vm5236_vm7, %v4398_v53 }
0x17d2   :  { %3854 = vmatmul.msk.f32.gmra.mxu3 %vm5237_vm2, %v4409_v55 }
0x17da   :  { %3855 = vmatmul.msk.f32.gmra.mxu3 %vm5238_vm5, %v4415_v56 }
0x183d   :  { %v2165_v5 = vpop.f32.mrf.mxu3 }
0x183e   :  { %v2168_v6 = vmul.f32 0.35355338, %v2165_v5  ;;  %v2304_v5 = vld [vmem:[#allocation2 + $0x4b8] sm:$0xff] }
0x183f   :  { %2354 = vmatpush.msrb.mxu1 %v2304_v5 }
0x1840   :  { %v2169_v61 = vsel %vm5239_vm12, %v2168_v6, -inf  ;;  %vm5243_vm12 = vmmov %vm5234_vm0 }
0x1841   :  { %2170 = vmax.xlane.f32.xlu2 %v2169_v61 }
0x1845   :  { %v2217_v8 = vpop.f32.mrf.mxu3 }
0x1846   :  { %v2229_v20 = vmul.f32 %v2217_v8, %v4376_v35 }
0x184d   :  { %v2220_v11 = vpop.f32.mrf.mxu3 }
0x184e   :  { %v2230_v19 = vmul.f32 %v2220_v11, %v4369_v31 }
0x1855   :  { %v2223_v3 = vpop.f32.mrf.mxu3 }
0x1856   :  { %v2231_v18 = vmul.f32 %v2223_v3, %v4363_v17 }
0x1859   :  { %3224 = vperm.xlu2 %3978, %v204_v10  }
0x185d   :  { %v2226_v14 = vpop.f32.mrf.mxu3 }
0x185e   :  { %v2232_v21 = vmul.f32 %v2226_v14, %v4358_v16 }
0x1860   :  { %2248 = vmatpush.msrb.mxu2 %v2232_v21 }
0x1861   :  { %3227 = vperm.xlu2 %3978, %v205_v29  }
0x1862   :  { %2249 = vmatpush.msrb.mxu2 %v2231_v18  ;;  %v2315_v18 = vld [vmem:[#allocation2 + $0x510] sm:$0xff] }
0x1863   :  { %2391 = vmatpush.msra.mxu0 %v2315_v18  ;;  %v2428_v18 = vld [vmem:[#allocation2 + $0x550] sm:$0xff] }
0x1864   :  { %2250 = vmatpush.msrb.mxu2 %v2230_v19  ;;  %v2314_v19 = vld [vmem:[#allocation2 + $0x508] sm:$0xff] }
0x1865   :  { %2392 = vmatpush.msra.mxu0 %v2314_v19 }
0x1866   :  { %2251 = vmatpush.msrb.mxu2 %v2229_v20  ;;  %v2313_v20 = vld [vmem:[#allocation2 + $0x500] sm:$0xff] }
0x1867   :  { %2393 = vmatpush.msra.mxu0 %v2313_v20 }
0x1869   :  { %2394 = vmatpush.msra.mxu0 %v2312_v22 }
0x186b   :  { %2395 = vmatpush.msra.mxu0 %v2311_v23 }
0x186d   :  { %2396 = vmatpush.msra.mxu0 %v2310_v24 }
0x18b4   :  { %v2171_v12 = vpop.xlane.xlu2 %2170 }
0x18b5   :  { %v2172_v13 = vsub.f32 %v2168_v6, %v2171_v12 }
0x18b7   :  { %v2173_v2 = vmul.f32 1.442695, %v2172_v13 }
0x18b9   :  { %4027 = vpow2.f32 %v2173_v2  ;;  %v3986_v2 = vld [vmem:[#allocation2 + $0x390] ss:$0 sm:$0xff] }
0x18bf   :  { %v4028_v32 = vpop.eup %4027 }
0x18c0   :  { %3851 = vmatmul.msk.f32.vlgmr.msra.gmra.mxu2 %vm5240_vm11, %v4028_v32  ;;  %vm5244_vm11 = vmmov %vm5234_vm0 }
0x18c1   :  { %2331 = vmatpush.msra.mxu2 %v2303_v46 }
0x18c3   :  { %2332 = vmatpush.msra.mxu2 %v2302_v57 }
0x18c5   :  { %2333 = vmatpush.msra.mxu2 %v2301_v63 }
0x1943   :  { %v2195_v25 = vpop.f32.mrf.mxu2 }
0x1944   :  { %4029 = vrcp.f32 %v2195_v25  ;;  %v2309_v25 = vld [vmem:[#allocation2 + $0x4e0] sm:$0xff] }
0x1945   :  { %2397 = vmatpush.msra.mxu0 %v2309_v25 }
0x194a   :  { %v4030_v26 = vpop.eup %4029 }
0x194b   :  { %v2199_v33 = vmul.f32 %v4030_v26, %v4028_v32  ;;  %v2308_v26 = vld [vmem:[#allocation2 + $0x4d8] sm:$0xff] }
0x194c   :  { %2398 = vmatpush.msra.mxu0 %v2308_v26 }
0x194d   :  { %3856 = vmatmul.msk.f32.vlgmr.msrb.gmra.mxu2 %vm5241_vm15, %v2199_v33 }
0x194e   :  { %3869 = vmatpush.msk.msrb.mxu0 %vm4254_vm13, %v4101_v30 }
0x1950   :  { %3870 = vmatpush.msk.msrb.mxu0 %vm4265_vm3, %v4101_v30 }
0x1952   :  { %3871 = vmatpush.msk.msrb.mxu0 %vm4280_vm10, %v4101_v30 }
0x1954   :  { %3872 = vmatpush.msk.msrb.mxu0 %vm4306_vm8, %v4101_v30 }
0x19d0   :  { %v2253_v60 = vpop.f32.mrf.mxu2 }
0x19d1   :  { %3857 = vmatmul.msk.f32.vlgmr.msra.gmra.mxu1 %vm5234_vm0, %v2253_v60  ;;  %vm5246_vm0 = vcmp.lt.s32.totalorder %v4182_v28, 8 }
0x19d2   :  { %3863 = vmatpush.msk.msra.mxu1 %vm4254_vm13, %v4101_v30 }
0x19d4   :  { %3864 = vmatpush.msk.msra.mxu1 %vm4265_vm3, %v4101_v30 }
0x19d6   :  { %3865 = vmatpush.msk.msra.mxu1 %vm4280_vm10, %v4101_v30 }
0x19d8   :  { %3866 = vmatpush.msk.msra.mxu1 %vm4306_vm8, %v4101_v30  ;;  %vm5245_vm8 = vcmask 523264  }
0x1a4e   :  { %v2276_v42 = vpop.f32.mrf.mxu1 }
0x1a4f   :  { %v4753_v48 = vadd.f32 %v2276_v42, %v4699_v58  ;;  %v2300_v58 = vld [vmem:[#allocation2 + $0x498] sm:$0xff] }
0x1a50   :  { %2334 = vmatpush.msra.mxu2 %v2300_v58 }
0x1a51   :  { %v2281_v51 = vmul.f32 %v4753_v48, %v4753_v48 }
0x1a53   :  { %v2282_v44 = vsel %vm5242_vm9, %v2281_v51, 0.0 }
0x1a54   :  { %2283 = vadd.xlane.f32.xlu0 %v2282_v44 }
0x1ac7   :  { %v2284_v6 = vpop.xlane.xlu0 %2283 }
0x1ac8   :  { %v2285_v61 = vmul.f32 %v2284_v6, %v4220_v27 }
0x1aca   :  { %v2286_v10 = vadd.f32 1e-06, %v2285_v61 }
0x1acc   :  { %4031 = vrsqrt.f32 %v2286_v10  ;;  %vm2293_vm2 = vweird.f32 %v2286_v10 }
0x1ad2   :  { %v4032_v29 = vpop.eup %4031 }
0x1ad3   :  { %v2288_v8 = vmul.f32 %v4032_v29, %v2286_v10  ;;  %vm2294_vm7 = vweird.f32 %v4032_v29 }
0x1ad4   :  { %vm2295_vm5 = vmor %vm2293_vm2, %vm2294_vm7 }
0x1ad5   :  { %v2289_v11 = vmul.f32 %v4032_v29, %v2288_v8  ;;  %v2435_v8 = vld [vmem:[#allocation2 + $0x588] sm:$0xff] }
0x1ad6   :  { %2547 = vmatpush.msra.mxu3 %v2435_v8 }
0x1ad7   :  { %v2290_v12 = vmul.f32 0.5, %v2289_v11  ;;  %v2426_v11 = vld [vmem:[#allocation2 + $0x540] sm:$0xff] }
0x1ad9   :  { %v2291_v13 = vsub.f32 1.5, %v2290_v12  ;;  %v2434_v12 = vld [vmem:[#allocation2 + $0x580] sm:$0xff] }
0x1ada   :  { %2548 = vmatpush.msra.mxu3 %v2434_v12 }
0x1adb   :  { %v2292_v3 = vmul.f32 %v4032_v29, %v2291_v13  ;;  %v2425_v13 = vld [vmem:[#allocation2 + $0x538] sm:$0xff] }
0x1add   :  { %v2296_v14 = vsel %vm2295_vm5, %v4032_v29, %v2292_v3  ;;  %v2427_v29 = vld [vmem:[#allocation2 + $0x548] sm:$0xff]  ;;  %v2433_v3 = vld [vmem:[#allocation2 + $0x578] sm:$0xff] }
0x1ade   :  { %v2297_v21 = vmul.f32 %v2296_v14, %v4753_v48  ;;  %2455 = vmatpush.msrb.mxu2 %v2427_v29  ;;  %2549 = vmatpush.msra.mxu3 %v2433_v3  ;;  %v2431_v14 = vld [vmem:[#allocation2 + $0x568] sm:$0xff] }
0x1ae0   :  { %v2299_v32 = vmul.f32 %v3986_v2, %v2297_v21  ;;  %2456 = vmatpush.msrb.mxu2 %v2426_v11  ;;  %v2432_v2 = vld [vmem:[#allocation2 + $0x570] sm:$0xff]  ;;  %v2430_v21 = vld [vmem:[#allocation2 + $0x560] sm:$0xff] }
0x1ae1   :  { %2550 = vmatpush.msra.mxu3 %v2432_v2 }
0x1ae2   :  { %3858 = vmatmul.msk.f32.vlgmr.msra.gmra.mxu2 %vm5243_vm12, %v2299_v32  ;;  %3859 = vmatmul.msk.f32.vlgmr.msrb.gmra.mxu1 %vm5244_vm11, %v2299_v32  ;;  %v2429_v32 = vld [vmem:[#allocation2 + $0x558] sm:$0xff]  ;;  %vm5247_vm12 = vmmov %vm5242_vm9 }
0x1ae3   :  { %3875 = vmatpush.msk.msrb.mxu1 %vm5184_vm14, %v4101_v30  ;;  %2457 = vmatpush.msrb.mxu2 %v2425_v13  ;;  %vm5248_vm11 = vmmov %vm5242_vm9 }
0x1b5f   :  { %v2356_v59 = vpop.f32.mrf.mxu1 }
0x1b65   :  { %v2336_v33 = vpop.f32.mrf.mxu2 }
0x1b66   :  { %v3860_v40 = vmul.f32 -1.442695, %v2336_v33 }
0x1b68   :  { %4033 = vpow2.f32 %v3860_v40 }
0x1b6e   :  { %v4034_v60 = vpop.eup %4033 }
0x1b6f   :  { %v2362_v42 = vadd.f32 1.0, %v4034_v60  ;;  %v3987_v60 = vld [vmem:[#allocation2 + $0x518] ss:$0 sm:$0xff] }
0x1b71   :  { %4035 = vrcp.f32 %v2362_v42  ;;  %v2374_v46 = vand.u32 2147483648, %v2362_v42  ;;  %v2372_v57 = vand.u32 2147483647, %v2362_v42  ;;  %vm2368_vm3 = vweird.f32 %v2362_v42 }
0x1b73   :  { %v2375_v62 = vor.u32 1.1754944e-38, %v2374_v46  ;;  %vm2373_vm10 = vcmp.eq.f32.partialorder %v2372_v57, 8.507059e+37 }
0x1b77   :  { %v4036_v51 = vpop.eup %4035 }
0x1b78   :  { %v2364_v44 = vmul.f32 %v4036_v51, %v2362_v42  ;;  %vm2369_vm13 = vweird.f32 %v4036_v51 }
0x1b79   :  { %vm2370_vm15 = vmor %vm2368_vm3, %vm2369_vm13 }
0x1b7a   :  { %v2365_v43 = vsub.f32 1.0, %v2364_v44  ;;  %vm5249_vm13 = vmmov %vm5242_vm9 }
0x1b7b   :  { %vm5250_vm3 = vmmov %vm5242_vm9 }
0x1b7c   :  { %v2366_v54 = vmul.f32 %v4036_v51, %v2365_v43 }
0x1b7e   :  { %v2367_v45 = vadd.f32 %v4036_v51, %v2366_v54 }
0x1b80   :  { %v2371_v49 = vsel %vm2370_vm15, %v4036_v51, %v2367_v45  ;;  %vm5251_vm15 = vcmask 64512  }
0x1b81   :  { %v2376_v63 = vsel %vm2373_vm10, %v2375_v62, %v2371_v49  ;;  %vm5252_vm10 = vmmov %vm5250_vm3 }
0x1b82   :  { %v2378_v4 = vmul.f32 %v2376_v63, %v2336_v33 }
0x1b84   :  { %v2379_v58 = vmul.f32 %v2378_v4, %v2356_v59 }
0x1b86   :  { %3861 = vmatmul.msk.f32.vlgmr.msra.gmra.mxu0 %vm5245_vm8, %v2379_v58  ;;  %vm5253_vm8 = vmmov %vm5251_vm15 }
0x1b87   :  { %3881 = vmatpush.msk.msra.mxu0 %vm4238_vm6, %v4101_v30 }
0x1b89   :  { %3882 = vmatpush.msk.msra.mxu0 %vm5179_vm1, %v4101_v30 }
0x1b8b   :  { %3883 = vmatpush.msk.msra.mxu0 %vm5180_vm4, %v4101_v30 }
0x1b8d   :  { %3884 = vmatpush.msk.msra.mxu0 %vm5246_vm0, %v4101_v30  ;;  %vm5254_vm0 = vmmov %vm5253_vm8 }
0x1c03   :  { %v2400_v5 = vpop.f32.mrf.mxu0 }
0x1c04   :  { %v4803_v6 = vadd.f32 %v2400_v5, %v4753_v48  ;;  %v2424_v48 = vld [vmem:[#allocation2 + $0x530] sm:$0xff] }
0x1c05   :  { %2458 = vmatpush.msrb.mxu2 %v2424_v48 }
0x1c06   :  { %v2405_v61 = vmul.f32 %v4803_v6, %v4803_v6 }
0x1c07   :  { %2501 = vmatpush.msra.mxu2 %v2431_v14 }
0x1c08   :  { %v2406_v10 = vsel %vm5242_vm9, %v2405_v61, 0.0  ;;  %vm5255_vm9 = vmmov %vm5254_vm0 }
0x1c09   :  { %2407 = vadd.xlane.f32.xlu0 %v2406_v10  ;;  %2502 = vmatpush.msra.mxu2 %v2430_v21 }
0x1c0b   :  { %2503 = vmatpush.msra.mxu2 %v2429_v32 }
0x1c0d   :  { %2504 = vmatpush.msra.mxu2 %v2428_v18 }
0x1c7c   :  { %v2408_v19 = vpop.xlane.xlu0 %2407 }
0x1c7d   :  { %v2409_v20 = vmul.f32 %v2408_v19, %v4220_v27 }
0x1c7f   :  { %v2410_v22 = vadd.f32 1e-06, %v2409_v20 }
0x1c81   :  { %4037 = vrsqrt.f32 %v2410_v22  ;;  %vm2417_vm2 = vweird.f32 %v2410_v22 }
0x1c87   :  { %v4038_v23 = vpop.eup %4037 }
0x1c88   :  { %v2412_v24 = vmul.f32 %v4038_v23, %v2410_v22  ;;  %vm2418_vm7 = vweird.f32 %v4038_v23 }
0x1c89   :  { %vm2419_vm5 = vmor %vm2417_vm2, %vm2418_vm7 }
0x1c8a   :  { %v2413_v25 = vmul.f32 %v4038_v23, %v2412_v24  ;;  %vm5256_vm7 = vmmov %vm5254_vm0 }
0x1c8b   :  { %vm5257_vm2 = vmmov %vm5254_vm0 }
0x1c8c   :  { %v2414_v26 = vmul.f32 0.5, %v2413_v25 }
0x1c8e   :  { %v2415_v33 = vsub.f32 1.5, %v2414_v26 }
0x1c90   :  { %v2416_v40 = vmul.f32 %v4038_v23, %v2415_v33 }
0x1c92   :  { %v2420_v42 = vsel %vm2419_vm5, %v4038_v23, %v2416_v40  ;;  %vm5258_vm5 = vmmov %vm5254_vm0 }
0x1c93   :  { %v2421_v51 = vmul.f32 %v2420_v42, %v4803_v6  ;;  %v2439_v42 = vld [vmem:[#allocation2 + $0x5a8] sm:$0xff] }
0x1c95   :  { %v2423_v44 = vmul.f32 %v3987_v60, %v2421_v51  ;;  %v2438_v51 = vld [vmem:[#allocation2 + $0x5a0] sm:$0xff] }
0x1c97   :  { %3862 = vmatmul.msk.f32.vlgmr.msrb.gmra.mxu2 %vm5247_vm12, %v2423_v44  ;;  %3874 = vmatmul.msk.f32.vlgmr.msra.gmra.mxu3 %vm5248_vm11, %v2423_v44  ;;  %vm5259_vm12 = vmmov %vm5254_vm0 }
0x1c98   :  { %vm5260_vm11 = vmmov %vm5250_vm3 }
0x1c9f   :  { %3868 = vmatmul.msk.f32.vlgmr.msra.gmra.mxu2 %vm5249_vm13, %v2423_v44  ;;  %vm5261_vm13 = vmmov %vm5250_vm3  ;;  %v2437_v44 = vld [vmem:[#allocation2 + $0x598] sm:$0xff] }
0x1d1a   :  { %v2460_v43 = vpop.f32.mrf.mxu2  ;;  %v2552_v46 = vpop.f32.mrf.mxu3 }
0x1d1b   :  { %3867 = vmatmul.msk.f32.vlgmr.msra.gmra.mxu1 %vm5250_vm3, %v2460_v43  ;;  %2703 = vmatpush.msrb.mxu3 %v2552_v46  ;;  %v2463_v48 = vmul.f32 %v4653_v7, %v2460_v43 }
0x1d1c   :  { %3886 = vmatmul.msk.f32.vlgmr.msrb.gmra.mxu3 %vm5251_vm15, %v4386_v50  ;;  %vm5262_vm15 = vmmov %vm5250_vm3 }
0x1d22   :  { %v2506_v54 = vpop.f32.mrf.mxu2 }
0x1d23   :  { %3873 = vmatmul.msk.f32.vlgmr.msrb.gmra.mxu0 %vm5252_vm10, %v2506_v54  ;;  %v2509_v45 = vmul.f32 %v4653_v7, %v2506_v54  ;;  %vm5263_vm10 = vmmov %vm5250_vm3 }
0x1d24   :  { %3887 = vmatmul.msk.f32.gmra.mxu3 %vm5253_vm8, %v4398_v53  ;;  %2759 = vmatpush.msrb.mxu0 %v2439_v42  ;;  %vm5264_vm8 = vmmov %vm5250_vm3  ;;  %v3314_v42 = vld [vmem:[#allocation2 + $0xd8] sm:$0xff] }
0x1d26   :  { %2760 = vmatpush.msrb.mxu0 %v2438_v51  ;;  %v3313_v51 = vld [vmem:[#allocation2 + $0xd0] sm:$0xff] }
0x1d28   :  { %2761 = vmatpush.msrb.mxu0 %v2437_v44  ;;  %v3312_v44 = vld [vmem:[#allocation2 + $0xc8] sm:$0xff] }
0x1d2c   :  { %3888 = vmatmul.msk.f32.gmra.mxu3 %vm5254_vm0, %v4409_v55  ;;  %vm5265_vm0 = vmmov %vm5250_vm3 }
0x1d34   :  { %3889 = vmatmul.msk.f32.gmra.mxu3 %vm5255_vm9, %v4415_v56 }
0x1d98   :  { %v2484_v5 = vpop.f32.mrf.mxu1 }
0x1d99   :  { %v2487_v13 = vmul.f32 %v4656_v9, %v2484_v5 }
0x1d9b   :  { %v2488_v14 = vadd.f32 %v2487_v13, %v2463_v48  ;;  %v2798_v13 = vld [vmem:[#allocation2 + $0x600] sm:$0xff] }
0x1da0   :  { %v2530_v57 = vpop.f32.mrf.mxu0 }
0x1da1   :  { %v2533_v62 = vmul.f32 %v4656_v9, %v2530_v57  ;;  %v2705_v9 = vpop.f32.mrf.mxu3  ;;  %v2436_v57 = vld [vmem:[#allocation2 + $0x590] sm:$0xff] }
0x1da2   :  { %2762 = vmatpush.msrb.mxu0 %v2436_v57  ;;  %v3307_v57 = vld [vmem:[#allocation2 + $0xa0] sm:$0xff] }
0x1da3   :  { %v2534_v49 = vadd.f32 %v2533_v62, %v2509_v45  ;;  %v2795_v45 = vld [vmem:[#allocation2 + $0x5e8] sm:$0xff]  ;;  %v2794_v62 = vld [vmem:[#allocation2 + $0x5e0] sm:$0xff] }
0x1da5   :  { %2555 = vxpose.xlu1.b32.start.end [1/1] (short) (narrow) %v2534_v49, 32  ;;  %v2793_v49 = vld [vmem:[#allocation2 + $0x5d8] sm:$0xff] }
0x1da9   :  { %v2708_v20 = vpop.f32.mrf.mxu3 }
0x1daa   :  { %v2718_v40 = vmul.f32 %v2708_v20, %v4369_v31 }
0x1db1   :  { %v2711_v22 = vpop.f32.mrf.mxu3 }
0x1db2   :  { %v2719_v26 = vmul.f32 %v2711_v22, %v4363_v17  ;;  %v3988_v22 = vld [vmem:[#allocation2 + $0x520] ss:$0 sm:$0xff] }
0x1db9   :  { %v2714_v25 = vpop.f32.mrf.mxu3 }
0x1dba   :  { %v2720_v33 = vmul.f32 %v2714_v25, %v4358_v16 }
0x1e49   :  { %v2571_v63 = vpop.trf.xlu1 }
0x1e4a   :  { %3876 = vmatmul.msk.f32.vlgmr.msrb.gmra.mxu1 %vm5256_vm7, %v2571_v63  ;;  %v2792_v63 = vld [vmem:[#allocation2 + $0x5d0] sm:$0xff] }
0x1e51   :  { %v2572_v4 = vpop.trf.xlu1 }
0x1e52   :  { %3877 = vmatmul.msk.f32.gmra.mxu1 %vm5257_vm2, %v2572_v4  ;;  %vm5266_vm2 = vmmov %vm5265_vm0 }
0x1e59   :  { %v2573_v59 = vpop.trf.xlu1 }
0x1e5a   :  { %3878 = vmatmul.msk.f32.gmra.mxu1 %vm5258_vm5, %v2573_v59  ;;  %vm5267_vm5 = vcmp.lt.s32.totalorder %v4182_v28, 8 }
0x1e61   :  { %v2574_v58 = vpop.trf.xlu1 }
0x1e62   :  { %3879 = vmatmul.msk.f32.gmra.mxu1 %vm5259_vm12, %v2574_v58  ;;  %vm5268_vm12 = vmmov %vm5265_vm0 }
0x1ec7   :  { %v2616_v61 = vpop.f32.mrf.mxu1 }
0x1ec8   :  { %v2628_v2 = vmul.f32 %v2616_v61, %v4376_v35 }
0x1ecf   :  { %v2619_v10 = vpop.f32.mrf.mxu1 }
0x1ed0   :  { %v2629_v3 = vmul.f32 %v2619_v10, %v4369_v31 }
0x1ed7   :  { %v2622_v29 = vpop.f32.mrf.mxu1 }
0x1ed8   :  { %v2630_v12 = vmul.f32 %v2622_v29, %v4363_v17  ;;  %v2791_v29 = vld [vmem:[#allocation2 + $0x5c8] sm:$0xff] }
0x1edf   :  { %v2625_v8 = vpop.f32.mrf.mxu1 }
0x1ee0   :  { %v2631_v11 = vmul.f32 %v2625_v8, %v4358_v16  ;;  %v2790_v8 = vld [vmem:[#allocation2 + $0x5c0] sm:$0xff] }
0x1ee2   :  { %2647 = vmatpush.msrb.mxu2 %v2631_v11  ;;  %v2788_v11 = vld [vmem:[#allocation2 + $0x5b0] sm:$0xff] }
0x1ee4   :  { %2648 = vmatpush.msrb.mxu2 %v2630_v12  ;;  %v2799_v12 = vld [vmem:[#allocation2 + $0x608] sm:$0xff] }
0x1ee6   :  { %2649 = vmatpush.msrb.mxu2 %v2629_v3  ;;  %v2796_v3 = vld [vmem:[#allocation2 + $0x5f0] sm:$0xff] }
0x1ee8   :  { %2650 = vmatpush.msrb.mxu2 %v2628_v2 }
0x1ee9   :  { %3880 = vmatmul.msk.f32.vlgmr.msrb.gmra.mxu2 %vm5260_vm11, %v2488_v14  ;;  %vm5269_vm11 = vcmask 64512  }
0x1eea   :  { %2736 = vmatpush.msra.mxu2 %v2720_v33 }
0x1eec   :  { %2737 = vmatpush.msra.mxu2 %v2719_v26 }
0x1eee   :  { %2738 = vmatpush.msra.mxu2 %v2718_v40  ;;  %v3318_v40 = vld [vmem:[#allocation2 + $0xf8] sm:$0xff] }
0x1f6c   :  { %v2652_v21 = vpop.f32.mrf.mxu2 }
0x1f6d   :  { %v2655_v32 = vmul.f32 0.35355338, %v2652_v21 }
0x1f6f   :  { %v2656_v18 = vadd.f32 %v2655_v32, %v4649_v1  ;;  %v2717_v1 = vmul.f32 %v2705_v9, %v4376_v35 }
0x1f71   :  { %v2657_v19 = vsel %vm5261_vm13, %v2656_v18, -inf  ;;  %2739 = vmatpush.msra.mxu2 %v2717_v1  ;;  %v3316_v1 = vld [vmem:[#allocation2 + $0xe8] sm:$0xff] }
0x1f72   :  { %2658 = vmax.xlane.f32.xlu0 %v2657_v19 }
0x1f73   :  { %2819 = vmatpush.msrb.mxu2 %v2791_v29 }
0x1f75   :  { %2820 = vmatpush.msrb.mxu2 %v2790_v8 }
0x1f77   :  { %2821 = vmatpush.msrb.mxu2 %v2789_v0 }
0x1f79   :  { %2822 = vmatpush.msrb.mxu2 %v2788_v11 }
0x1fe5   :  { %v2659_v23 = vpop.xlane.xlu0 %2658 }
0x1fe6   :  { %v2660_v24 = vsub.f32 %v2656_v18, %v2659_v23 }
0x1fe8   :  { %v2661_v7 = vmul.f32 1.442695, %v2660_v24 }
0x1fea   :  { %4039 = vpow2.f32 %v2661_v7 }
0x1ff0   :  { %v4040_v60 = vpop.eup %4039 }
0x1ff1   :  { %3885 = vmatmul.msk.f32.vlgmr.msra.gmra.mxu0 %vm5250_vm3, %v4040_v60 }
0x1ff2   :  { %2839 = vmatpush.msra.mxu0 %v2795_v45  ;;  %v3306_v45 = vld [vmem:[#allocation2 + $0x98] sm:$0xff] }
0x1ff4   :  { %2840 = vmatpush.msra.mxu0 %v2794_v62  ;;  %v3225_v62 = vpop.permute.xlu2 %3224 }
0x1ff6   :  { %2841 = vmatpush.msra.mxu0 %v2793_v49  ;;  %v3304_v49 = vld [vmem:[#allocation2 + $0x88] sm:$0xff] }
0x1ff8   :  { %2842 = vmatpush.msra.mxu0 %v2792_v63  ;;  %v3303_v63 = vld [vmem:[#allocation2 + $0x80] sm:$0xff] }
0x206e   :  { %v2683_v43 = vpop.f32.mrf.mxu0 }
0x206f   :  { %4041 = vrcp.f32 %v2683_v43  ;;  %v3311_v43 = vld [vmem:[#allocation2 + $0xc0] sm:$0xff] }
0x2075   :  { %v4042_v46 = vpop.eup %4041 }
0x2076   :  { %v2687_v54 = vmul.f32 %v4042_v46, %v4040_v60  ;;  %v3315_v60 = vld [vmem:[#allocation2 + $0xe0] sm:$0xff]  ;;  %v3310_v46 = vld [vmem:[#allocation2 + $0xb8] sm:$0xff] }
0x2078   :  { %3890 = vmatmul.msk.f32.vlgmr.msra.gmra.mxu2 %vm5262_vm15, %v2687_v54  ;;  %v3308_v54 = vld [vmem:[#allocation2 + $0xa8] sm:$0xff] }
0x2079   :  { %2859 = vmatpush.msra.mxu2 %v2799_v12 }
0x207b   :  { %2860 = vmatpush.msra.mxu2 %v2798_v13 }
0x20fb   :  { %v2741_v4 = vpop.f32.mrf.mxu2 }
0x20fc   :  { %3891 = vmatmul.msk.f32.vlgmr.msrb.gmra.mxu0 %vm5263_vm10, %v2741_v4 }
0x20fd   :  { %3895 = vmatpush.msk.msrb.mxu0 %vm5184_vm14, %v4101_v30 }
0x2104   :  { %3893 = vmatmul.msk.f32.vlgmr.msra.gmra.mxu0 %vm5264_vm8, %v4692_v37  ;;  %vm3271_vm8 = vcmp.eq.s32.totalorder %v3225_v62, %v4182_v28 }
0x2179   :  { %v2764_v59 = vpop.f32.mrf.mxu0 }
0x217a   :  { %v4851_v58 = vadd.f32 %v2764_v59, %v4803_v6  ;;  %v2797_v6 = vld [vmem:[#allocation2 + $0x5f8] sm:$0xff] }
0x217b   :  { %2861 = vmatpush.msra.mxu2 %v2797_v6 }
0x217c   :  { %v2769_v5 = vmul.f32 %v4851_v58, %v4851_v58 }
0x217d   :  { %2862 = vmatpush.msra.mxu2 %v2796_v3 }
0x217e   :  { %v2770_v61 = vsel %vm5265_vm0, %v2769_v5, 0.0 }
0x217f   :  { %2771 = vadd.xlane.f32.xlu0 %v2770_v61 }
0x2181   :  { %v2844_v10 = vpop.f32.mrf.mxu0 }
0x21a8   :  { %2867 = vxpose.xlu0.b32.start.end [1/1] (short) (narrow) %v2844_v10, 32 }
0x21f2   :  { %v2772_v48 = vpop.xlane.xlu0 %2771 }
0x21f3   :  { %v2773_v2 = vmul.f32 %v2772_v48, %v4220_v27 }
0x21f5   :  { %v2774_v14 = vadd.f32 1e-06, %v2773_v2 }
0x21f7   :  { %4043 = vrsqrt.f32 %v2774_v14  ;;  %vm2781_vm9 = vweird.f32 %v2774_v14 }
0x21fd   :  { %v4044_v21 = vpop.eup %4043 }
0x21fe   :  { %v2776_v32 = vmul.f32 %v4044_v21, %v2774_v14  ;;  %vm2782_vm14 = vweird.f32 %v4044_v21 }
0x21ff   :  { %vm2783_vm7 = vmor %vm2781_vm9, %vm2782_vm14 }
0x2200   :  { %v2777_v18 = vmul.f32 %v4044_v21, %v2776_v32  ;;  %vm5277_vm14 = vmmov %vm5266_vm2 }
0x2201   :  { %vm5278_vm9 = vmmov %vm5266_vm2 }
0x2202   :  { %v2778_v19 = vmul.f32 0.5, %v2777_v18  ;;  %v209_v18 = vld [vmem:[%s5140_s0 + $0xc8] sm:$0xff] }
0x2204   :  { %v2779_v9 = vsub.f32 1.5, %v2778_v19 }
0x2206   :  { %v2780_v20 = vmul.f32 %v4044_v21, %v2779_v9 }
0x2208   :  { %v2784_v23 = vsel %vm2783_vm7, %v4044_v21, %v2780_v20  ;;  %vm5279_vm7 = vmmov %vm5266_vm2 }
0x2209   :  { %v2785_v24 = vmul.f32 %v2784_v23, %v4851_v58  ;;  %v2802_v23 = vld [vmem:[#allocation2 + $0x620] sm:$0xff] }
0x220b   :  { %v2787_v7 = vmul.f32 %v3988_v22, %v2785_v24  ;;  %v2803_v22 = vld [vmem:[#allocation2 + $0x628] sm:$0xff]  ;;  %v2801_v24 = vld [vmem:[#allocation2 + $0x618] sm:$0xff] }
0x220d   :  { %3892 = vmatmul.msk.f32.vlgmr.msrb.gmra.mxu2 %vm5266_vm2, %v2787_v7 }
0x220e   :  { %3901 = vmatpush.msk.msrb.mxu2 %vm4238_vm6, %v4101_v30  ;;  %vm5270_vm6 = vmmov %vm5269_vm11 }
0x220f   :  { %vm5271_vm13 = vmmov %vm5270_vm6 }
0x2210   :  { %3902 = vmatpush.msk.msrb.mxu2 %vm5179_vm1, %v4101_v30  ;;  %vm5272_vm1 = vmmov %vm5270_vm6 }
0x2211   :  { %vm5274_vm3 = vmmov %vm5272_vm1 }
0x2212   :  { %3903 = vmatpush.msk.msrb.mxu2 %vm5180_vm4, %v4101_v30  ;;  %vm5273_vm4 = vmmov %vm5272_vm1 }
0x2213   :  { %vm5275_vm15 = vmmov %vm5272_vm1 }
0x2214   :  { %3904 = vmatpush.msk.msrb.mxu2 %vm5267_vm5, %v4101_v30  ;;  %vm5276_vm10 = vmmov %vm5272_vm1 }
0x2215   :  { %3894 = vmatmul.msk.f32.vlgmr.msra.gmra.mxu2 %vm5268_vm12, %v4692_v37  ;;  %v3317_v37 = vld [vmem:[#allocation2 + $0xf0] sm:$0xff]  ;;  %vm5280_vm5 = vmmov %vm5266_vm2 }
0x2216   :  { %3070 = vmatpush.msra.mxu2 %v2803_v22  ;;  %vm5281_vm12 = vmmov %vm5266_vm2 }
0x2218   :  { %3071 = vmatpush.msra.mxu2 %v2802_v23 }
0x221a   :  { %3072 = vmatpush.msra.mxu2 %v2801_v24 }
0x224c   :  { %v2883_v25 = vpop.trf.xlu0 }
0x224d   :  { %3896 = vmatmul.msk.f32.vlgmr.msrb.gmra.mxu0 %vm5269_vm11, %v2883_v25 }
0x2254   :  { %v2884_v39 = vpop.trf.xlu0 }
0x2255   :  { %3897 = vmatmul.msk.f32.gmra.mxu0 %vm5270_vm6, %v2884_v39 }
0x225c   :  { %v2885_v26 = vpop.trf.xlu0 }
0x225d   :  { %3898 = vmatmul.msk.f32.gmra.mxu0 %vm5271_vm13, %v2885_v26  ;;  %v2800_v26 = vld [vmem:[#allocation2 + $0x610] sm:$0xff] }
0x225e   :  { %3073 = vmatpush.msra.mxu2 %v2800_v26 }
0x2264   :  { %v2886_v41 = vpop.trf.xlu0 }
0x2265   :  { %3899 = vmatmul.msk.f32.gmra.mxu0 %vm5272_vm1, %v2886_v41  ;;  %vm5282_vm1 = vmmov %vm5266_vm2 }
0x2290   :  { %v2824_v47 = vpop.f32.mrf.mxu2 }
0x2298   :  { %v2864_v33 = vpop.f32.mrf.mxu2 }
0x2299   :  { %3014 = vmatpush.msra.mxu3 %v2864_v33 }
0x229a   :  { %3906 = vmatmul.msk.f32.vlgmr.msra.gmra.mxu3 %vm5273_vm4, %v4386_v50  ;;  %v3309_v50 = vld [vmem:[#allocation2 + $0xb0] sm:$0xff]  ;;  %vm5283_vm4 = vmmov %vm5282_vm1 }
0x229b   :  { %3511 = vmatpush.msrb.mxu3 %v3318_v40 }
0x229d   :  { %3512 = vmatpush.msrb.mxu3 %v3317_v37 }
0x229f   :  { %3513 = vmatpush.msrb.mxu3 %v3316_v1  ;;  %v219_v1 = vld [vmem:[%s5140_s0 + $0x118] sm:$0xff] }
0x22a1   :  { %3514 = vmatpush.msrb.mxu3 %v3315_v60  ;;  %v3102_v60 = vld [vmem:[#allocation2 + $0x648] sm:$0xff] }
0x22a2   :  { %3907 = vmatmul.msk.f32.gmra.mxu3 %vm5274_vm3, %v4398_v53  ;;  %v3305_v53 = vld [vmem:[#allocation2 + $0x90] sm:$0xff] }
0x22a3   :  { %3515 = vmatpush.msrb.mxu3 %v3314_v42  ;;  %v3106_v42 = vld [vmem:[#allocation2 + $0x668] sm:$0xff] }
0x22a5   :  { %3516 = vmatpush.msrb.mxu3 %v3313_v51  ;;  %v3101_v51 = vld [vmem:[#allocation2 + $0x640] sm:$0xff] }
0x22a7   :  { %3517 = vmatpush.msrb.mxu3 %v3312_v44  ;;  %v3105_v44 = vld [vmem:[#allocation2 + $0x660] sm:$0xff] }
0x22a9   :  { %3518 = vmatpush.msrb.mxu3 %v3311_v43  ;;  %v3104_v43 = vld [vmem:[#allocation2 + $0x658] sm:$0xff] }
0x22aa   :  { %3908 = vmatmul.msk.f32.gmra.mxu3 %vm5275_vm15, %v4409_v55  ;;  %v3228_v55 = vpop.permute.xlu2 %3227 }
0x22ab   :  { %3519 = vmatpush.msrb.mxu3 %v3310_v46  ;;  %vm3272_vm0 = vcmp.eq.s32.totalorder %v3228_v55, %v4182_v28  ;;  %v3099_v46 = vld [vmem:[#allocation2 + $0x630] sm:$0xff] }
0x22ad   :  { %3520 = vmatpush.msrb.mxu3 %v3309_v50  ;;  %v3103_v50 = vld [vmem:[#allocation2 + $0x650] sm:$0xff] }
0x22af   :  { %3521 = vmatpush.msrb.mxu3 %v3308_v54 }
0x22b1   :  { %3522 = vmatpush.msrb.mxu3 %v3307_v57 }
0x22b2   :  { %3909 = vmatmul.msk.f32.gmra.mxu3 %vm5276_vm10, %v4415_v56 }
0x22b3   :  { %3523 = vmatpush.msrb.mxu3 %v3306_v45 }
0x22b5   :  { %3524 = vmatpush.msrb.mxu3 %v3305_v53 }
0x22b7   :  { %3525 = vmatpush.msrb.mxu3 %v3304_v49 }
0x22b9   :  { %3526 = vmatpush.msrb.mxu3 %v3303_v63 }
0x22ba   :  { %3932 = vmatmul.msk.f32.vlgmr.msrb.gmra.mxu3 %vm3271_vm8, %v4101_v30 }
0x22c2   :  { %3933 = vmatmul.msk.f32.gmra.mxu3 %vm3272_vm0, %v4101_v30  ;;  %vm5284_vm0 = vcmask 523264  }
0x22ca   :  { %v2928_v4 = vpop.f32.mrf.mxu0 }
0x22cb   :  { %v2940_v8 = vmul.f32 %v2928_v4, %v4376_v35 }
0x22d2   :  { %v2931_v59 = vpop.f32.mrf.mxu0 }
0x22d3   :  { %v2941_v29 = vmul.f32 %v2931_v59, %v4369_v31  ;;  %v3989_v59 = vld [vmem:[#allocation2 + $0x528] ss:$0 sm:$0xff] }
0x22da   :  { %v2934_v56 = vpop.f32.mrf.mxu0 }
0x22db   :  { %v2942_v10 = vmul.f32 %v2934_v56, %v4363_v17 }
0x22e2   :  { %v2937_v5 = vpop.f32.mrf.mxu0 }
0x22e3   :  { %v2943_v61 = vmul.f32 %v2937_v5, %v4358_v16 }
0x22e5   :  { %2959 = vmatpush.msra.mxu1 %v2943_v61 }
0x22e7   :  { %2960 = vmatpush.msra.mxu1 %v2942_v10  ;;  %v3114_v10 = vld [vmem:[#allocation2 + $0x6a8] sm:$0xff] }
0x22e8   :  { %3190 = vmatpush.msra.mxu0 %v3114_v10 }
0x22e9   :  { %2961 = vmatpush.msra.mxu1 %v2941_v29  ;;  %v3113_v29 = vld [vmem:[#allocation2 + $0x6a0] sm:$0xff] }
0x22ea   :  { %3191 = vmatpush.msra.mxu0 %v3113_v29 }
0x22eb   :  { %2962 = vmatpush.msra.mxu1 %v2940_v8  ;;  %v3112_v8 = vld [vmem:[#allocation2 + $0x698] sm:$0xff] }
0x22ec   :  { %3900 = vmatmul.msk.f32.vlgmr.msra.gmra.mxu1 %vm5277_vm14, %v2824_v47  ;;  %3192 = vmatpush.msra.mxu0 %v3112_v8  ;;  %vm5285_vm14 = vmmov %vm5282_vm1 }
0x231d   :  { %v3016_v0 = vpop.f32.mrf.mxu3 }
0x231e   :  { %v3028_v2 = vmul.f32 %v3016_v0, %v4376_v35  ;;  %v3111_v0 = vld [vmem:[#allocation2 + $0x690] sm:$0xff] }
0x231f   :  { %3193 = vmatpush.msra.mxu0 %v3111_v0 }
0x2325   :  { %v3019_v11 = vpop.f32.mrf.mxu3 }
0x2326   :  { %v3029_v48 = vmul.f32 %v3019_v11, %v4369_v31  ;;  %v217_v31 = vld [vmem:[%s5140_s0 + $0x108] sm:$0xff] }
0x2327   :  { %v3110_v11 = vld [vmem:[#allocation2 + $0x688] sm:$0xff] }
0x2328   :  { %3194 = vmatpush.msra.mxu0 %v3110_v11 }
0x232d   :  { %v3022_v12 = vpop.f32.mrf.mxu3 }
0x232e   :  { %v3030_v6 = vmul.f32 %v3022_v12, %v4363_v17  ;;  %v215_v17 = vld [vmem:[%s5140_s0 + $0xf8] sm:$0xff]  ;;  %v3109_v12 = vld [vmem:[#allocation2 + $0x680] sm:$0xff] }
0x232f   :  { %3195 = vmatpush.msra.mxu0 %v3109_v12 }
0x2335   :  { %v3025_v13 = vpop.f32.mrf.mxu3 }
0x2336   :  { %v3031_v3 = vmul.f32 %v3025_v13, %v4358_v16  ;;  %v213_v16 = vld [vmem:[%s5140_s0 + $0xe8] sm:$0xff]  ;;  %v3108_v13 = vld [vmem:[#allocation2 + $0x678] sm:$0xff] }
0x2337   :  { %3196 = vmatpush.msra.mxu0 %v3108_v13 }
0x2338   :  { %3047 = vmatpush.msrb.mxu1 %v3031_v3 }
0x233a   :  { %3048 = vmatpush.msrb.mxu1 %v3030_v6  ;;  %v3107_v6 = vld [vmem:[#allocation2 + $0x670] sm:$0xff] }
0x233b   :  { %3197 = vmatpush.msra.mxu0 %v3107_v6 }
0x233c   :  { %3049 = vmatpush.msrb.mxu1 %v3029_v48 }
0x233e   :  { %3050 = vmatpush.msrb.mxu1 %v3028_v2 }
0x2340   :  { %3130 = vmatpush.msra.mxu1 %v3102_v60  ;;  %v214_v60 = vld [vmem:[%s5140_s0 + $0xf0] sm:$0xff] }
0x2342   :  { %3131 = vmatpush.msra.mxu1 %v3101_v51  ;;  %v218_v51 = vld [vmem:[%s5140_s0 + $0x110] sm:$0xff] }
0x2369   :  { %v2964_v14 = vpop.f32.mrf.mxu1 }
0x236a   :  { %v2967_v21 = vmul.f32 0.35355338, %v2964_v14 }
0x236c   :  { %v2968_v32 = vsel %vm5278_vm9, %v2967_v21, -inf }
0x236d   :  { %2969 = vmax.xlane.f32.xlu1 %v2968_v32 }
0x2386   :  { %3239 = vperm.xlu1 %3977, %v209_v18  }
0x238e   :  { %3251 = vperm.xlu1 %3977, %v213_v16  }
0x2396   :  { %3257 = vperm.xlu1 %3977, %v215_v17  }
0x239e   :  { %3263 = vperm.xlu1 %3977, %v217_v31  }
0x23e0   :  { %v2970_v35 = vpop.xlane.xlu1 %2969 }
0x23e1   :  { %v2971_v19 = vsub.f32 %v2967_v21, %v2970_v35 }
0x23e3   :  { %v2972_v9 = vmul.f32 1.442695, %v2971_v19 }
0x23e5   :  { %4045 = vpow2.f32 %v2972_v9 }
0x23eb   :  { %v4046_v20 = vpop.eup %4045 }
0x23ec   :  { %3905 = vmatmul.msk.f32.vlgmr.msrb.gmra.mxu2 %vm5279_vm7, %v4046_v20 }
0x23ed   :  { %3150 = vmatpush.msrb.mxu2 %v3106_v42  ;;  %v216_v42 = vld [vmem:[%s5140_s0 + $0x100] sm:$0xff] }
0x23ef   :  { %3151 = vmatpush.msrb.mxu2 %v3105_v44 }
0x23f1   :  { %3152 = vmatpush.msrb.mxu2 %v3104_v43 }
0x23f3   :  { %3153 = vmatpush.msrb.mxu2 %v3103_v50 }
0x23f8   :  { %v3240_v29 = vpop.permute.xlu1 %3239 }
0x246f   :  { %v2994_v7 = vpop.f32.mrf.mxu2 }
0x2470   :  { %4047 = vrcp.f32 %v2994_v7 }
0x2476   :  { %v4048_v25 = vpop.eup %4047 }
0x2477   :  { %v2998_v39 = vmul.f32 %v4048_v25, %v4046_v20 }
0x2479   :  { %3910 = vmatmul.msk.f32.vlgmr.msrb.gmra.mxu1 %vm5266_vm2, %v2998_v39 }
0x24f6   :  { %v3052_v41 = vpop.f32.mrf.mxu1 }
0x24f7   :  { %3911 = vmatmul.msk.f32.vlgmr.msra.gmra.mxu2 %vm5280_vm5, %v3052_v41  ;;  %v206_v41 = vld [vmem:[%s5140_s0 + $0xb0] sm:$0xff] }
0x257a   :  { %v3075_v47 = vpop.f32.mrf.mxu2 }
0x257b   :  { %v4915_v33 = vadd.f32 %v3075_v47, %v4851_v58  ;;  %v3100_v58 = vld [vmem:[#allocation2 + $0x638] sm:$0xff] }
0x257c   :  { %3132 = vmatpush.msra.mxu1 %v3100_v58  ;;  %v207_v47 = vld [vmem:[%s5140_s0 + $0xb8] sm:$0xff] }
0x257d   :  { %v3080_v40 = vmul.f32 %v4915_v33, %v4915_v33 }
0x257e   :  { %3133 = vmatpush.msra.mxu1 %v3099_v46 }
0x257f   :  { %v3081_v37 = vsel %vm5281_vm12, %v3080_v40, 0.0  ;;  %v208_v40 = vld [vmem:[%s5140_s0 + $0xc0] sm:$0xff] }
0x2580   :  { %3082 = vadd.xlane.f32.xlu0 %v3081_v37  ;;  %v211_v37 = vld [vmem:[%s5140_s0 + $0xd8] sm:$0xff] }
0x2594   :  { %3269 = vperm.xlu0 %3976, %v219_v1   ;;  %v212_v1 = vld [vmem:[%s5140_s0 + $0xe0] sm:$0xff] }
0x25f3   :  { %v3083_v54 = vpop.xlane.xlu0 %3082 }
0x25f4   :  { %v3084_v57 = vmul.f32 %v3083_v54, %v4220_v27  ;;  %v3348_v54 = vadd.s32 1, %v4182_v28 }
0x25f6   :  { %v3085_v45 = vadd.f32 1e-06, %v3084_v57 }
0x25f8   :  { %4049 = vrsqrt.f32 %v3085_v45  ;;  %vm3092_vm6 = vweird.f32 %v3085_v45 }
0x25fe   :  { %v4050_v53 = vpop.eup %4049 }
0x25ff   :  { %v3087_v62 = vmul.f32 %v4050_v53, %v3085_v45  ;;  %vm3093_vm11 = vweird.f32 %v4050_v53 }
0x2600   :  { %vm3094_vm13 = vmor %vm3092_vm6, %vm3093_vm11 }
0x2601   :  { %v3088_v49 = vmul.f32 %v4050_v53, %v3087_v62  ;;  %v4964_v62 = vmul.u32 16, %v3348_v54 }
0x2603   :  { %v3089_v63 = vmul.f32 0.5, %v3088_v49  ;;  %vm3350_vm12 = vcmp.lt.s32.totalorder %v4204_v52, %v4964_v62 }
0x2605   :  { %v3090_v55 = vsub.f32 1.5, %v3089_v63 }
0x2607   :  { %v3091_v4 = vmul.f32 %v4050_v53, %v3090_v55 }
0x2609   :  { %v3095_v56 = vsel %vm3094_vm13, %v4050_v53, %v3091_v4  ;;  %v4962_v53 = vmul.u32 16, %v4182_v28  ;;  %v3990_v4 = vld [vmem:[#allocation2 + $0x148] ss:$0 sm:$0xff] }
0x260a   :  { %v3096_v5 = vmul.f32 %v3095_v56, %v4915_v33 }
0x260b   :  { %vm3332_vm5 = vcmp.ge.s32.totalorder %v4204_v52, %v4962_v53 }
0x260c   :  { %v3098_v61 = vmul.f32 %v3989_v59, %v3096_v5  ;;  %vm3366_vm13 = vmand %vm3332_vm5, %vm3350_vm12  ;;  %vm3335_vm5 = vcmp.ge.s32.totalorder %v4224_v34, %v4962_v53  ;;  %vm3353_vm12 = vcmp.lt.s32.totalorder %v4224_v34, %v4964_v62  ;;  %v3320_v34 = vadd.s32 40, %v4204_v52 }
0x260d   :  { %v3382_v10 = vsel %vm3366_vm13, 1.0, %v4104_v15 }
0x260e   :  { %3912 = vmatmul.msk.f32.vlgmr.msra.gmra.mxu1 %vm5282_vm1, %v3098_v61  ;;  %3913 = vmatmul.msk.f32.vlgmr.msrb.gmra.mxu2 %vm5283_vm4, %v3098_v61  ;;  %vm3333_vm4 = vcmp.ge.s32.totalorder %v4236_v38, %v4962_v53 }
0x268b   :  { %v3135_v3 = vpop.f32.mrf.mxu1 }
0x268c   :  { %v3914_v48 = vmul.f32 -1.442695, %v3135_v3 }
0x268e   :  { %4051 = vpow2.f32 %v3914_v48  ;;  %v3321_v48 = vadd.s32 48, %v4204_v52 }
0x2691   :  { %v3155_v23 = vpop.f32.mrf.mxu2 }
0x2694   :  { %v4052_v2 = vpop.eup %4051 }
0x2695   :  { %v3161_v14 = vadd.f32 1.0, %v4052_v2 }
0x2697   :  { %4053 = vrcp.f32 %v3161_v14  ;;  %v3173_v16 = vand.u32 2147483648, %v3161_v14  ;;  %v3171_v31 = vand.u32 2147483647, %v3161_v14  ;;  %vm3167_vm15 = vweird.f32 %v3161_v14 }
0x2699   :  { %v3174_v19 = vor.u32 1.1754944e-38, %v3173_v16  ;;  %vm3172_vm8 = vcmp.eq.f32.partialorder %v3171_v31, 8.507059e+37  ;;  %v3323_v16 = vadd.s32 64, %v4204_v52 }
0x269d   :  { %v4054_v21 = vpop.eup %4053 }
0x269e   :  { %v3163_v32 = vmul.f32 %v4054_v21, %v3161_v14  ;;  %vm3168_vm3 = vweird.f32 %v4054_v21 }
0x269f   :  { %vm3169_vm10 = vmor %vm3167_vm15, %vm3168_vm3  ;;  %vm3351_vm3 = vcmp.lt.s32.totalorder %v4236_v38, %v4964_v62  ;;  %vm5286_vm15 = vcmask 64512  }
0x26a0   :  { %v3164_v18 = vsub.f32 1.0, %v3163_v32 }
0x26a2   :  { %v3165_v17 = vmul.f32 %v4054_v21, %v3164_v18 }
0x26a4   :  { %v3166_v35 = vadd.f32 %v4054_v21, %v3165_v17 }
0x26a6   :  { %v3170_v9 = vsel %vm3169_vm10, %v4054_v21, %v3166_v35  ;;  %vm3367_vm10 = vmand %vm3333_vm4, %vm3351_vm3  ;;  %v3322_v21 = vadd.s32 56, %v4204_v52  ;;  %v3324_v35 = vadd.s32 72, %v4204_v52 }
0x26a7   :  { %v3175_v20 = vsel %vm3172_vm8, %v3174_v19, %v3170_v9  ;;  %vm3276_vm8 = vcmp.eq.s32.totalorder %v3240_v29, %v4182_v28  ;;  %v3383_v8 = vsel %vm3367_vm10, 1.0, %v4104_v15 }
0x26a8   :  { %v3177_v22 = vmul.f32 %v3175_v20, %v3135_v3  ;;  %v3252_v3 = vpop.permute.xlu1 %3251  ;;  %v3325_v20 = vadd.s32 80, %v4204_v52 }
0x26aa   :  { %v3178_v24 = vmul.f32 %v3177_v22, %v3155_v23 }
0x26ac   :  { %3915 = vmatmul.msk.f32.vlgmr.msra.gmra.mxu0 %vm5284_vm0, %v3178_v24  ;;  %vm3334_vm0 = vcmp.ge.s32.totalorder %v4230_v36, %v4962_v53  ;;  %v3326_v24 = vadd.s32 88, %v4204_v52 }
0x26b0   :  { %v3258_v18 = vpop.permute.xlu1 %3257 }
0x26b8   :  { %v3264_v9 = vpop.permute.xlu1 %3263 }
0x2729   :  { %v3199_v7 = vpop.f32.mrf.mxu0 }
0x272a   :  { %v3202_v25 = vadd.f32 %v3199_v7, %v4915_v33  ;;  %v210_v33 = vld [vmem:[%s5140_s0 + $0xd0] sm:$0xff] }
0x272c   :  { %v3204_v39 = vmul.f32 %v3202_v25, %v3202_v25 }
0x272e   :  { %v3205_v26 = vsel %vm5285_vm14, %v3204_v39, 0.0  ;;  %vm3352_vm14 = vcmp.lt.s32.totalorder %v4230_v36, %v4964_v62  ;;  %v3319_v36 = vadd.s32 32, %v4204_v52  ;;  %v3327_v39 = vadd.s32 96, %v4204_v52 }
0x272f   :  { %3206 = vadd.xlane.f32.xlu2 %v3205_v26 }
0x2730   :  { %vm3354_vm4 = vcmp.lt.s32.totalorder %v3319_v36, %v4964_v62 }
0x2747   :  { %3230 = vperm.xlu2 %3978, %v206_v41   ;;  %v3579_v41 = vld [vmem:[#allocation2 + $0x118] sm:$0xff] }
0x2748   :  { %3640 = vmatpush.msrb.mxu0 %v3579_v41  ;;  %3964 = vmatpush.msra.mxu2 %v3579_v41 }
0x274f   :  { %3233 = vperm.xlu2 %3978, %v207_v47   ;;  %v3578_v47 = vld [vmem:[#allocation2 + $0x110] sm:$0xff] }
0x2750   :  { %3641 = vmatpush.msrb.mxu0 %v3578_v47  ;;  %3965 = vmatpush.msra.mxu2 %v3578_v47 }
0x2757   :  { %3236 = vperm.xlu2 %3978, %v208_v40   ;;  %v3328_v40 = vadd.s32 104, %v4204_v52 }
0x275f   :  { %3242 = vperm.xlu2 %3978, %v210_v33   ;;  %v3577_v33 = vld [vmem:[#allocation2 + $0x108] sm:$0xff] }
0x2760   :  { %3642 = vmatpush.msrb.mxu0 %v3577_v33  ;;  %3966 = vmatpush.msra.mxu2 %v3577_v33 }
0x2767   :  { %3245 = vperm.xlu2 %3978, %v211_v37   ;;  %v3528_v37 = vpop.f32.mrf.mxu3 }
0x276f   :  { %3248 = vperm.xlu2 %3978, %v212_v1   ;;  %v3329_v1 = vadd.s32 112, %v4204_v52 }
0x2777   :  { %3254 = vperm.xlu2 %3978, %v214_v60  }
0x277f   :  { %3260 = vperm.xlu2 %3978, %v216_v42   ;;  %v3531_v42 = vpop.f32.mrf.mxu3 }
0x2787   :  { %3266 = vperm.xlu2 %3978, %v218_v51   ;;  %v3330_v51 = vadd.s32 120, %v4204_v52 }
0x27a2   :  { %v3207_v44 = vpop.xlane.xlu2 %3206 }
0x27a3   :  { %v3208_v58 = vmul.f32 %v3207_v44, %v4220_v27 }
0x27a5   :  { %v3209_v43 = vadd.f32 1e-06, %v3208_v58 }
0x27a7   :  { %4055 = vrsqrt.f32 %v3209_v43  ;;  %vm3216_vm11 = vweird.f32 %v3209_v43 }
0x27aa   :  { %v3231_v46 = vpop.permute.xlu2 %3230 }
0x27ab   :  { %vm3273_vm9 = vcmp.eq.s32.totalorder %v3231_v46, %v4182_v28 }
0x27ac   :  { %3934 = vmatmul.msk.f32.gmra.mxu3 %vm3273_vm9, %v4101_v30  ;;  %vm5287_vm9 = vmmov %vm5286_vm15 }
0x27ad   :  { %v4056_v50 = vpop.eup %4055  ;;  %vm5289_vm3 = vmmov %vm5287_vm9 }
0x27ae   :  { %v3211_v57 = vmul.f32 %v4056_v50, %v3209_v43  ;;  %vm3217_vm2 = vweird.f32 %v4056_v50 }
0x27af   :  { %vm3218_vm6 = vmor %vm3216_vm11, %vm3217_vm2 }
0x27b0   :  { %v3212_v45 = vmul.f32 %v4056_v50, %v3211_v57  ;;  %vm5288_vm11 = vmmov %vm5287_vm9 }
0x27b2   :  { %v3213_v49 = vmul.f32 0.5, %v3212_v45  ;;  %v3234_v63 = vpop.permute.xlu2 %3233 }
0x27b3   :  { %vm3274_vm7 = vcmp.eq.s32.totalorder %v3234_v63, %v4182_v28 }
0x27b4   :  { %v3214_v27 = vsub.f32 1.5, %v3213_v49  ;;  %3935 = vmatmul.msk.f32.gmra.mxu3 %vm3274_vm7, %v4101_v30  ;;  %vm3368_vm7 = vmand %vm3334_vm0, %vm3352_vm14  ;;  %vm3355_vm0 = vcmp.lt.s32.totalorder %v3320_v34, %v4964_v62 }
0x27b5   :  { %v3384_v38 = vsel %vm3368_vm7, 1.0, %v4104_v15  ;;  %vm5290_vm14 = vmmov %vm5289_vm3  ;;  %vm3280_vm7 = vcmp.eq.s32.totalorder %v3252_v3, %v4182_v28 }
0x27b6   :  { %v3215_v55 = vmul.f32 %v4056_v50, %v3214_v27 }
0x27b8   :  { %v3219_v59 = vsel %vm3218_vm6, %v4056_v50, %v3215_v55  ;;  %vm3369_vm6 = vmand %vm3335_vm5, %vm3353_vm12  ;;  %vm3356_vm5 = vcmp.lt.s32.totalorder %v3321_v48, %v4964_v62 }
0x27b9   :  { %v3220_v56 = vmul.f32 %v3219_v59, %v3202_v25  ;;  %v3385_v12 = vsel %vm3369_vm6, 1.0, %v4104_v15  ;;  %vm5291_vm12 = vmmov %vm5289_vm3  ;;  %v3270_v25 = vpop.permute.xlu0 %3269 }
0x27ba   :  { %v3237_v5 = vpop.permute.xlu2 %3236 }
0x27bb   :  { %vm3275_vm1 = vcmp.eq.s32.totalorder %v3237_v5, %v4182_v28  ;;  %v3222_v61 = vmul.f32 %v3990_v4, %v3220_v56 }
0x27bc   :  { %3936 = vmatmul.msk.f32.gmra.mxu3 %vm3275_vm1, %v4101_v30  ;;  %vm3336_vm1 = vcmp.ge.s32.totalorder %v3319_v36, %v4962_v53 }
0x27bd   :  { %3461 = vmatpush.msrb.mxu1 %v3222_v61 }
0x27be   :  { %3916 = vmatmul.msk.f32.vlgmr.msrb.gmra.mxu1 %vm5286_vm15, %v3382_v10  ;;  %vm3370_vm15 = vmand %vm3336_vm1, %vm3354_vm4  ;;  %vm3357_vm1 = vcmp.lt.s32.totalorder %v3322_v21, %v4964_v62 }
0x27bf   :  { %v3386_v6 = vsel %vm3370_vm15, 1.0, %v4104_v15  ;;  %vm5292_vm4 = vmmov %vm5289_vm3  ;;  %vm3282_vm15 = vcmp.eq.s32.totalorder %v3258_v18, %v4182_v28 }
0x27c2   :  { %v3243_v0 = vpop.permute.xlu2 %3242 }
0x27c3   :  { %vm3277_vm2 = vcmp.eq.s32.totalorder %v3243_v0, %v4182_v28 }
0x27c4   :  { %3937 = vmatmul.msk.f32.gmra.mxu3 %vm3276_vm8, %v4101_v30  ;;  %vm3337_vm8 = vcmp.ge.s32.totalorder %v3320_v34, %v4962_v53 }
0x27c6   :  { %3917 = vmatmul.msk.f32.gmra.mxu1 %vm5287_vm9, %v3383_v8  ;;  %vm3371_vm9 = vmand %vm3337_vm8, %vm3355_vm0  ;;  %vm3358_vm8 = vcmp.lt.s32.totalorder %v3323_v16, %v4964_v62 }
0x27c7   :  { %v3387_v2 = vsel %vm3371_vm9, 1.0, %v4104_v15  ;;  %vm5293_vm0 = vmmov %vm5292_vm4 }
0x27ca   :  { %v3246_v11 = vpop.permute.xlu2 %3245 }
0x27cb   :  { %vm3278_vm13 = vcmp.eq.s32.totalorder %v3246_v11, %v4182_v28 }
0x27cc   :  { %3938 = vmatmul.msk.f32.gmra.mxu3 %vm3277_vm2, %v4101_v30  ;;  %vm3338_vm2 = vcmp.ge.s32.totalorder %v3321_v48, %v4962_v53 }
0x27ce   :  { %3918 = vmatmul.msk.f32.gmra.mxu1 %vm5288_vm11, %v3384_v38  ;;  %vm3372_vm11 = vmand %vm3338_vm2, %vm3356_vm5  ;;  %vm3359_vm2 = vcmp.lt.s32.totalorder %v3324_v35, %v4964_v62 }
0x27cf   :  { %v3388_v32 = vsel %vm3372_vm11, 1.0, %v4104_v15  ;;  %vm5294_vm5 = vmmov %vm5293_vm0  ;;  %vm3284_vm11 = vcmp.eq.s32.totalorder %v3264_v9, %v4182_v28 }
0x27d2   :  { %v3249_v13 = vpop.permute.xlu2 %3248 }
0x27d3   :  { %vm3279_vm10 = vcmp.eq.s32.totalorder %v3249_v13, %v4182_v28 }
0x27d4   :  { %3939 = vmatmul.msk.f32.gmra.mxu3 %vm3278_vm13, %v4101_v30  ;;  %vm3339_vm13 = vcmp.ge.s32.totalorder %v3322_v21, %v4962_v53 }
0x27d6   :  { %3919 = vmatmul.msk.f32.gmra.mxu1 %vm5289_vm3, %v3385_v12  ;;  %vm3373_vm3 = vmand %vm3339_vm13, %vm3357_vm1  ;;  %vm3360_vm13 = vcmp.lt.s32.totalorder %v3325_v20, %v4964_v62 }
0x27d7   :  { %v3389_v17 = vsel %vm3373_vm3, 1.0, %v4104_v15  ;;  %vm5295_vm1 = vmmov %vm5293_vm0 }
0x27da   :  { %v3255_v14 = vpop.permute.xlu2 %3254 }
0x27db   :  { %vm3281_vm6 = vcmp.eq.s32.totalorder %v3255_v14, %v4182_v28 }
0x27dc   :  { %3940 = vmatmul.msk.f32.gmra.mxu3 %vm3279_vm10, %v4101_v30  ;;  %vm3340_vm10 = vcmp.ge.s32.totalorder %v3323_v16, %v4962_v53 }
0x27de   :  { %3920 = vmatmul.msk.f32.gmra.mxu1 %vm5290_vm14, %v3386_v6  ;;  %vm3374_vm14 = vmand %vm3340_vm10, %vm3358_vm8  ;;  %vm3361_vm10 = vcmp.lt.s32.totalorder %v3326_v24, %v4964_v62 }
0x27df   :  { %v3390_v19 = vsel %vm3374_vm14, 1.0, %v4104_v15  ;;  %vm5296_vm8 = vmmov %vm5293_vm0  ;;  %vm3286_vm14 = vcmp.eq.s32.totalorder %v3270_v25, %v4182_v28 }
0x27e2   :  { %v3261_v31 = vpop.permute.xlu2 %3260 }
0x27e3   :  { %vm3283_vm9 = vcmp.eq.s32.totalorder %v3261_v31, %v4182_v28 }
0x27e4   :  { %3941 = vmatmul.msk.f32.gmra.mxu3 %vm3280_vm7, %v4101_v30  ;;  %vm3341_vm7 = vcmp.ge.s32.totalorder %v3324_v35, %v4962_v53 }
0x27e6   :  { %3921 = vmatmul.msk.f32.gmra.mxu1 %vm5291_vm12, %v3387_v2  ;;  %vm3375_vm12 = vmand %vm3341_vm7, %vm3359_vm2  ;;  %vm3362_vm7 = vcmp.lt.s32.totalorder %v3327_v39, %v4964_v62 }
0x27e7   :  { %v3391_v22 = vsel %vm3375_vm12, 1.0, %v4104_v15  ;;  %vm5297_vm2 = vmmov %vm5295_vm1  ;;  %vm3345_vm12 = vcmp.ge.s32.totalorder %v3328_v40, %v4962_v53 }
0x27ea   :  { %v3267_v23 = vpop.permute.xlu2 %3266 }
0x27eb   :  { %vm3285_vm3 = vcmp.eq.s32.totalorder %v3267_v23, %v4182_v28 }
0x27ec   :  { %3942 = vmatmul.msk.f32.gmra.mxu3 %vm3281_vm6, %v4101_v30  ;;  %vm3342_vm6 = vcmp.ge.s32.totalorder %v3325_v20, %v4962_v53 }
0x27ee   :  { %3922 = vmatmul.msk.f32.gmra.mxu1 %vm5292_vm4, %v3388_v32  ;;  %vm3376_vm4 = vmand %vm3342_vm6, %vm3360_vm13 }
0x27ef   :  { %v3392_v7 = vsel %vm3376_vm4, 1.0, %v4104_v15  ;;  %vm5298_vm6 = vmmov %vm5295_vm1  ;;  %vm3364_vm4 = vcmp.lt.s32.totalorder %v3329_v1, %v4964_v62 }
0x27f4   :  { %3943 = vmatmul.msk.f32.gmra.mxu3 %vm3282_vm15, %v4101_v30  ;;  %vm3343_vm15 = vcmp.ge.s32.totalorder %v3326_v24, %v4962_v53 }
0x27f6   :  { %3923 = vmatmul.msk.f32.gmra.mxu1 %vm5293_vm0, %v3389_v17  ;;  %vm3377_vm0 = vmand %vm3343_vm15, %vm3361_vm10  ;;  %vm3347_vm10 = vcmp.ge.s32.totalorder %v3330_v51, %v4962_v53 }
0x27f7   :  { %v3393_v26 = vsel %vm3377_vm0, 1.0, %v4104_v15  ;;  %vm5300_vm0 = vmmov %vm5297_vm2 }
0x27fc   :  { %3944 = vmatmul.msk.f32.gmra.mxu3 %vm3283_vm9, %v4101_v30  ;;  %vm3344_vm9 = vcmp.ge.s32.totalorder %v3327_v39, %v4962_v53 }
0x27fe   :  { %3924 = vmatmul.msk.f32.gmra.mxu1 %vm5294_vm5, %v3390_v19  ;;  %vm3378_vm5 = vmand %vm3344_vm9, %vm3362_vm7  ;;  %vm5302_vm7 = vcmask 261120  }
0x27ff   :  { %v3394_v28 = vsel %vm3378_vm5, 1.0, %v4104_v15  ;;  %vm5301_vm9 = vmmov %vm5300_vm0 }
0x2804   :  { %3945 = vmatmul.msk.f32.gmra.mxu3 %vm3284_vm11, %v4101_v30  ;;  %vm3363_vm11 = vcmp.lt.s32.totalorder %v3328_v40, %v4964_v62 }
0x2805   :  { %vm3379_vm13 = vmand %vm3345_vm12, %vm3363_vm11 }
0x2806   :  { %3925 = vmatmul.msk.f32.gmra.mxu1 %vm5295_vm1, %v3391_v22  ;;  %v3395_v60 = vsel %vm3379_vm13, 1.0, %v4104_v15  ;;  %vm3346_vm1 = vcmp.ge.s32.totalorder %v3329_v1, %v4962_v53 }
0x2807   :  { %vm3380_vm15 = vmand %vm3346_vm1, %vm3364_vm4 }
0x2808   :  { %v3396_v44 = vsel %vm3380_vm15, 1.0, %v4104_v15 }
0x280c   :  { %3946 = vmatmul.msk.f32.gmra.mxu3 %vm3285_vm3, %v4101_v30  ;;  %vm5299_vm3 = vmmov %vm5297_vm2 }
0x280e   :  { %3926 = vmatmul.msk.f32.gmra.mxu1 %vm5296_vm8, %v3392_v7  ;;  %vm3365_vm8 = vcmp.lt.s32.totalorder %v3330_v51, %v4964_v62 }
0x2814   :  { %3947 = vmatmul.msk.f32.gmra.mxu3 %vm3286_vm14, %v4101_v30  ;;  %v3576_v30 = vld [vmem:[#allocation2 + $0x100] sm:$0xff]  ;;  %vm3381_vm14 = vmand %vm3347_vm10, %vm3365_vm8 }
0x2815   :  { %3643 = vmatpush.msrb.mxu0 %v3576_v30  ;;  %3967 = vmatpush.msra.mxu2 %v3576_v30  ;;  %v3397_v43 = vsel %vm3381_vm14, 1.0, %v4104_v15 }
0x2816   :  { %3927 = vmatmul.msk.f32.gmra.mxu1 %vm5297_vm2, %v3393_v26  ;;  %vm5303_vm2 = vmmov %vm5302_vm7 }
0x2817   :  { %vm5304_vm5 = vmmov %vm5303_vm2 }
0x2818   :  { %vm5305_vm12 = vmmov %vm5303_vm2 }
0x2819   :  { %vm5306_vm11 = vmmov %vm5303_vm2 }
0x281a   :  { %vm5308_vm13 = vmmov %vm5303_vm2 }
0x281b   :  { %vm5309_vm1 = vmmov %vm5303_vm2 }
0x281c   :  { %vm5310_vm4 = vmmov %vm5309_vm1 }
0x281d   :  { %vm5312_vm15 = vmmov %vm5309_vm1 }
0x281e   :  { %3928 = vmatmul.msk.f32.gmra.mxu1 %vm5298_vm6, %v3394_v28  ;;  %vm5307_vm6 = vmmov %vm5303_vm2 }
0x281f   :  { %vm5313_vm10 = vmmov %vm5309_vm1 }
0x2820   :  { %vm5314_vm8 = vmmov %vm5309_vm1 }
0x2826   :  { %3929 = vmatmul.msk.f32.gmra.mxu1 %vm5299_vm3, %v3395_v60  ;;  %vm5311_vm3 = vmmov %vm5309_vm1 }
0x282e   :  { %3930 = vmatmul.msk.f32.gmra.mxu1 %vm5300_vm0, %v3396_v44  ;;  %vm5315_vm0 = vmmov %vm5309_vm1 }
0x282f   :  { %v3534_v58 = vpop.f32.mrf.mxu3  ;;  %vm5316_vm14 = vmmov %vm5315_vm0 }
0x2836   :  { %3931 = vmatmul.msk.f32.gmra.mxu1 %vm5301_vm9, %v3397_v43  ;;  %vm5317_vm9 = vmmov %vm5315_vm0 }
0x2837   :  { %v3537_v46 = vpop.f32.mrf.mxu3 }
0x283b   :  { %v3463_v50 = vpop.f32.mrf.mxu1 }
0x283c   :  { %v3529_v54 = vadd.f32 %v3528_v37, %v3463_v50 }
0x283e   :  { %3948 = vmatmul.msk.f32.vlgmr.msrb.gmra.mxu0 %vm5302_vm7, %v3529_v54 }
0x283f   :  { %v3540_v45 = vpop.f32.mrf.mxu3 }
0x2843   :  { %v3466_v52 = vpop.f32.mrf.mxu1 }
0x2844   :  { %v3532_v57 = vadd.f32 %v3531_v42, %v3466_v52 }
0x2846   :  { %3949 = vmatmul.msk.f32.gmra.mxu0 %vm5303_vm2, %v3532_v57 }
0x2847   :  { %v3543_v49 = vpop.f32.mrf.mxu3 }
0x284b   :  { %v3469_v53 = vpop.f32.mrf.mxu1 }
0x284c   :  { %v3535_v62 = vadd.f32 %v3534_v58, %v3469_v53 }
0x284e   :  { %3950 = vmatmul.msk.f32.gmra.mxu0 %vm5304_vm5, %v3535_v62 }
0x284f   :  { %v3546_v15 = vpop.f32.mrf.mxu3 }
0x2853   :  { %v3472_v63 = vpop.f32.mrf.mxu1 }
0x2854   :  { %v3538_v27 = vadd.f32 %v3537_v46, %v3472_v63 }
0x2856   :  { %3951 = vmatmul.msk.f32.vlgmr.msra.gmra.mxu2 %vm5305_vm12, %v3538_v27 }
0x2857   :  { %v3549_v59 = vpop.f32.mrf.mxu3 }
0x285b   :  { %v3475_v55 = vpop.f32.mrf.mxu1 }
0x285c   :  { %v3541_v4 = vadd.f32 %v3540_v45, %v3475_v55 }
0x285e   :  { %3952 = vmatmul.msk.f32.gmra.mxu2 %vm5306_vm11, %v3541_v4 }
0x285f   :  { %v3552_v29 = vpop.f32.mrf.mxu3 }
0x2863   :  { %v3478_v56 = vpop.f32.mrf.mxu1 }
0x2864   :  { %v3544_v5 = vadd.f32 %v3543_v49, %v3478_v56 }
0x2866   :  { %3953 = vmatmul.msk.f32.gmra.mxu2 %vm5307_vm6, %v3544_v5 }
0x2867   :  { %v3555_v38 = vpop.f32.mrf.mxu3 }
0x286b   :  { %v3481_v61 = vpop.f32.mrf.mxu1 }
0x286c   :  { %v3547_v10 = vadd.f32 %v3546_v15, %v3481_v61 }
0x286e   :  { %3954 = vmatmul.msk.f32.gmra.mxu2 %vm5308_vm13, %v3547_v10 }
0x286f   :  { %v3558_v12 = vpop.f32.mrf.mxu3 }
0x2873   :  { %v3484_v8 = vpop.f32.mrf.mxu1 }
0x2874   :  { %v3550_v0 = vadd.f32 %v3549_v59, %v3484_v8 }
0x2876   :  { %3955 = vmatmul.msk.f32.gmra.mxu2 %vm5309_vm1, %v3550_v0 }
0x2877   :  { %v3561_v6 = vpop.f32.mrf.mxu3 }
0x287b   :  { %v3487_v11 = vpop.f32.mrf.mxu1 }
0x287c   :  { %v3553_v36 = vadd.f32 %v3552_v29, %v3487_v11 }
0x287e   :  { %3956 = vmatmul.msk.f32.gmra.mxu2 %vm5310_vm4, %v3553_v36 }
0x287f   :  { %v3564_v21 = vpop.f32.mrf.mxu3 }
0x2883   :  { %v3490_v13 = vpop.f32.mrf.mxu1 }
0x2884   :  { %v3556_v34 = vadd.f32 %v3555_v38, %v3490_v13 }
0x2886   :  { %3957 = vmatmul.msk.f32.gmra.mxu2 %vm5311_vm3, %v3556_v34 }
0x2887   :  { %v3567_v16 = vpop.f32.mrf.mxu3 }
0x288b   :  { %v3493_v3 = vpop.f32.mrf.mxu1 }
0x288c   :  { %v3559_v48 = vadd.f32 %v3558_v12, %v3493_v3 }
0x288e   :  { %3958 = vmatmul.msk.f32.gmra.mxu2 %vm5312_vm15, %v3559_v48 }
0x288f   :  { %v3570_v35 = vpop.f32.mrf.mxu3 }
0x2893   :  { %v3496_v2 = vpop.f32.mrf.mxu1 }
0x2894   :  { %v3562_v14 = vadd.f32 %v3561_v6, %v3496_v2 }
0x2896   :  { %3959 = vmatmul.msk.f32.gmra.mxu2 %vm5313_vm10, %v3562_v14 }
0x2897   :  { %v3573_v20 = vpop.f32.mrf.mxu3 }
0x289b   :  { %v3499_v32 = vpop.f32.mrf.mxu1 }
0x289c   :  { %v3565_v18 = vadd.f32 %v3564_v21, %v3499_v32 }
0x289e   :  { %3960 = vmatmul.msk.f32.gmra.mxu2 %vm5314_vm8, %v3565_v18 }
0x28a3   :  { %v3502_v17 = vpop.f32.mrf.mxu1 }
0x28a4   :  { %v3568_v31 = vadd.f32 %v3567_v16, %v3502_v17 }
0x28a6   :  { %3961 = vmatmul.msk.f32.gmra.mxu2 %vm5315_vm0, %v3568_v31 }
0x28ab   :  { %v3505_v19 = vpop.f32.mrf.mxu1 }
0x28ac   :  { %v3571_v9 = vadd.f32 %v3570_v35, %v3505_v19 }
0x28ae   :  { %3962 = vmatmul.msk.f32.gmra.mxu2 %vm5316_vm14, %v3571_v9 }
0x28b3   :  { %v3508_v22 = vpop.f32.mrf.mxu1 }
0x28b4   :  { %v3574_v23 = vadd.f32 %v3573_v20, %v3508_v22 }
0x28b6   :  { %3963 = vmatmul.msk.f32.gmra.mxu2 %vm5317_vm9, %v3574_v23 }
0x28bb   :  { %v3645_v24 = vpop.f32.mrf.mxu0 }
0x28bc   :  { %3693 = vst [vmem:[%s5143_s3] sm:$0xff] %v3645_v24 }
0x28c3   :  { %v3648_v7 = vpop.f32.mrf.mxu0 }
0x28c4   :  { %3694 = vst [vmem:[%s5143_s3 + $0x8] sm:$0xff] %v3648_v7 }
0x28cb   :  { %v3651_v25 = vpop.f32.mrf.mxu0 }
0x28cc   :  { %3695 = vst [vmem:[%s5143_s3 + $0x10] sm:$0xff] %v3651_v25 }
0x28d9   :  { %v3654_v39 = vpop.f32.mrf.mxu2 }
0x28da   :  { %3696 = vst [vmem:[%s5143_s3 + $0x18] sm:$0xff] %v3654_v39 }
0x28e1   :  { %v3657_v26 = vpop.f32.mrf.mxu2 }
0x28e2   :  { %3697 = vst [vmem:[%s5143_s3 + $0x20] sm:$0xff] %v3657_v26 }
0x28e9   :  { %v3660_v41 = vpop.f32.mrf.mxu2 }
0x28ea   :  { %3698 = vst [vmem:[%s5143_s3 + $0x28] sm:$0xff] %v3660_v41 }
0x28f1   :  { %v3663_v47 = vpop.f32.mrf.mxu2 }
0x28f2   :  { %3699 = vst [vmem:[%s5143_s3 + $0x30] sm:$0xff] %v3663_v47 }
0x28f9   :  { %v3666_v40 = vpop.f32.mrf.mxu2 }
0x28fa   :  { %3700 = vst [vmem:[%s5143_s3 + $0x38] sm:$0xff] %v3666_v40 }
0x2901   :  { %v3669_v28 = vpop.f32.mrf.mxu2 }
0x2902   :  { %3701 = vst [vmem:[%s5143_s3 + $0x40] sm:$0xff] %v3669_v28 }
0x2909   :  { %v3672_v33 = vpop.f32.mrf.mxu2 }
0x290a   :  { %3702 = vst [vmem:[%s5143_s3 + $0x48] sm:$0xff] %v3672_v33 }
0x2911   :  { %v3675_v30 = vpop.f32.mrf.mxu2 }
0x2912   :  { %3703 = vst [vmem:[%s5143_s3 + $0x50] sm:$0xff] %v3675_v30 }
0x2919   :  { %v3678_v37 = vpop.f32.mrf.mxu2 }
0x291a   :  { %3704 = vst [vmem:[%s5143_s3 + $0x58] sm:$0xff] %v3678_v37 }
0x2921   :  { %v3681_v1 = vpop.f32.mrf.mxu2 }
0x2922   :  { %3705 = vst [vmem:[%s5143_s3 + $0x60] sm:$0xff] %v3681_v1 }
0x2929   :  { %v3684_v60 = vpop.f32.mrf.mxu2 }
0x292a   :  { %3706 = vst [vmem:[%s5143_s3 + $0x68] sm:$0xff] %v3684_v60 }
0x2931   :  { %v3687_v42 = vpop.f32.mrf.mxu2 }
0x2932   :  { %3707 = vst [vmem:[%s5143_s3 + $0x70] sm:$0xff] %v3687_v42 }
0x2939   :  { %v3690_v51 = vpop.f32.mrf.mxu2 }
0x293a   :  { %3708 = vst [vmem:[%s5143_s3 + $0x78] sm:$0xff] %v3690_v51 }
0x293b   :  { %3713 = vsyncpa [#allocation3], 1 }

</bundles_post_ra>
